<compile_context>
chip_gen: v7x
topology: tpu7x:2x2x1
jax: 0.10.0
libtpu: 0.0.40
codegen_flags: <defaults>
</compile_context>

<pallas_src>
import jax
import jax.numpy as jnp
from jax.experimental import pallas as pl
from jax.experimental.pallas import tpu as pltpu

# ---- model hyper-parameters (from GCN.__init__) -----------------------------
N_FEATURES = 16          # self.N_features
N_HEADS = 8              # self.N_heads
AT_CHANNELS = 16         # at_channels (chosen so H*C = 128, lane friendly)
HC = N_HEADS * AT_CHANNELS          # 128 (per-layer hidden width)
SPEC_VEC_LEN = 32        # spec_vec_len (undefined global in reference; chosen)
NEG_SLOPE = 0.2          # GATv2 leaky-relu slope
NEG_BIG = 1e30
N_LAYERS = 10


# =============================================================================
# fused Pallas kernel: grid=(N_LAYERS,), x carried in VMEM scratch
# =============================================================================
def fused_gcn_kernel(x0_ref, ea_ref, mbias_ref,
                     wl_ref, wr_ref, wres_ref, b_ref, we_ref, attm_ref, expm_ref,
                     pool_ref, wlin_ref, blin_ref,
                     out_ref, x_scr):
    """One grid step = one GATv2Conv + Linear residual + ELU layer.

    x0_ref   : (N, HC)         layer-0 node features (zero-padded to HC), resident
    ea_ref   : (2, N, N)       dense edge-attr planes [attr, target, source], resident
    mbias_ref: (N, N)          additive mask bias: 0 where edge exists, -1e30 elsewhere
    wl/wr/wres : (1, HC, HC)   per-layer stacked weights (bf16), pipelined by layer
    b_ref    : (1, 4, HC)      rows = [bias_l, bias_r, bias_res, bias_gat] (f32)
    we_ref   : (1, 2, HC)      lin_edge weight (f32)
    attm_ref : (1, HC, H)      block-diagonal attention matrix (f32)
    expm_ref : (H, HC)         head -> channel 0/1 expansion (layer-invariant, resident)
    pool/wlin/blin             mean-pool matrix and final Linear (used on last layer)
    out_ref  : (G, SPEC)       final output
    x_scr    : (N, HC) f32     node features carried across layers
    """
    layer = pl.program_id(0)
    n_layers = pl.num_programs(0)
    n = x_scr.shape[0]

    @pl.when(layer == 0)
    def _():
        x_scr[...] = x0_ref[...]

    x = x_scr[...]                                 # (N, HC) f32
    xb = x.astype(jnp.bfloat16)                    # bf16 MXU operands only

    b_all = b_ref[0]                               # (4, HC) f32
    bl, br, bres, gb = b_all[0:1, :], b_all[1:2, :], b_all[2:3, :], b_all[3:4, :]

    # dense projections on the MXU (bf16 inputs, f32 accumulation)
    xl = jnp.dot(xb, wl_ref[0], preferred_element_type=jnp.float32) + bl    # source
    xr = jnp.dot(xb, wr_ref[0], preferred_element_type=jnp.float32) + br    # target
    res = jnp.dot(xb, wres_ref[0], preferred_element_type=jnp.float32) + bres

    # edge projection: K=2 matmul replaced with two rank-1 VPU FMAs
    we = we_ref[0]                                 # (2, HC) f32
    eproj = (ea_ref[0][:, :, None] * we[0:1, :][None, :, :]
             + ea_ref[1][:, :, None] * we[1:2, :][None, :, :])              # (N, N, HC)

    # GATv2 attention logits: att_h . leaky_relu(x_i + x_j + e_ij)
    pre = xr[:, None, :] + xl[None, :, :] + eproj                           # (T, S, HC)
    leaky = jnp.where(pre > 0, pre, NEG_SLOPE * pre)
    logits = jnp.dot(leaky.reshape(n * n, HC), attm_ref[0],
                     preferred_element_type=jnp.float32).reshape(n, n, N_HEADS)

    # masked softmax over the source axis (additive -1e30 bias; self-loops exist,
    # so each target row has at least one finite logit and denom >= 1)
    logits = logits + mbias_ref[...][:, :, None]
    m = jnp.max(logits, axis=1, keepdims=True)
    e = jnp.exp(logits - m)
    denom = jnp.sum(e, axis=1, keepdims=True)
    alpha = e * pl.reciprocal(denom, approx=True)                           # (T, S, H)

    # weighted aggregation of lin_l(source), per head, concatenated over heads
    alpha_exp = jnp.dot(alpha.reshape(n * n, N_HEADS), expm_ref[...],
                        preferred_element_type=jnp.float32).reshape(n, n, HC)
    out_gat = jnp.sum(alpha_exp * xl[None, :, :], axis=1) + gb

    # residual Linear + ELU, carry to next layer
    t = out_gat + res
    y = jnp.where(t > 0, t, jnp.exp(jnp.minimum(t, 0.0)) - 1.0)
    x_scr[...] = y

    # final layer: global_mean_pool (pooling matmul) + final Linear, fused here
    @pl.when(layer == n_layers - 1)
    def _():
        pooled = jnp.dot(pool_ref[...], y, preferred_element_type=jnp.float32)   # (G, HC)
        out_ref[...] = (jnp.dot(pooled.astype(jnp.bfloat16), wlin_ref[...],
                                preferred_element_type=jnp.float32) + blin_ref[...])


# =============================================================================
# wrapper
# =============================================================================
def gcn_forward(x0, ea_planes, mbias, pool_mat, params, w_lin, b_lin):
    n = x0.shape[0]
    g = pool_mat.shape[0]
    in_specs = [
        pl.BlockSpec((n, HC), lambda l: (0, 0)),              # x0 (resident)
        pl.BlockSpec((2, n, n), lambda l: (0, 0, 0)),         # edge-attr planes (resident)
        pl.BlockSpec((n, n), lambda l: (0, 0)),               # mask bias (resident)
        pl.BlockSpec((1, HC, HC), lambda l: (l, 0, 0)),       # wl (pipelined per layer)
        pl.BlockSpec((1, HC, HC), lambda l: (l, 0, 0)),       # wr
        pl.BlockSpec((1, HC, HC), lambda l: (l, 0, 0)),       # wres
        pl.BlockSpec((1, 4, HC), lambda l: (l, 0, 0)),        # biases
        pl.BlockSpec((1, 2, HC), lambda l: (l, 0, 0)),        # lin_edge weight
        pl.BlockSpec((1, HC, N_HEADS), lambda l: (l, 0, 0)),  # block-diag att matrix
        pl.BlockSpec((N_HEADS, HC), lambda l: (0, 0)),        # head expansion (resident)
        pl.BlockSpec((g, n), lambda l: (0, 0)),               # mean-pool matrix (resident)
        pl.BlockSpec((HC, SPEC_VEC_LEN), lambda l: (0, 0)),   # final linear W (resident)
        pl.BlockSpec((1, SPEC_VEC_LEN), lambda l: (0, 0)),    # final linear b (resident)
    ]
    return pl.pallas_call(
        fused_gcn_kernel,
        out_shape=jax.ShapeDtypeStruct((g, SPEC_VEC_LEN), jnp.float32),
        grid=(N_LAYERS,),
        in_specs=in_specs,
        out_specs=pl.BlockSpec((g, SPEC_VEC_LEN), lambda l: (0, 0)),
        scratch_shapes=[pltpu.VMEM((n, HC), jnp.float32)],
        compiler_params=pltpu.CompilerParams(
            dimension_semantics=("arbitrary",)),   # layers are sequential (x carried)
    )(x0, ea_planes, mbias,
      params["wl"], params["wr"], params["wres"], params["b"],
      params["we"], params["attm"], params["expm"],
      pool_mat, w_lin, b_lin)


# =============================================================================
# parameter construction (deterministic, glorot-uniform style), stacked per layer
# =============================================================================
def _glorot(key, shape):
    fan_in, fan_out = shape[0], shape[-1]
    limit = (6.0 / (fan_in + fan_out)) ** 0.5
    return jax.random.uniform(key, shape, jnp.float32, -limit, limit)


def make_stacked_params(key):
    lane = jnp.arange(HC)
    wl_l, wr_l, wres_l, b_l, we_l, att_l = [], [], [], [], [], []
    keys = jax.random.split(key, N_LAYERS)
    for l in range(N_LAYERS):
        fin = N_FEATURES if l == 0 else HC
        ks = jax.random.split(keys[l], 6)
        wl = _glorot(ks[0], (fin, HC))
        wr = _glorot(ks[1], (fin, HC))
        wres = _glorot(ks[2], (fin, HC))
        we = _glorot(ks[3], (2, HC))
        att = _glorot(ks[4], (N_HEADS, AT_CHANNELS))            # (1, H, C) in PyG
        bres = 0.01 * jax.random.normal(ks[5], (HC,), jnp.float32)
        if fin < HC:   # zero-pad layer-0 input dim so all layers share one weight shape
            pad = ((0, HC - fin), (0, 0))
            wl, wr, wres = jnp.pad(wl, pad), jnp.pad(wr, pad), jnp.pad(wres, pad)
        # block-diagonal matrix so per-head logit reduction is a single matmul
        att_mat = jnp.zeros((HC, N_HEADS), jnp.float32).at[
            lane, lane // AT_CHANNELS].set(att.reshape(-1))
        wl_l.append(wl); wr_l.append(wr); wres_l.append(wres)
        we_l.append(we); att_l.append(att_mat)
        b_l.append(jnp.stack([jnp.zeros((HC,), jnp.float32),    # lin_l bias
                              jnp.zeros((HC,), jnp.float32),    # lin_r bias
                              bres,                              # residual Linear bias
                              jnp.zeros((HC,), jnp.float32)]))   # GAT output bias
    expm = (lane[None, :] // AT_CHANNELS ==
            jnp.arange(N_HEADS)[:, None]).astype(jnp.float32)    # (H, HC)
    return dict(
        wl=jnp.stack(wl_l).astype(jnp.bfloat16),
        wr=jnp.stack(wr_l).astype(jnp.bfloat16),
        wres=jnp.stack(wres_l).astype(jnp.bfloat16),
        b=jnp.stack(b_l),
        we=jnp.stack(we_l),
        attm=jnp.stack(att_l),
        expm=expm,
    )


# =============================================================================
# pure-JAX reference (same math / same bf16 casts) for a sanity check
# =============================================================================
def reference_forward(x0, ea_planes, mbias, pool_mat, P, w_lin, b_lin):
    n = x0.shape[0]
    x = x0
    for l in range(N_LAYERS):
        xb = x.astype(jnp.bfloat16)
        bl, br, bres, gb = (P["b"][l, i:i + 1, :] for i in range(4))
        xl = jnp.dot(xb, P["wl"][l], preferred_element_type=jnp.float32) + bl
        xr = jnp.dot(xb, P["wr"][l], preferred_element_type=jnp.float32) + br
        res = jnp.dot(xb, P["wres"][l], preferred_element_type=jnp.float32) + bres
        eproj = (ea_planes[0][:, :, None] * P["we"][l, 0:1, :][None]
                 + ea_planes[1][:, :, None] * P["we"][l, 1:2, :][None])
        pre = xr[:, None, :] + xl[None, :, :] + eproj
        leaky = jnp.where(pre > 0, pre, NEG_SLOPE * pre)
        logits = (leaky.reshape(n * n, HC) @ P["attm"][l]).reshape(n, n, N_HEADS)
        logits = logits + mbias[:, :, None]
        m = jnp.max(logits, axis=1, keepdims=True)
        e = jnp.exp(logits - m)
        alpha = e / jnp.sum(e, axis=1, keepdims=True)
        alpha_exp = (alpha.reshape(n * n, N_HEADS) @ P["expm"]).reshape(n, n, HC)
        t = jnp.sum(alpha_exp * xl[None, :, :], axis=1) + gb + res
        x = jnp.where(t > 0, t, jnp.exp(jnp.minimum(t, 0.0)) - 1.0)
    pooled = pool_mat @ x
    return jnp.dot(pooled.astype(jnp.bfloat16), w_lin,
                   preferred_element_type=jnp.float32) + b_lin


# =============================================================================
# main
# =============================================================================
if __name__ == "__main__":
    key = jax.random.PRNGKey(0)
    k_x, k_ea, k_p, k_lin = jax.random.split(key, 4)

    # ---- small deterministic graph ------------------------------------------
    N = 16                                   # number of nodes
    x = jax.random.normal(k_x, (N, N_FEATURES), jnp.float32)
    x0 = jnp.pad(x, ((0, 0), (0, HC - N_FEATURES)))          # zero-pad to (N, HC)

    # edges: (i+1)%N -> i and (i+3)%N -> i  (no self-loops, no duplicates)
    nodes = jnp.arange(N)
    src = jnp.concatenate([(nodes + 1) % N, (nodes + 3) % N])
    dst = jnp.concatenate([nodes, nodes])
    E = src.shape[0]
    edge_attr = jax.random.normal(k_ea, (E, 2), jnp.float32)

    # dense edge representation [target, source, :]
    ea_dense = jnp.zeros((N, N, 2), jnp.float32).at[dst, src].set(edge_attr)
    mask = jnp.zeros((N, N), jnp.float32).at[dst, src].set(1.0)
    # GATv2Conv(add_self_loops=True, fill_value='mean'): self-loop edge attr = mean of
    # incoming edge attrs per target node.
    deg = jnp.zeros((N,), jnp.float32).at[dst].add(1.0)
    loop_attr = jnp.zeros((N, 2), jnp.float32).at[dst].add(edge_attr) / \
        jnp.maximum(deg, 1.0)[:, None]
    ea_dense = ea_dense.at[nodes, nodes].set(loop_attr)
    mask = mask.at[nodes, nodes].set(1.0)
    ea_planes = jnp.transpose(ea_dense, (2, 0, 1))            # (2, N, N)
    mbias = (mask - 1.0) * NEG_BIG                            # 0 on edges, -1e30 elsewhere

    # batch vector: two graphs of 8 nodes each -> mean-pooling matrix
    batch = jnp.concatenate([jnp.zeros(8, jnp.int32), jnp.ones(8, jnp.int32)])
    G = 2
    onehot = (batch[None, :] == jnp.arange(G)[:, None]).astype(jnp.float32)
    pool_mat = onehot / onehot.sum(axis=1, keepdims=True)     # (G, N)

    # ---- parameters ----------------------------------------------------------
    params = make_stacked_params(k_p)
    kl1, kl2 = jax.random.split(k_lin)
    w_lin = _glorot(kl1, (HC, SPEC_VEC_LEN)).astype(jnp.bfloat16)
    b_lin = 0.01 * jax.random.normal(kl2, (1, SPEC_VEC_LEN), jnp.float32)

    # ---- run ------------------------------------------------------------------
    out = jax.jit(gcn_forward)(x0, ea_planes, mbias, pool_mat, params, w_lin, b_lin)
    out = jax.block_until_ready(out)
    assert out.shape == (G, SPEC_VEC_LEN)
    assert bool(jnp.all(jnp.isfinite(out)))

    ref = reference_forward(x0, ea_planes, mbias, pool_mat, params, w_lin, b_lin)
    assert bool(jnp.allclose(out, ref, rtol=3e-2, atol=3e-2))
    print("KERNEL_OK")
</pallas_src>

<mosaic_0001>
module attributes {stable_mosaic.version = 11 : i64} {
  func.func @fused_gcn_kernel(%arg0: i32, %arg1: memref<16x128xf32, #tpu.memory_space<vmem>>, %arg2: memref<2x16x16xf32, #tpu.memory_space<vmem>>, %arg3: memref<16x16xf32, #tpu.memory_space<vmem>>, %arg4: memref<1x128x128xbf16, #tpu.memory_space<vmem>>, %arg5: memref<1x128x128xbf16, #tpu.memory_space<vmem>>, %arg6: memref<1x128x128xbf16, #tpu.memory_space<vmem>>, %arg7: memref<1x4x128xf32, #tpu.memory_space<vmem>>, %arg8: memref<1x2x128xf32, #tpu.memory_space<vmem>>, %arg9: memref<1x128x8xf32, #tpu.memory_space<vmem>>, %arg10: memref<8x128xf32, #tpu.memory_space<vmem>>, %arg11: memref<2x16xf32, #tpu.memory_space<vmem>>, %arg12: memref<128x32xbf16, #tpu.memory_space<vmem>>, %arg13: memref<1x32xf32, #tpu.memory_space<vmem>>, %arg14: memref<2x32xf32, #tpu.memory_space<vmem>>, %arg15: memref<16x128xf32, #tpu.memory_space<vmem>>) attributes {dimension_semantics = [#tpu.dimension_semantics<arbitrary>], iteration_bounds = array<i64: 10>, scalar_prefetch = 0 : i64, scratch_operands = 1 : i64, tpu.core_type = #tpu.core_type<tc>, window_params = [{pipeline_mode = #tpu.pipeline_mode<synchronous>, transform_indices = @transform_0, window_bounds = array<i64: 16, 128>}, {pipeline_mode = #tpu.pipeline_mode<synchronous>, transform_indices = @transform_1, window_bounds = array<i64: 2, 16, 16>}, {pipeline_mode = #tpu.pipeline_mode<synchronous>, transform_indices = @transform_2, window_bounds = array<i64: 16, 16>}, {transform_indices = @transform_3, window_bounds = array<i64: 1, 128, 128>}, {transform_indices = @transform_4, window_bounds = array<i64: 1, 128, 128>}, {transform_indices = @transform_5, window_bounds = array<i64: 1, 128, 128>}, {transform_indices = @transform_6, window_bounds = array<i64: 1, 4, 128>}, {transform_indices = @transform_7, window_bounds = array<i64: 1, 2, 128>}, {transform_indices = @transform_8, window_bounds = array<i64: 1, 128, 8>}, {pipeline_mode = #tpu.pipeline_mode<synchronous>, transform_indices = @transform_9, window_bounds = array<i64: 8, 128>}, {pipeline_mode = #tpu.pipeline_mode<synchronous>, transform_indices = @transform_10, window_bounds = array<i64: 2, 16>}, {pipeline_mode = #tpu.pipeline_mode<synchronous>, transform_indices = @transform_11, window_bounds = array<i64: 128, 32>}, {pipeline_mode = #tpu.pipeline_mode<synchronous>, transform_indices = @transform_12, window_bounds = array<i64: 1, 32>}, {pipeline_mode = #tpu.pipeline_mode<synchronous>, transform_indices = @transform_13, window_bounds = array<i64: 2, 32>}]} {
    %c0_i32 = arith.constant 0 : i32
    %0 = arith.cmpi eq, %arg0, %c0_i32 : i32
    %1 = arith.extui %0 : i1 to i32
    %c0_i32_0 = arith.constant 0 : i32
    %2 = arith.cmpi ne, %1, %c0_i32_0 : i32
    scf.if %2 {
      %c0_44 = arith.constant 0 : index
      %c0_45 = arith.constant 0 : index
      %98 = vector.load %arg1[%c0_44, %c0_45] : memref<16x128xf32, #tpu.memory_space<vmem>>, vector<16x128xf32>
      %c0_46 = arith.constant 0 : index
      %c0_47 = arith.constant 0 : index
      %99 = vector.load %arg15[%c0_46, %c0_47] : memref<16x128xf32, #tpu.memory_space<vmem>>, vector<16x128xf32>
      tpu.vector_store %arg15[%c0_46, %c0_47], %98 {strides = array<i32>} : memref<16x128xf32, #tpu.memory_space<vmem>>, vector<16x128xf32>,
    } else {
    }
    %c0 = arith.constant 0 : index
    %c0_1 = arith.constant 0 : index
    %3 = vector.load %arg15[%c0, %c0_1] : memref<16x128xf32, #tpu.memory_space<vmem>>, vector<16x128xf32>
    %4 = arith.truncf %3 : vector<16x128xf32> to vector<16x128xbf16>
    %c0_2 = arith.constant 0 : index
    %c0_3 = arith.constant 0 : index
    %c0_4 = arith.constant 0 : index
    %5 = vector.load %arg7[%c0_2, %c0_3, %c0_4] : memref<1x4x128xf32, #tpu.memory_space<vmem>>, vector<1x4x128xf32>
    %6 = vector.shape_cast %5 : vector<1x4x128xf32> to vector<4x128xf32>
    %7 = vector.extract_strided_slice %6 {offsets = [0, 0], sizes = [1, 128], strides = [1, 1]} : vector<4x128xf32> to vector<1x128xf32>
    %8 = vector.extract_strided_slice %6 {offsets = [1, 0], sizes = [1, 128], strides = [1, 1]} : vector<4x128xf32> to vector<1x128xf32>
    %9 = vector.extract_strided_slice %6 {offsets = [2, 0], sizes = [1, 128], strides = [1, 1]} : vector<4x128xf32> to vector<1x128xf32>
    %10 = vector.extract_strided_slice %6 {offsets = [3, 0], sizes = [1, 128], strides = [1, 1]} : vector<4x128xf32> to vector<1x128xf32>
    %c0_5 = arith.constant 0 : index
    %c0_6 = arith.constant 0 : index
    %c0_7 = arith.constant 0 : index
    %11 = vector.load %arg4[%c0_5, %c0_6, %c0_7] : memref<1x128x128xbf16, #tpu.memory_space<vmem>>, vector<1x128x128xbf16>
    %12 = vector.shape_cast %11 : vector<1x128x128xbf16> to vector<128x128xbf16>
    %cst = arith.constant dense<0.000000e+00> : vector<16x128xf32>
    %13 = tpu.matmul %4, %12, %cst {dimension_numbers = #tpu.dot_dimension_numbers<[1], [0], [0], [1], [0, 0, 1, 1], [], []>} : vector<16x128xbf16>, vector<128x128xbf16>, vector<16x128xf32> -> vector<16x128xf32>
    %14 = vector.broadcast %7 : vector<1x128xf32> to vector<16x128xf32>
    %15 = arith.addf %13, %14 : vector<16x128xf32>
    %c0_8 = arith.constant 0 : index
    %c0_9 = arith.constant 0 : index
    %c0_10 = arith.constant 0 : index
    %16 = vector.load %arg5[%c0_8, %c0_9, %c0_10] : memref<1x128x128xbf16, #tpu.memory_space<vmem>>, vector<1x128x128xbf16>
    %17 = vector.shape_cast %16 : vector<1x128x128xbf16> to vector<128x128xbf16>
    %cst_11 = arith.constant dense<0.000000e+00> : vector<16x128xf32>
    %18 = tpu.matmul %4, %17, %cst_11 {dimension_numbers = #tpu.dot_dimension_numbers<[1], [0], [0], [1], [0, 0, 1, 1], [], []>} : vector<16x128xbf16>, vector<128x128xbf16>, vector<16x128xf32> -> vector<16x128xf32>
    %19 = vector.broadcast %8 : vector<1x128xf32> to vector<16x128xf32>
    %20 = arith.addf %18, %19 : vector<16x128xf32>
    %c0_12 = arith.constant 0 : index
    %c0_13 = arith.constant 0 : index
    %c0_14 = arith.constant 0 : index
    %21 = vector.load %arg6[%c0_12, %c0_13, %c0_14] : memref<1x128x128xbf16, #tpu.memory_space<vmem>>, vector<1x128x128xbf16>
    %22 = vector.shape_cast %21 : vector<1x128x128xbf16> to vector<128x128xbf16>
    %cst_15 = arith.constant dense<0.000000e+00> : vector<16x128xf32>
    %23 = tpu.matmul %4, %22, %cst_15 {dimension_numbers = #tpu.dot_dimension_numbers<[1], [0], [0], [1], [0, 0, 1, 1], [], []>} : vector<16x128xbf16>, vector<128x128xbf16>, vector<16x128xf32> -> vector<16x128xf32>
    %24 = vector.broadcast %9 : vector<1x128xf32> to vector<16x128xf32>
    %25 = arith.addf %23, %24 : vector<16x128xf32>
    %c0_16 = arith.constant 0 : index
    %c0_17 = arith.constant 0 : index
    %c0_18 = arith.constant 0 : index
    %26 = vector.load %arg8[%c0_16, %c0_17, %c0_18] : memref<1x2x128xf32, #tpu.memory_space<vmem>>, vector<1x2x128xf32>
    %27 = vector.shape_cast %26 : vector<1x2x128xf32> to vector<2x128xf32>
    %c0_19 = arith.constant 0 : index
    %c0_20 = arith.constant 0 : index
    %c0_21 = arith.constant 0 : index
    %28 = vector.load %arg2[%c0_19, %c0_20, %c0_21] : memref<2x16x16xf32, #tpu.memory_space<vmem>>, vector<1x16x16xf32>
    %29 = vector.shape_cast %28 : vector<1x16x16xf32> to vector<16x16xf32>
    %30 = vector.shape_cast %29 : vector<16x16xf32> to vector<16x16x1xf32>
    %31 = vector.extract_strided_slice %27 {offsets = [0, 0], sizes = [1, 128], strides = [1, 1]} : vector<2x128xf32> to vector<1x128xf32>
    %32 = vector.shape_cast %31 : vector<1x128xf32> to vector<1x1x128xf32>
    %33 = vector.broadcast %30 : vector<16x16x1xf32> to vector<16x16x128xf32>
    %34 = vector.broadcast %32 : vector<1x1x128xf32> to vector<16x16x128xf32>
    %35 = arith.mulf %33, %34 : vector<16x16x128xf32>
    %c1 = arith.constant 1 : index
    %c0_22 = arith.constant 0 : index
    %c0_23 = arith.constant 0 : index
    %36 = vector.load %arg2[%c1, %c0_22, %c0_23] : memref<2x16x16xf32, #tpu.memory_space<vmem>>, vector<1x16x16xf32>
    %37 = vector.shape_cast %36 : vector<1x16x16xf32> to vector<16x16xf32>
    %38 = vector.shape_cast %37 : vector<16x16xf32> to vector<16x16x1xf32>
    %39 = vector.extract_strided_slice %27 {offsets = [1, 0], sizes = [1, 128], strides = [1, 1]} : vector<2x128xf32> to vector<1x128xf32>
    %40 = vector.shape_cast %39 : vector<1x128xf32> to vector<1x1x128xf32>
    %41 = vector.broadcast %38 : vector<16x16x1xf32> to vector<16x16x128xf32>
    %42 = vector.broadcast %40 : vector<1x1x128xf32> to vector<16x16x128xf32>
    %43 = arith.mulf %41, %42 : vector<16x16x128xf32>
    %44 = arith.addf %35, %43 : vector<16x16x128xf32>
    %45 = vector.shape_cast %20 : vector<16x128xf32> to vector<16x1x128xf32>
    %46 = vector.shape_cast %15 : vector<16x128xf32> to vector<1x16x128xf32>
    %47 = vector.broadcast %45 : vector<16x1x128xf32> to vector<16x16x128xf32>
    %48 = vector.broadcast %46 : vector<1x16x128xf32> to vector<16x16x128xf32>
    %49 = arith.addf %47, %48 : vector<16x16x128xf32>
    %50 = arith.addf %49, %44 : vector<16x16x128xf32>
    %cst_24 = arith.constant 0.000000e+00 : f32
    %51 = vector.broadcast %cst_24 : f32 to vector<16x16x128xf32>
    %52 = arith.cmpf ogt, %50, %51 : vector<16x16x128xf32>
    %cst_25 = arith.constant 2.000000e-01 : f32
    %53 = vector.broadcast %cst_25 : f32 to vector<16x16x128xf32>
    %54 = arith.mulf %53, %50 : vector<16x16x128xf32>
    %55 = arith.select %52, %50, %54 : vector<16x16x128xi1>, vector<16x16x128xf32>
    %56 = vector.shape_cast %55 : vector<16x16x128xf32> to vector<256x128xf32>
    %c0_26 = arith.constant 0 : index
    %c0_27 = arith.constant 0 : index
    %c0_28 = arith.constant 0 : index
    %57 = vector.load %arg9[%c0_26, %c0_27, %c0_28] : memref<1x128x8xf32, #tpu.memory_space<vmem>>, vector<1x128x8xf32>
    %58 = vector.shape_cast %57 : vector<1x128x8xf32> to vector<128x8xf32>
    %cst_29 = arith.constant dense<0.000000e+00> : vector<256x8xf32>
    %59 = tpu.matmul %56, %58, %cst_29 {dimension_numbers = #tpu.dot_dimension_numbers<[1], [0], [0], [1], [0, 0, 1, 1], [], []>} : vector<256x128xf32>, vector<128x8xf32>, vector<256x8xf32> -> vector<256x8xf32>
    %60 = vector.shape_cast %59 : vector<256x8xf32> to vector<16x16x8xf32>
    %c0_30 = arith.constant 0 : index
    %c0_31 = arith.constant 0 : index
    %61 = vector.load %arg3[%c0_30, %c0_31] : memref<16x16xf32, #tpu.memory_space<vmem>>, vector<16x16xf32>
    %62 = vector.shape_cast %61 : vector<16x16xf32> to vector<16x16x1xf32>
    %63 = vector.broadcast %62 : vector<16x16x1xf32> to vector<16x16x8xf32>
    %64 = arith.addf %60, %63 : vector<16x16x8xf32>
    %cst_32 = arith.constant dense<0xFF800000> : vector<16x8xf32>
    %65 = vector.multi_reduction <maximumf>, %64, %cst_32 [1] : vector<16x16x8xf32> to vector<16x8xf32>
    %66 = vector.shape_cast %65 : vector<16x8xf32> to vector<16x1x8xf32>
    %67 = vector.broadcast %66 : vector<16x1x8xf32> to vector<16x16x8xf32>
    %68 = arith.subf %64, %67 : vector<16x16x8xf32>
    %69 = math.exp %68 : vector<16x16x8xf32>
    %cst_33 = arith.constant dense<0.000000e+00> : vector<16x8xf32>
    %70 = vector.multi_reduction <add>, %69, %cst_33 [1] : vector<16x16x8xf32> to vector<16x8xf32>
    %71 = vector.shape_cast %70 : vector<16x8xf32> to vector<16x1x8xf32>
    %72 = tpu.reciprocal %71 {approx = true} : vector<16x1x8xf32> -> vector<16x1x8xf32>
    %73 = vector.broadcast %72 : vector<16x1x8xf32> to vector<16x16x8xf32>
    %74 = arith.mulf %69, %73 : vector<16x16x8xf32>
    %75 = vector.shape_cast %74 : vector<16x16x8xf32> to vector<256x8xf32>
    %c0_34 = arith.constant 0 : index
    %c0_35 = arith.constant 0 : index
    %76 = vector.load %arg10[%c0_34, %c0_35] : memref<8x128xf32, #tpu.memory_space<vmem>>, vector<8x128xf32>
    %cst_36 = arith.constant dense<0.000000e+00> : vector<256x128xf32>
    %77 = tpu.matmul %75, %76, %cst_36 {dimension_numbers = #tpu.dot_dimension_numbers<[1], [0], [0], [1], [0, 0, 1, 1], [], []>} : vector<256x8xf32>, vector<8x128xf32>, vector<256x128xf32> -> vector<256x128xf32>
    %78 = vector.shape_cast %77 : vector<256x128xf32> to vector<16x16x128xf32>
    %79 = vector.shape_cast %15 : vector<16x128xf32> to vector<1x16x128xf32>
    %80 = vector.broadcast %79 : vector<1x16x128xf32> to vector<16x16x128xf32>
    %81 = arith.mulf %78, %80 : vector<16x16x128xf32>
    %cst_37 = arith.constant dense<0.000000e+00> : vector<16x128xf32>
    %82 = vector.multi_reduction <add>, %81, %cst_37 [1] : vector<16x16x128xf32> to vector<16x128xf32>
    %83 = vector.broadcast %10 : vector<1x128xf32> to vector<16x128xf32>
    %84 = arith.addf %82, %83 : vector<16x128xf32>
    %85 = arith.addf %84, %25 : vector<16x128xf32>
    %cst_38 = arith.constant 0.000000e+00 : f32
    %86 = vector.broadcast %cst_38 : f32 to vector<16x128xf32>
    %87 = arith.cmpf ogt, %85, %86 : vector<16x128xf32>
    %cst_39 = arith.constant 0.000000e+00 : f32
    %88 = vector.broadcast %cst_39 : f32 to vector<16x128xf32>
    %89 = arith.minimumf %85, %88 : vector<16x128xf32>
    %90 = math.exp %89 : vector<16x128xf32>
    %cst_40 = arith.constant 1.000000e+00 : f32
    %91 = vector.broadcast %cst_40 : f32 to vector<16x128xf32>
    %92 = arith.subf %90, %91 : vector<16x128xf32>
    %93 = arith.select %87, %85, %92 : vector<16x128xi1>, vector<16x128xf32>
    %c0_41 = arith.constant 0 : index
    %c0_42 = arith.constant 0 : index
    %94 = vector.load %arg15[%c0_41, %c0_42] : memref<16x128xf32, #tpu.memory_space<vmem>>, vector<16x128xf32>
    tpu.vector_store %arg15[%c0_41, %c0_42], %93 {strides = array<i32>} : memref<16x128xf32, #tpu.memory_space<vmem>>, vector<16x128xf32>,
    %c9_i32 = arith.constant 9 : i32
    %95 = arith.cmpi eq, %arg0, %c9_i32 : i32
    %96 = arith.extui %95 : i1 to i32
    %c0_i32_43 = arith.constant 0 : i32
    %97 = arith.cmpi ne, %96, %c0_i32_43 : i32
    scf.if %97 {
      %c0_44 = arith.constant 0 : index
      %c0_45 = arith.constant 0 : index
      %98 = vector.load %arg11[%c0_44, %c0_45] : memref<2x16xf32, #tpu.memory_space<vmem>>, vector<2x16xf32>
      %cst_46 = arith.constant dense<0.000000e+00> : vector<2x128xf32>
      %99 = tpu.matmul %98, %93, %cst_46 {dimension_numbers = #tpu.dot_dimension_numbers<[1], [0], [0], [1], [0, 0, 1, 1], [], []>} : vector<2x16xf32>, vector<16x128xf32>, vector<2x128xf32> -> vector<2x128xf32>
      %100 = arith.truncf %99 : vector<2x128xf32> to vector<2x128xbf16>
      %c0_47 = arith.constant 0 : index
      %c0_48 = arith.constant 0 : index
      %101 = vector.load %arg12[%c0_47, %c0_48] : memref<128x32xbf16, #tpu.memory_space<vmem>>, vector<128x32xbf16>
      %cst_49 = arith.constant dense<0.000000e+00> : vector<2x32xf32>
      %102 = tpu.matmul %100, %101, %cst_49 {dimension_numbers = #tpu.dot_dimension_numbers<[1], [0], [0], [1], [0, 0, 1, 1], [], []>} : vector<2x128xbf16>, vector<128x32xbf16>, vector<2x32xf32> -> vector<2x32xf32>
      %c0_50 = arith.constant 0 : index
      %c0_51 = arith.constant 0 : index
      %103 = vector.load %arg13[%c0_50, %c0_51] : memref<1x32xf32, #tpu.memory_space<vmem>>, vector<1x32xf32>
      %104 = vector.broadcast %103 : vector<1x32xf32> to vector<2x32xf32>
      %105 = arith.addf %102, %104 : vector<2x32xf32>
      %c0_52 = arith.constant 0 : index
      %c0_53 = arith.constant 0 : index
      %106 = vector.load %arg14[%c0_52, %c0_53] : memref<2x32xf32, #tpu.memory_space<vmem>>, vector<2x32xf32>
      tpu.vector_store %arg14[%c0_52, %c0_53], %105 {strides = array<i32>} : memref<2x32xf32, #tpu.memory_space<vmem>>, vector<2x32xf32>,
    } else {
    }
    return
  }
  func.func @transform_0(%arg0: i32) -> (i32, i32) {
    %c0_i32 = arith.constant 0 : i32
    %c0_i32_0 = arith.constant 0 : i32
    %c0_i32_1 = arith.constant 0 : i32
    return %c0_i32, %c0_i32_0 : i32, i32
  }
  func.func @transform_1(%arg0: i32) -> (i32, i32, i32) {
    %c0_i32 = arith.constant 0 : i32
    %c0_i32_0 = arith.constant 0 : i32
    %c0_i32_1 = arith.constant 0 : i32
    %c0_i32_2 = arith.constant 0 : i32
    return %c0_i32, %c0_i32_0, %c0_i32_1 : i32, i32, i32
  }
  func.func @transform_2(%arg0: i32) -> (i32, i32) {
    %c0_i32 = arith.constant 0 : i32
    %c0_i32_0 = arith.constant 0 : i32
    %c0_i32_1 = arith.constant 0 : i32
    return %c0_i32, %c0_i32_0 : i32, i32
  }
  func.func @transform_3(%arg0: i32) -> (i32, i32, i32) {
    %c0_i32 = arith.constant 0 : i32
    %c0_i32_0 = arith.constant 0 : i32
    %c0_i32_1 = arith.constant 0 : i32
    return %arg0, %c0_i32, %c0_i32_0 : i32, i32, i32
  }
  func.func @transform_4(%arg0: i32) -> (i32, i32, i32) {
    %c0_i32 = arith.constant 0 : i32
    %c0_i32_0 = arith.constant 0 : i32
    %c0_i32_1 = arith.constant 0 : i32
    return %arg0, %c0_i32, %c0_i32_0 : i32, i32, i32
  }
  func.func @transform_5(%arg0: i32) -> (i32, i32, i32) {
    %c0_i32 = arith.constant 0 : i32
    %c0_i32_0 = arith.constant 0 : i32
    %c0_i32_1 = arith.constant 0 : i32
    return %arg0, %c0_i32, %c0_i32_0 : i32, i32, i32
  }
  func.func @transform_6(%arg0: i32) -> (i32, i32, i32) {
    %c0_i32 = arith.constant 0 : i32
    %c0_i32_0 = arith.constant 0 : i32
    %c0_i32_1 = arith.constant 0 : i32
    return %arg0, %c0_i32, %c0_i32_0 : i32, i32, i32
  }
  func.func @transform_7(%arg0: i32) -> (i32, i32, i32) {
    %c0_i32 = arith.constant 0 : i32
    %c0_i32_0 = arith.constant 0 : i32
    %c0_i32_1 = arith.constant 0 : i32
    return %arg0, %c0_i32, %c0_i32_0 : i32, i32, i32
  }
  func.func @transform_8(%arg0: i32) -> (i32, i32, i32) {
    %c0_i32 = arith.constant 0 : i32
    %c0_i32_0 = arith.constant 0 : i32
    %c0_i32_1 = arith.constant 0 : i32
    return %arg0, %c0_i32, %c0_i32_0 : i32, i32, i32
  }
  func.func @transform_9(%arg0: i32) -> (i32, i32) {
    %c0_i32 = arith.constant 0 : i32
    %c0_i32_0 = arith.constant 0 : i32
    %c0_i32_1 = arith.constant 0 : i32
    return %c0_i32, %c0_i32_0 : i32, i32
  }
  func.func @transform_10(%arg0: i32) -> (i32, i32) {
    %c0_i32 = arith.constant 0 : i32
    %c0_i32_0 = arith.constant 0 : i32
    %c0_i32_1 = arith.constant 0 : i32
    return %c0_i32, %c0_i32_0 : i32, i32
  }
  func.func @transform_11(%arg0: i32) -> (i32, i32) {
    %c0_i32 = arith.constant 0 : i32
    %c0_i32_0 = arith.constant 0 : i32
    %c0_i32_1 = arith.constant 0 : i32
    return %c0_i32, %c0_i32_0 : i32, i32
  }
  func.func @transform_12(%arg0: i32) -> (i32, i32) {
    %c0_i32 = arith.constant 0 : i32
    %c0_i32_0 = arith.constant 0 : i32
    %c0_i32_1 = arith.constant 0 : i32
    return %c0_i32, %c0_i32_0 : i32, i32
  }
  func.func @transform_13(%arg0: i32) -> (i32, i32) {
    %c0_i32 = arith.constant 0 : i32
    %c0_i32_0 = arith.constant 0 : i32
    %c0_i32_1 = arith.constant 0 : i32
    return %c0_i32, %c0_i32_0 : i32, i32
  }
}

</mosaic_0001>

<bundles_post_ra>
// kernel: gcn_forward.1
= control target key start
LH: loop header
LB: loop body
LE: loop exit
PB: predicated region body
PF: predicated region fallthrough
CT: control target
= control target key end

     0   :  { %s6156_s0 = inlined_call_operand.hbm [shape: f32[16,128], index: 0, kind: input, shape index: {}]   ;;  %s6157_s1 = inlined_call_operand.vmem [shape: f32[2,16,16], index: 1, kind: input, shape index: {}]   ;;  %s6158_s2 = inlined_call_operand.hbm [shape: f32[16,16], index: 2, kind: input, shape index: {}]   ;;  %s6159_s3 = inlined_call_operand.vmem [shape: bf16[10,128,128], index: 3, kind: input, shape index: {}]   ;;  %s6160_s4 = inlined_call_operand.vmem [shape: bf16[10,128,128], index: 4, kind: input, shape index: {}]   ;;  %s6161_s5 = inlined_call_operand.hbm [shape: bf16[10,128,128], index: 5, kind: input, shape index: {}]   ;;  %s6162_s6 = inlined_call_operand.vmem [shape: f32[10,4,128], index: 6, kind: input, shape index: {}]   ;;  %s6163_s7 = inlined_call_operand.vmem [shape: f32[10,2,128], index: 7, kind: input, shape index: {}]   ;;  %s6164_s8 = inlined_call_operand.vmem [shape: f32[10,128,8], index: 8, kind: input, shape index: {}]   ;;  %s6165_s9 = inlined_call_operand.hbm [shape: f32[8,128], index: 9, kind: input, shape index: {}]   ;;  %s6166_s10 = inlined_call_operand.vmem [shape: f32[2,16], index: 10, kind: input, shape index: {}]   ;;  %s6167_s11 = inlined_call_operand.vmem [shape: bf16[128,32], index: 11, kind: input, shape index: {}]   ;;  %s6168_s12 = inlined_call_operand.vmem [shape: f32[1,32], index: 12, kind: input, shape index: {}]   ;;  %s6169_s13 = inlined_call_operand.hbm [shape: f32[2,32], index: 13, kind: output, shape index: {}]  }
   0x1   :  { %6189 = sst [smem:[#allocation25_spill]] %s6157_s1 }
   0x2   :  { %6190 = sst [smem:[#allocation26_spill]] %s6162_s6 }
   0x3   :  { %6191 = sst [smem:[#allocation27_spill]] %s6163_s7 }
   0x4   :  { %6192 = sst [smem:[#allocation28_spill]] %s6164_s8 }
   0x5   :  { %6193 = sst [smem:[#allocation29_spill]] %s6166_s10 }
   0x6   :  { %6194 = sst [smem:[#allocation30_spill]] %s6167_s11 }
   0x7   :  { %6195 = sst [smem:[#allocation31_spill]] %s6168_s12 }
   0x8   :  { %6196 = sst [smem:[#allocation32_spill]] %s6169_s13 }
   0x9   :  { %18 = vsyncpa [#allocation4], 0 }
   0xa   :  { %19 = vsyncpa [#allocation7], 0 }
   0xb   :  { %20 = vsyncpa [#allocation5], 0  ;;  %s4644_s25 = smov 0   ;;  %s4646_s26 = smov 0  }
   0xc   :  { %s4648_s27 = smov 0   ;;  %s4650_s28 = smov 0  }
   0xd LB: > { %s4663_s29 = sadd.s32 4294967295, %s4557_s28   ;;  %s4666_s30 = sadd.s32 1, %s4557_s28   ;;  %s4557_s28 = sphi %s4650_s28, %s6240_s28   ;;  %s4553_s27 = sphi %s4648_s27, %s6244_s27   ;;  %s4549_s26 = sphi %s4646_s26, %s6243_s26   ;;  %s4545_s25 = sphi %s4644_s25, %s6242_s25  }
   0xe   : > { %6197 = sst [smem:[#allocation16_spill]] %s4666_s30  ;;  %s145_s14 = ssub.s32 %s4557_s28, %s4666_s30 }
   0xf   : > { %s148_s15 = sadd.s32 1, %s4553_s27  ;;  %p146_p0 = scmp.eq.s32.totalorder %s145_s14, 0 }
  0x10   : > { %p155_p1 = scmp.ne.s32.totalorder %s4553_s27, %s4549_s26  ;;  %p156_p2 = scmp.eq.s32.totalorder %s4557_s28, 0 }
  0x11   : > { %p161_p3 = scmp.ne.s32.totalorder %s4549_s26, %s4545_s25  ;;  %p6172_p5 = scmp.eq.s32.totalorder %s4663_s29, 0 }
  0x12   : > { %s4676_s16 = scalar_select %p146_p0, %s4553_s27, %s148_s15  }
  0x13   : > { %p4678_p4 = por %p156_p2, %p155_p1  ;;  %p3630_p6 = scmp.ge.s32.totalorder %s4557_s28, 1 }
  0x14   : > { %6198 = sst [smem:[#allocation17_spill]] %s4676_s16  ;;  %p355_p7 = scmp.lt.s32.totalorder %s4557_s28, 11 }
  0x15   : > { %p4687_p8 = por %p6172_p5, %p161_p3  ;;  %s4559_s20 = smov [#allocation3]  }
  0x16   : > { %p4692_p10 = pnand %p3630_p6, %p355_p7  ;;  %s367_s21 = sshll.u32 %s4559_s20, 4  ;;  %s368_s21 = int_to_ptr.vmem [resolvable:$true] %s367_s21 }
  0x17   : > { %s6200_s18 = scalar_select %p4687_p8, 1, 0 }
  0x18   : > { %s6201_s19 = scalar_select %p4692_p10, 1, 0 }
  0x19   : > { %p4137_p11 = pneg %p4692_p10  ;;  %p4154_p13 = scmp.lt.s32.totalorder %s4557_s28, 10 }
  0x1a   : > { %s4367_s14 = scalar_lea.hbm %s6156_s0, 256 }
  0x1b   : > { %p4700_p12 = pnand %p4137_p11, %p6172_p5  ;;  %p4707_p0 = pnand %p4154_p13, %p4678_p4 }
  0x1c   : > { %p4368_p1 = scmp.ne.s32.totalorder %s6156_s0, %s4367_s14  ;;  %p4374_p6 = scmp.lt.u32.totalorder %s4367_s14, %s6156_s0 }
  0x1d   : > { %s6203_s23 = scalar_select %p4707_p0, 1, 0 }
  0x1e   : > { %p4719_p2 = pneg %p4700_p12 }
  0x20   : > { %p4370_p3 = pnand %p4719_p2, %p4368_p1 }
  0x22   : > { %p4371_p4 = pneg %p4370_p3 }
  0x24   : > { %p4376_p7 = pnand %p4374_p6, %p4371_p4 }
  0x26   : > { %4379 = shalt.err (!%p4376_p7)
}
  0x27   : > { %s4380_s24 = scalar_lea.vmem %s368_s21, 256  ;;  %p4388_p5 = scmp.lt.s32.totalorder %s368_s21, %s368_s21 }
  0x28   : > { %p4381_p11 = scmp.ne.s32.totalorder %s368_s21, %s4380_s24  ;;  %p4389_p8 = scmp.lt.s32.totalorder %s4380_s24, %s4380_s24 }
  0x2a   : > { %p4383_p13 = pnand %p4381_p11, %p4719_p2  ;;  %p4390_p10 = por %p4389_p8, %p4388_p5 }
  0x2c   : > { %p4384_p9 = pneg %p4383_p13 }
  0x2e   : > { %p4391_p0 = pnand %p4390_p10, %p4384_p9 }
  0x30   : > { %4394 = shalt.err (!%p4391_p0)
}
  0x31   : > { %s4560_s25 = smov 128   ;;  %s4561_s15 = smov 8  }
  0x32   : > { %4140 = dma.hbm_to_vmem [thread:$0]  (!%p4700_p12), %s6156_s0, 256, %s368_s21, [#allocation4], %s4560_s25, %s4560_s25, %s4561_s15  }
  0x33   : > { %s4562_s20 = smov [#allocation6]   ;;  %s4563_s13 = smov [#allocation9]  }
  0x34   : > { %s383_s17 = sshll.u32 %s4562_s20, 4  ;;  %s397_s12 = sshll.u32 %s4563_s13, 4  ;;  %s384_s17 = int_to_ptr.vmem [resolvable:$true] %s383_s17  ;;  %s398_s12 = int_to_ptr.vmem [resolvable:$true] %s397_s12 }
  0x35   : > { %s4395_s24 = scalar_lea.hbm %s6158_s2, 256 }
  0x36   : > { %p4396_p5 = scmp.ne.s32.totalorder %s6158_s2, %s4395_s24  ;;  %p4402_p10 = scmp.lt.u32.totalorder %s4395_s24, %s6158_s2 }
  0x38   : > { %p4398_p8 = pnand %p4396_p5, %p4719_p2 }
  0x3a   : > { %p4399_p9 = pneg %p4398_p8 }
  0x3c   : > { %p4404_p0 = pnand %p4402_p10, %p4399_p9 }
  0x3e   : > { %4407 = shalt.err (!%p4404_p0)
}
  0x3f   : > { %s4408_s21 = scalar_lea.vmem %s384_s17, 256  ;;  %p4416_p6 = scmp.lt.s32.totalorder %s384_s17, %s384_s17 }
  0x40   : > { %p4409_p1 = scmp.ne.s32.totalorder %s384_s17, %s4408_s21  ;;  %p4417_p7 = scmp.lt.s32.totalorder %s4408_s21, %s4408_s21 }
  0x42   : > { %p4411_p3 = pnand %p4409_p1, %p4719_p2  ;;  %p4418_p11 = por %p4417_p7, %p4416_p6 }
  0x44   : > { %p4412_p4 = pneg %p4411_p3 }
  0x46   : > { %p4419_p13 = pnand %p4418_p11, %p4412_p4 }
  0x48   : > { %4422 = shalt.err (!%p4419_p13)
}
  0x49   : > { %4143 = dma.hbm_to_vmem [thread:$0]  (!%p4700_p12), %s6158_s2, 256, %s384_s17, [#allocation7], %s4560_s25, %s4560_s25, %s4561_s15  }
  0x4a   : > { %s433_s6 = sand.u32 1, %s4557_s28   ;;  %s4423_s11 = scalar_lea.hbm %s6165_s9, 128 }
  0x4b   : > { %p4424_p5 = scmp.ne.s32.totalorder %s6165_s9, %s4423_s11  ;;  %p4430_p10 = scmp.lt.u32.totalorder %s4423_s11, %s6165_s9 }
  0x4d   : > { %p4426_p8 = pnand %p4424_p5, %p4719_p2 }
  0x4f   : > { %p4427_p9 = pneg %p4426_p8 }
  0x51   : > { %p4432_p0 = pnand %p4430_p10, %p4427_p9 }
  0x53   : > { %4435 = shalt.err (!%p4432_p0)
}
  0x54   : > { %s4436_s25 = scalar_lea.vmem %s398_s12, 128  ;;  %p4444_p6 = scmp.lt.s32.totalorder %s398_s12, %s398_s12 }
  0x55   : > { %p4437_p1 = scmp.ne.s32.totalorder %s398_s12, %s4436_s25  ;;  %p4445_p7 = scmp.lt.s32.totalorder %s4436_s25, %s4436_s25 }
  0x57   : > { %p4439_p3 = pnand %p4437_p1, %p4719_p2  ;;  %p4446_p11 = por %p4445_p7, %p4444_p6 }
  0x59   : > { %p4440_p4 = pneg %p4439_p3 }
  0x5b   : > { %p4447_p13 = pnand %p4446_p11, %p4440_p4 }
  0x5d   : > { %4450 = shalt.err (!%p4447_p13)
}
  0x5e   : > { %4146 = dma.hbm_to_vmem [thread:$0]  (!%p4700_p12), %s6165_s9, 128, %s398_s12, [#allocation7]  }
  0x5f   : > { %s435_s24 = sand.u32 1, %s4553_s27   ;;  %s3741_s16 = sshll.u32 %s4557_s28, 10 }
  0x60   : > { %s3635_s21 = sshll.u32 %s435_s24, 6  ;;  %s4777_s7 = scalar_lea.hbm %s6161_s5, %s3741_s16 }
  0x61   : > { %s437_s22 = scalar_lea.vmem [#allocation8], %s3635_s21  ;;  %s4781_s11 = scalar_lea.sflag [#allocation4], %s433_s6 }
  0x62   : > { %s444_s10 = sshll.u32 %s437_s22, 4  ;;  %s4451_s13 = scalar_lea.hbm %s4777_s7, 1024  ;;  %s4779_s10 = int_to_ptr.vmem [resolvable:$true] %s444_s10 }
  0x63   : > { %p4452_p12 = scmp.ne.s32.totalorder %s4777_s7, %s4451_s13  ;;  %p6205_p2 = scmp.ne.s32.totalorder %s6203_s23, 0 }
  0x64   : > { %s4456_s30 = scalar_lea.hbm %s6161_s5, 10240  ;;  %p4457_p10 = scmp.lt.u32.totalorder %s4777_s7, %s6161_s5 }
  0x65   : > { %p4453_p5 = pneg %p6205_p2  ;;  %p4458_p0 = scmp.lt.u32.totalorder %s4456_s30, %s4451_s13 }
  0x66   : > { %p4460_p3 = scmp.lt.u32.totalorder %s4451_s13, %s4777_s7 }
  0x67   : > { %p4454_p8 = pnand %p4453_p5, %p4452_p12  ;;  %p4459_p1 = por %p4458_p0, %p4457_p10 }
  0x69   : > { %p4455_p9 = pneg %p4454_p8  ;;  %p4461_p4 = por %p4460_p3, %p4459_p1 }
  0x6b   : > { %p4462_p6 = pnand %p4461_p4, %p4455_p9 }
  0x6d   : > { %4465 = shalt.err (!%p4462_p6)
}
  0x6e   : > { %s4466_s6 = scalar_lea.vmem %s4779_s10, 1024  ;;  %s4564_s25 = smov [#allocation8]  }
  0x6f   : > { %p4467_p7 = scmp.ne.s32.totalorder %s4779_s10, %s4466_s6  ;;  %s4471_s15 = sshll.u32 %s4564_s25, 4  ;;  %s4472_s15 = int_to_ptr.vmem [resolvable:$false] %s4471_s15 }
  0x70   : > { %s4473_s17 = scalar_lea.vmem %s4472_s15, 2048  ;;  %p4474_p12 = scmp.lt.s32.totalorder %s4779_s10, %s4472_s15 }
  0x71   : > { %p4469_p11 = pnand %p4467_p7, %p4453_p5  ;;  %p4475_p8 = scmp.lt.s32.totalorder %s4473_s17, %s4466_s6 }
  0x73   : > { %p4470_p13 = pneg %p4469_p11  ;;  %p4476_p10 = por %p4475_p8, %p4474_p12 }
  0x75   : > { %p4477_p0 = pnand %p4476_p10, %p4470_p13 }
  0x77   : > { %4480 = shalt.err (!%p4477_p0)
}
  0x78   : > { %s4565_s24 = smov 64   ;;  %s4566_s21 = smov 4  }
  0x79   : > { %4150 = dma.hbm_to_vmem [thread:$0]  (!%p6205_p2), %s4777_s7, 1024, %s4779_s10, %s4781_s11, %s4565_s24, %s4565_s24, %s4566_s21  }
  0x7a   : > { %p6206_p5 = scmp.ne.s32.totalorder %s6201_s19, 0 }
  0x7c   : > { %478 = sbr.rel (%p6206_p5) target bundleno = 1527 (0x5f7), region = 72 }
  0x83   : > { %p6207_p9 = scmp.eq.s32.totalorder %s4663_s29, 0 }
  0x85   : > { %4524 = dma.done.wait (%p6207_p9), [#allocation4], 256   ;;  %p6208_p1 = pmov %p6207_p9 }
  0x87   : > { %4526 = vsyncadd (%p6208_p1), [#allocation4], 4294967040  ;;  %p6209_p3 = pmov %p6208_p1 }
  0x88   : > { %p6210_p4 = pmov %p6208_p1 }
  0x89   : > { %4528 = dma.done.wait (%p6209_p3), [#allocation7], 256  }
  0x8a   : > { %4530 = vsyncadd (%p6210_p4), [#allocation7], 4294967040  ;;  %s488_s23 = sand.u32 1, %s4663_s29   ;;  %s490_s16 = sand.u32 1, %s4549_s26  }
  0x8b   : > { %s3641_s1 = sshll.u32 %s490_s16, 6  ;;  %s489_s19 = scalar_lea.sflag [#allocation4], %s488_s23 }
  0x8c   : > { %s4821_s8 = scalar_lea.vmem [#allocation8], %s3641_s1  ;;  %p6211_p2 = scmp.ne.s32.totalorder %s6200_s18, 0 }
  0x8e   : > { %4532 = dma.done.wait (%p6211_p2), %s489_s19, 1024  }
  0x8f   : > { %4534 = vsyncadd (%p6211_p2), %s489_s19, 4294966272  ;;  %p6212_p6 = pmov %p6208_p1 }
  0x90   : > { %p6213_p7 = pmov %p6208_p1 }
  0x91   : > { %4536 = dma.done.wait (%p6212_p6), [#allocation7], 128  }
  0x92   : > { %4538 = vsyncadd (%p6213_p7), [#allocation7], 4294967168  ;;  %p557_p11 = scmp.lt.s32.totalorder %s4663_s29, 9  ;;  %s6214_s6 = sld [smem:[#allocation26_spill]] }
  0x93   : > { %s6215_s21 = sld [smem:[#allocation27_spill]]  ;;  %s6216_s11 = sld [smem:[#allocation28_spill]] }
  0x94   : > { %s558_s7 = scalar_select %p557_p11, %s4663_s29, 9 }
  0x95   : > { %p6217_p13 = scmp.ne.s32.totalorder %s4663_s29, 0 }
  0x96   : > { %s3742_s22 = sshll.u32 %s558_s7, 6  ;;  %s3647_s10 = sshll.u32 %s558_s7, 2  ;;  %v585_v0 = vld [vmem:[#allocation3] sm:$0xff] (!%p6217_p13)  ;;  %v586_v1 = vld [vmem:[#allocation3 + $0x8] sm:$0xff] (!%p6217_p13) }
  0x97   : > { %s4836_s12 = scalar_lea.vmem %s6159_s3, %s3742_s22  ;;  %s4841_s30 = scalar_lea.vmem %s6160_s4, %s3742_s22  ;;  %587 = vst [vmem:[#allocation2] sm:$0xff] (!%p6217_p13), %v585_v0  ;;  %588 = vst [vmem:[#allocation2 + $0x8] sm:$0xff] (!%p6217_p13), %v586_v1 }
  0x98   : > { %s4846_s25 = scalar_lea.vmem %s6214_s6, %s3647_s10  ;;  %s3648_s15 = sshll.u32 %s558_s7, 1 }
  0x99   : > { %s4851_s23 = scalar_lea.vmem %s6215_s21, %s3648_s15  ;;  %s3744_s16 = sshll.u32 %s558_s7, 7 }
  0x9a   : > { %s4856_s13 = scalar_lea.vmem %s6216_s11, %s3744_s16  ;;  %584 = sbr.rel (%p6217_p13) target bundleno = 161 (0xa1), region = 92 }
  0xa1 PF: > { %v4206_v2 = vld [vmem:[%s4841_s30] sm:$0xff]   ;;  %v609_v3 = vlaneseq  ;;  %v6179_v4 = vmov 0.0   ;;  %v4208_v6 = vld [vmem:[%s4841_s30 + $0x8] sm:$0xff]   ;;  %vm4568_vm0 = vmmov 0   ;;  %v4210_v9 = vld [vmem:[%s4841_s30 + $0x10] sm:$0xff]   ;;  %s6218_s10 = sld [smem:[#allocation25_spill]] }
  0xa2   : > { %3885 = vmatprep.subr.bf16.mxu1 %v6179_v4  ;;  %3865 = vmatprep.subr.bf16.mxu0 %v6179_v4  ;;  %v4207_v5 = vld [vmem:[%s4836_s12] sm:$0xff]   ;;  %v4209_v8 = vld [vmem:[%s4836_s12 + $0x8] sm:$0xff]   ;;  %v4211_v11 = vld [vmem:[%s4836_s12 + $0x10] sm:$0xff]   ;;  %p3726_p12 = scmp.ne.s32.totalorder %s4663_s29, 9 }
  0xa3   : > { %3886 = vmatpush3.bf16.msra.mxu1 %v4206_v2  ;;  %v4865_v7 = vshrl.u32 %v609_v3, 7  ;;  %3901 = vmatprep.mubr.msk.bf16.mxu1 %vm4568_vm0, %v6179_v4  ;;  %v4212_v13 = vld [vmem:[%s4841_s30 + $0x18] sm:$0xff]   ;;  %v4214_v19 = vld [vmem:[%s4841_s30 + $0x20] sm:$0xff]   ;;  %v4216_v22 = vld [vmem:[%s4841_s30 + $0x28] sm:$0xff]   ;;  %s6237_s24 = sld [smem:[#allocation30_spill]] (!%p3726_p12)  ;;  %s6238_s6 = sld [smem:[#allocation31_spill]] (!%p3726_p12) }
  0xa4   : > { %3866 = vmatpush3.bf16.msra.mxu0 %v4207_v5  ;;  %3887 = vmatprep.subr.bf16.mxu1 %v6179_v4  ;;  %v4213_v15 = vld [vmem:[%s4836_s12 + $0x18] sm:$0xff]   ;;  %v4215_v20 = vld [vmem:[%s4836_s12 + $0x20] sm:$0xff]   ;;  %v4217_v24 = vld [vmem:[%s4836_s12 + $0x28] sm:$0xff]  }
  0xa5   : > { %3867 = vmatprep.subr.bf16.mxu0 %v6179_v4  ;;  %3881 = vmatprep.mubr.msk.bf16.mxu0 %vm4568_vm0, %v6179_v4  ;;  %v4876_v10 = vsub.s32 0, %v4865_v7  ;;  %v4900_v18 = vsub.s32 1, %v4865_v7  ;;  %v4913_v25 = vsub.s32 2, %v4865_v7  ;;  %v4218_v26 = vld [vmem:[%s4841_s30 + $0x30] sm:$0xff]   ;;  %v4220_v30 = vld [vmem:[%s4841_s30 + $0x38] sm:$0xff]   ;;  %v589_v31 = vld [vmem:[#allocation2] sm:$0xff] }
  0xa6   : > { %v4219_v27 = vld [vmem:[%s4836_s12 + $0x30] sm:$0xff]   ;;  %v590_v32 = vld [vmem:[#allocation2 + $0x8] sm:$0xff]  ;;  %v4221_v33 = vld [vmem:[%s4836_s12 + $0x38] sm:$0xff]   ;;  %v4930_v34 = vsub.s32 3, %v4865_v7  ;;  %v4944_v38 = vsub.s32 4, %v4865_v7  ;;  %v4951_v41 = vsub.s32 5, %v4865_v7 }
  0xa7   : > { %3888 = vmatpush3.bf16.msra.mxu1 %v4208_v6  ;;  %v4884_v12 = vld [vmem:[%s6218_s10] sm:$0xff]  ;;  %v4894_v16 = vld [vmem:[%s6218_s10 + $0x10] sm:$0xff]  ;;  %6219 = vst [vmem:[#allocation18_spill] sm:$0xff] %v4913_v25  ;;  %v4932_v35 = vpack.c.bf16 %v590_v32, %v589_v31  ;;  %v4958_v44 = vsub.s32 6, %v4865_v7  ;;  %v4965_v47 = vsub.s32 7, %v4865_v7  ;;  %v4974_v50 = vld [vmem:[%s6218_s10 + $0x18] sm:$0xff] }
  0xa8   : > { %3868 = vmatpush3.bf16.msra.mxu0 %v4209_v8  ;;  %3889 = vmatprep.subr.bf16.mxu1 %v6179_v4  ;;  %v926_v14 = vrot.slane %v4884_v12, %v4876_v10  ;;  %v1141_v17 = vrot.slane %v4894_v16, %v4876_v10  ;;  %v1152_v21 = vrot.slane %v4894_v16, %v4900_v18  ;;  %v4979_v51 = vld [vmem:[%s6218_s10 + $0x8] sm:$0xff]  ;;  %v1722_v58 = vld [vmem:[%s4856_s13] sm:$0xff]  ;;  %v1724_v63 = vld [vmem:[%s4856_s13 + $0x10] sm:$0xff] }
  0xa9   : > { %3869 = vmatprep.subr.bf16.mxu0 %v6179_v4  ;;  %v937_v23 = vrot.slane %v4884_v12, %v4900_v18  ;;  %v1163_v28 = vrot.slane %v4894_v16, %v4913_v25  ;;  %v948_v29 = vrot.slane %v4884_v12, %v4913_v25  ;;  %6220 = vst [vmem:[#allocation19_spill] sm:$0xff] %v4930_v34  ;;  %6221 = vst [vmem:[#allocation20_spill] sm:$0xff] %v4932_v35  ;;  %v1723_v59 = vld [vmem:[%s4856_s13 + $0x8] sm:$0xff]  ;;  %v1725_v0 = vld [vmem:[%s4856_s13 + $0x18] sm:$0xff] }
  0xaa   : > { %932 = vbcast.lane.b32.xlu1 %v926_v14, 264  ;;  %928 = vbcast.lane.b32.xlu0 %v926_v14, 256  ;;  %v1174_v36 = vrot.slane %v4894_v16, %v4930_v34  ;;  %v959_v37 = vrot.slane %v4884_v12, %v4930_v34  ;;  %v1185_v39 = vrot.slane %v4894_v16, %v4944_v38  ;;  %v1726_v2 = vld [vmem:[%s4856_s13 + $0x20] sm:$0xff]  ;;  %v1727_v3 = vld [vmem:[%s4856_s13 + $0x28] sm:$0xff]  ;;  %v1736_v31 = vld [vmem:[%s4856_s13 + $0x70] sm:$0xff] }
  0xab   : > { %3890 = vmatpush3.bf16.msra.mxu1 %v4210_v9  ;;  %v970_v40 = vrot.slane %v4884_v12, %v4944_v38  ;;  %v1196_v42 = vrot.slane %v4894_v16, %v4951_v41  ;;  %v981_v43 = vrot.slane %v4884_v12, %v4951_v41  ;;  %v1207_v45 = vrot.slane %v4894_v16, %v4958_v44  ;;  %v1728_v9 = vld [vmem:[%s4856_s13 + $0x30] sm:$0xff]  ;;  %v1737_v32 = vld [vmem:[%s4856_s13 + $0x78] sm:$0xff] }
  0xac   : > { %3870 = vmatpush3.bf16.msra.mxu0 %v4211_v11  ;;  %3891 = vmatprep.subr.bf16.mxu1 %v6179_v4  ;;  %v992_v46 = vrot.slane %v4884_v12, %v4958_v44  ;;  %v1218_v48 = vrot.slane %v4894_v16, %v4965_v47  ;;  %v1003_v49 = vrot.slane %v4884_v12, %v4965_v47  ;;  %v1729_v11 = vld [vmem:[%s4856_s13 + $0x38] sm:$0xff]  ;;  %v1731_v16 = vld [vmem:[%s4856_s13 + $0x48] sm:$0xff] }
  0xad   : > { %3871 = vmatprep.subr.bf16.mxu0 %v6179_v4  ;;  %v1229_v52 = vrot.slane %v4974_v50, %v4876_v10  ;;  %v1014_v53 = vrot.slane %v4979_v51, %v4876_v10  ;;  %v1240_v54 = vrot.slane %v4974_v50, %v4900_v18  ;;  %v1025_v55 = vrot.slane %v4979_v51, %v4900_v18 }
  0xae   : > { %1147 = vbcast.lane.b32.xlu1 %v1141_v17, 264  ;;  %1143 = vbcast.lane.b32.xlu0 %v1141_v17, 256  ;;  %v1251_v56 = vrot.slane %v4974_v50, %v4913_v25  ;;  %v1036_v57 = vrot.slane %v4979_v51, %v4913_v25  ;;  %v4082_v60 = vpack.c.bf16 %v1723_v59, %v1722_v58 }
  0xaf   : > { %3892 = vmatpush3.bf16.msra.mxu1 %v4212_v13  ;;  %v1262_v61 = vrot.slane %v4974_v50, %v4930_v34  ;;  %v1047_v62 = vrot.slane %v4979_v51, %v4930_v34  ;;  %v4086_v1 = vpack.c.bf16 %v1725_v0, %v1724_v63  ;;  %v4090_v5 = vpack.c.bf16 %v1727_v3, %v1726_v2  ;;  %v1963_v3 = vld [vmem:[#allocation6] sm:$0xff] }
  0xb0   : > { %3872 = vmatpush3.bf16.msra.mxu0 %v4213_v15  ;;  %3893 = vmatprep.subr.bf16.mxu1 %v6179_v4  ;;  %v1273_v6 = vrot.slane %v4974_v50, %v4944_v38  ;;  %v1058_v8 = vrot.slane %v4979_v51, %v4944_v38  ;;  %v4094_v12 = vpack.c.bf16 %v1729_v11, %v1728_v9  ;;  %v1730_v15 = vld [vmem:[%s4856_s13 + $0x40] sm:$0xff] }
  0xb1   : > { %3873 = vmatprep.subr.bf16.mxu0 %v6179_v4  ;;  %v1284_v13 = vrot.slane %v4974_v50, %v4951_v41  ;;  %v1069_v14 = vrot.slane %v4979_v51, %v4951_v41  ;;  %v4098_v17 = vpack.c.bf16 %v1731_v16, %v1730_v15  ;;  %v1979_v9 = vrot.slane %v1963_v3, %v4900_v18 }
  0xb2   : > { %1154 = vbcast.lane.b32.xlu1 %v1152_v21, 256  ;;  %939 = vbcast.lane.b32.xlu0 %v937_v23, 256  ;;  %v1990_v11 = vrot.slane %v1963_v3, %v4913_v25 }
  0xb3   : > { %3894 = vmatpush3.bf16.msra.mxu1 %v4214_v19  ;;  %v1295_v19 = vrot.slane %v4974_v50, %v4958_v44 }
  0xb4   : > { %3874 = vmatpush3.bf16.msra.mxu0 %v4215_v20  ;;  %3895 = vmatprep.subr.bf16.mxu1 %v6179_v4  ;;  %v1732_v20 = vld [vmem:[%s4856_s13 + $0x50] sm:$0xff] }
  0xb5   : > { %3875 = vmatprep.subr.bf16.mxu0 %v6179_v4 }
  0xb6   : > { %1158 = vbcast.lane.b32.xlu1 %v1152_v21, 264  ;;  %943 = vbcast.lane.b32.xlu0 %v937_v23, 264  ;;  %v1733_v21 = vld [vmem:[%s4856_s13 + $0x58] sm:$0xff] }
  0xb7   : > { %3896 = vmatpush3.bf16.msra.mxu1 %v4216_v22  ;;  %v1080_v22 = vrot.slane %v4979_v51, %v4958_v44  ;;  %v4102_v23 = vpack.c.bf16 %v1733_v21, %v1732_v20 }
  0xb8   : > { %3876 = vmatpush3.bf16.msra.mxu0 %v4217_v24  ;;  %3897 = vmatprep.subr.bf16.mxu1 %v6179_v4  ;;  %v1734_v24 = vld [vmem:[%s4856_s13 + $0x60] sm:$0xff] }
  0xb9   : > { %3877 = vmatprep.subr.bf16.mxu0 %v6179_v4 }
  0xba   : > { %1165 = vbcast.lane.b32.xlu1 %v1163_v28, 256  ;;  %950 = vbcast.lane.b32.xlu0 %v948_v29, 256 }
  0xbb   : > { %3898 = vmatpush3.bf16.msra.mxu1 %v4218_v26  ;;  %v1735_v26 = vld [vmem:[%s4856_s13 + $0x68] sm:$0xff] }
  0xbc   : > { %3878 = vmatpush3.bf16.msra.mxu0 %v4219_v27  ;;  %3899 = vmatprep.subr.bf16.mxu1 %v6179_v4  ;;  %v4106_v27 = vpack.c.bf16 %v1735_v26, %v1734_v24  ;;  %v2045_v26 = vrot.slane %v1963_v3, %v4965_v47 }
  0xbd   : > { %3879 = vmatprep.subr.bf16.mxu0 %v6179_v4 }
  0xbe   : > { %1169 = vbcast.lane.b32.xlu1 %v1163_v28, 264  ;;  %954 = vbcast.lane.b32.xlu0 %v948_v29, 264 }
  0xbf   : > { %3900 = vmatpush3.bf16.msra.mxu1 %v4220_v30  ;;  %v1306_v30 = vrot.slane %v4974_v50, %v4965_v47 }
  0xc0   : > { %3880 = vmatpush3.bf16.msra.mxu0 %v4221_v33  ;;  %4083 = vmatprep.subr.bf16.mxu1 %v4082_v60  ;;  %v1091_v33 = vrot.slane %v4979_v51, %v4965_v47 }
  0xc1   : > { %3905 = vmatprep.subr.bf16.mxu0 %v6179_v4 }
  0xc2   : > { %3902 = vmatmul.mubr.bf16.vlgmr.msra.gmra.mrb[0].mxu1 %v4932_v35  ;;  %1176 = vbcast.lane.b32.xlu1 %v1174_v36, 256 }
  0xc3   : > { %3882 = vmatmul.mubr.bf16.vlgmr.msra.gmra.mrb[0].mxu0 %v4932_v35  ;;  %961 = vbcast.lane.b32.xlu0 %v959_v37, 256 }
  0xc4   : > { %3921 = vmatprep.mubr.msk.bf16.mxu0 %vm4568_vm0, %v6179_v4  ;;  %4085 = vmatpush3.bf16.msra.mxu1 %v4082_v60 }
  0xc5   : > { %4087 = vmatprep.subr.bf16.mxu1 %v4086_v1 }
  0xc6   : > { %1180 = vbcast.lane.b32.xlu1 %v1174_v36, 264  ;;  %v4110_v36 = vpack.c.bf16 %v1737_v32, %v1736_v31  ;;  %v920_v31 = vld [vmem:[%s4851_s23] sm:$0x3] }
  0xc7   : > { %965 = vbcast.lane.b32.xlu0 %v959_v37, 264 }
  0xc8   : > { %4089 = vmatpush3.bf16.msra.mxu1 %v4086_v1 }
  0xc9   : > { %4091 = vmatprep.subr.bf16.mxu1 %v4090_v5 }
  0xca   : > { %1187 = vbcast.lane.b32.xlu1 %v1185_v39, 256 }
  0xcb   : > { %972 = vbcast.lane.b32.xlu0 %v970_v40, 256 }
  0xcc   : > { %4093 = vmatpush3.bf16.msra.mxu1 %v4090_v5  ;;  %v1968_v5 = vrot.slane %v1963_v3, %v4876_v10 }
  0xcd   : > { %4095 = vmatprep.subr.bf16.mxu1 %v4094_v12 }
  0xce   : > { %1191 = vbcast.lane.b32.xlu1 %v1185_v39, 264 }
  0xcf   : > { %976 = vbcast.lane.b32.xlu0 %v970_v40, 264 }
  0xd0   : > { %4097 = vmatpush3.bf16.msra.mxu1 %v4094_v12 }
  0xd1   : > { %4099 = vmatprep.subr.bf16.mxu1 %v4098_v17 }
  0xd2   : > { %1198 = vbcast.lane.b32.xlu1 %v1196_v42, 256 }
  0xd3   : > { %983 = vbcast.lane.b32.xlu0 %v981_v43, 256 }
  0xd4   : > { %4101 = vmatpush3.bf16.msra.mxu1 %v4098_v17  ;;  %v2012_v17 = vrot.slane %v1963_v3, %v4944_v38 }
  0xd5   : > { %4103 = vmatprep.subr.bf16.mxu1 %v4102_v23 }
  0xd6   : > { %1202 = vbcast.lane.b32.xlu1 %v1196_v42, 264 }
  0xd7   : > { %987 = vbcast.lane.b32.xlu0 %v981_v43, 264 }
  0xd8   : > { %4105 = vmatpush3.bf16.msra.mxu1 %v4102_v23 }
  0xd9   : > { %4107 = vmatprep.subr.bf16.mxu1 %v4106_v27 }
  0xda   : > { %1209 = vbcast.lane.b32.xlu1 %v1207_v45, 256 }
  0xdb   : > { %994 = vbcast.lane.b32.xlu0 %v992_v46, 256 }
  0xdc   : > { %4109 = vmatpush3.bf16.msra.mxu1 %v4106_v27  ;;  %v5113_v27 = vld [vmem:[#allocation6 + $0x8] sm:$0xff] }
  0xdd   : > { %4111 = vmatprep.subr.bf16.mxu1 %v4110_v36 }
  0xde   : > { %1213 = vbcast.lane.b32.xlu1 %v1207_v45, 264 }
  0xdf   : > { %998 = vbcast.lane.b32.xlu0 %v992_v46, 264 }
  0xe0   : > { %4113 = vmatpush3.bf16.msra.mxu1 %v4110_v36  ;;  %v5123_v36 = vrot.slane %v920_v31, %v4876_v10 }
  0xe2   : > { %1220 = vbcast.lane.b32.xlu1 %v1218_v48, 256 }
  0xe3   : > { %1005 = vbcast.lane.b32.xlu0 %v1003_v49, 256 }
  0xe6   : > { %1224 = vbcast.lane.b32.xlu1 %v1218_v48, 264 }
  0xe7   : > { %1009 = vbcast.lane.b32.xlu0 %v1003_v49, 264 }
  0xea   : > { %1231 = vbcast.lane.b32.xlu1 %v1229_v52, 256 }
  0xeb   : > { %1016 = vbcast.lane.b32.xlu0 %v1014_v53, 256 }
  0xee   : > { %1235 = vbcast.lane.b32.xlu1 %v1229_v52, 264 }
  0xef   : > { %1020 = vbcast.lane.b32.xlu0 %v1014_v53, 264 }
  0xf2   : > { %1242 = vbcast.lane.b32.xlu1 %v1240_v54, 256 }
  0xf3   : > { %1027 = vbcast.lane.b32.xlu0 %v1025_v55, 256 }
  0xf6   : > { %1246 = vbcast.lane.b32.xlu1 %v1240_v54, 264 }
  0xf7   : > { %1031 = vbcast.lane.b32.xlu0 %v1025_v55, 264 }
  0xfa   : > { %1253 = vbcast.lane.b32.xlu1 %v1251_v56, 256 }
  0xfb   : > { %1038 = vbcast.lane.b32.xlu0 %v1036_v57, 256 }
  0xfe   : > { %1257 = vbcast.lane.b32.xlu1 %v1251_v56, 264 }
  0xff   : > { %1042 = vbcast.lane.b32.xlu0 %v1036_v57, 264 }
 0x102   : > { %1264 = vbcast.lane.b32.xlu1 %v1262_v61, 256 }
 0x103   : > { %1049 = vbcast.lane.b32.xlu0 %v1047_v62, 256 }
 0x106   : > { %1268 = vbcast.lane.b32.xlu1 %v1262_v61, 264 }
 0x107   : > { %1053 = vbcast.lane.b32.xlu0 %v1047_v62, 264 }
 0x10a   : > { %1275 = vbcast.lane.b32.xlu1 %v1273_v6, 256 }
 0x10b   : > { %1060 = vbcast.lane.b32.xlu0 %v1058_v8, 256 }
 0x10e   : > { %1279 = vbcast.lane.b32.xlu1 %v1273_v6, 264 }
 0x10f   : > { %1064 = vbcast.lane.b32.xlu0 %v1058_v8, 264 }
 0x112   : > { %1286 = vbcast.lane.b32.xlu1 %v1284_v13, 256 }
 0x113   : > { %1071 = vbcast.lane.b32.xlu0 %v1069_v14, 256 }
 0x116   : > { %1290 = vbcast.lane.b32.xlu1 %v1284_v13, 264 }
 0x117   : > { %1075 = vbcast.lane.b32.xlu0 %v1069_v14, 264  ;;  %v2001_v14 = vrot.slane %v1963_v3, %v4930_v34 }
 0x11a   : > { %1297 = vbcast.lane.b32.xlu1 %v1295_v19, 256 }
 0x11b   : > { %1082 = vbcast.lane.b32.xlu0 %v1080_v22, 256 }
 0x11c   : > { %v5023_v28 = vpop.permute.xlu1 %932  ;;  %v5025_v29 = vpop.permute.xlu0 %928 }
 0x11e   : > { %1301 = vbcast.lane.b32.xlu1 %v1295_v19, 264  ;;  %v2023_v19 = vrot.slane %v1963_v3, %v4951_v41 }
 0x11f   : > { %1086 = vbcast.lane.b32.xlu0 %v1080_v22, 264  ;;  %v2034_v22 = vrot.slane %v1963_v3, %v4958_v44  ;;  %v2067_v3 = vrot.slane %v5113_v27, %v4900_v18 }
 0x120   : > { %v5033_v37 = vpop.permute.xlu1 %1147  ;;  %v5035_v39 = vpop.permute.xlu0 %1143 }
 0x122   : > { %1308 = vbcast.lane.b32.xlu1 %v1306_v30, 256 }
 0x123   : > { %1093 = vbcast.lane.b32.xlu0 %v1091_v33, 256 }
 0x124   : > { %v5037_v40 = vpop.permute.xlu1 %1154  ;;  %v5039_v42 = vpop.permute.xlu0 %939 }
 0x126   : > { %1312 = vbcast.lane.b32.xlu1 %v1306_v30, 264  ;;  %v2056_v30 = vrot.slane %v5113_v27, %v4876_v10 }
 0x127   : > { %1097 = vbcast.lane.b32.xlu0 %v1091_v33, 264 }
 0x128   : > { %v5041_v43 = vpop.permute.xlu1 %1158  ;;  %v5043_v45 = vpop.permute.xlu0 %943 }
 0x12a   : > { %1974 = vbcast.lane.b32.xlu1 %v1968_v5, 264 }
 0x12b   : > { %1970 = vbcast.lane.b32.xlu0 %v1968_v5, 256  ;;  %v592_v5 = vld [vmem:[%s4846_s25] sm:$0xf] }
 0x12c   : > { %v5045_v46 = vpop.permute.xlu1 %1165  ;;  %v5047_v48 = vpop.permute.xlu0 %950 }
 0x12e   : > { %1985 = vbcast.lane.b32.xlu1 %v1979_v9, 264 }
 0x12f   : > { %1981 = vbcast.lane.b32.xlu0 %v1979_v9, 256  ;;  %v4569_v9 = vmov 1966171168  }
 0x130   : > { %v5049_v49 = vpop.permute.xlu1 %1169  ;;  %v5051_v50 = vpop.permute.xlu0 %954 }
 0x132   : > { %1996 = vbcast.lane.b32.xlu1 %v1990_v11, 264 }
 0x133   : > { %1992 = vbcast.lane.b32.xlu0 %v1990_v11, 256  ;;  %v1386_v11 = vunpack.c.l.s4 %v4569_v9 }
 0x134   : > { %v5053_v51 = vpop.permute.xlu1 %1176 }
 0x135   : > { %v5055_v52 = vpop.permute.xlu0 %961 }
 0x136   : > { %2007 = vbcast.lane.b32.xlu1 %v2001_v14, 264 }
 0x137   : > { %2003 = vbcast.lane.b32.xlu0 %v2001_v14, 256  ;;  %v5129_v14 = vrot.slane %v920_v31, %v4900_v18  ;;  %v2078_v31 = vrot.slane %v5113_v27, %v4913_v25 }
 0x138   : > { %v5057_v53 = vpop.permute.xlu1 %1180 }
 0x139   : > { %v5059_v54 = vpop.permute.xlu0 %965  ;;  %v1319_v4 = vmul.f32 %v5129_v14, %v5033_v37  ;;  %v1322_v25 = vmul.f32 %v5129_v14, %v5045_v46  ;;  %v1107_v37 = vmul.f32 %v5123_v36, %v5047_v48  ;;  %v2089_v48 = vrot.slane %v5113_v27, %v4930_v34 }
 0x13a   : > { %2018 = vbcast.lane.b32.xlu1 %v2012_v17, 264  ;;  %v1110_v46 = vmul.f32 %v5123_v36, %v5059_v54  ;;  %v612_v54 = vrot.slane %v592_v5, %v4876_v10 }
 0x13b   : > { %2014 = vbcast.lane.b32.xlu0 %v2012_v17, 256 }
 0x13c   : > { %v5061_v55 = vpop.permute.xlu1 %1187 }
 0x13d   : > { %v5063_v56 = vpop.permute.xlu0 %972 }
 0x13e   : > { %2029 = vbcast.lane.b32.xlu1 %v2023_v19, 264 }
 0x13f   : > { %2025 = vbcast.lane.b32.xlu0 %v2023_v19, 256  ;;  %v5134_v19 = vrot.slane %v592_v5, %v4900_v18  ;;  %v1318_v18 = vmul.f32 %v5129_v14, %v5035_v39  ;;  %v1323_v39 = vmul.f32 %v5129_v14, %v5049_v49  ;;  %v2100_v5 = vrot.slane %v5113_v27, %v4944_v38 }
 0x140   : > { %v5065_v57 = vpop.permute.xlu1 %1191 }
 0x141   : > { %v5067_v58 = vpop.permute.xlu0 %976 }
 0x142   : > { %2040 = vbcast.lane.b32.xlu1 %v2034_v22, 264 }
 0x143   : > { %2036 = vbcast.lane.b32.xlu0 %v2034_v22, 256  ;;  %v1104_v22 = vmul.f32 %v5123_v36, %v5023_v28  ;;  %v1320_v28 = vmul.f32 %v5129_v14, %v5037_v40  ;;  %v1108_v40 = vmul.f32 %v5123_v36, %v5051_v50 }
 0x144   : > { %v5069_v59 = vpop.permute.xlu1 %1198 }
 0x145   : > { %v5071_v60 = vpop.permute.xlu0 %983  ;;  %v5192_v34 = vadd.f32 %v1323_v39, %v1108_v40  ;;  %v1112_v39 = vmul.f32 %v5123_v36, %v5067_v58  ;;  %v1328_v40 = vmul.f32 %v5129_v14, %v5069_v59 }
 0x146   : > { %2051 = vbcast.lane.b32.xlu1 %v2045_v26, 264  ;;  %v1113_v38 = vmul.f32 %v5123_v36, %v5071_v60  ;;  %v2111_v60 = vrot.slane %v5113_v27, %v4951_v41 }
 0x147   : > { %2047 = vbcast.lane.b32.xlu0 %v2045_v26, 256  ;;  %v1103_v26 = vmul.f32 %v5123_v36, %v5025_v29  ;;  %v1105_v29 = vmul.f32 %v5123_v36, %v5039_v42  ;;  %v1324_v42 = vmul.f32 %v5129_v14, %v5053_v51  ;;  %v5179_v51 = vadd.f32 %v1319_v4, %v1104_v22 }
 0x148   : > { %v5073_v61 = vpop.permute.xlu1 %1202 }
 0x149   : > { %v5075_v62 = vpop.permute.xlu0 %987  ;;  %v5181_v35 = vadd.f32 %v1318_v18, %v1103_v26 }
 0x14a   : > { %2062 = vbcast.lane.b32.xlu1 %v2056_v30, 264 }
 0x14b   : > { %2058 = vbcast.lane.b32.xlu0 %v2056_v30, 256  ;;  %v1387_v30 = vunpack.c.0.s8 %v1386_v11  ;;  %v1321_v11 = vmul.f32 %v5129_v14, %v5041_v43  ;;  %v1109_v43 = vmul.f32 %v5123_v36, %v5055_v52  ;;  %v5183_v52 = vadd.f32 %v1320_v28, %v1105_v29 }
 0x14c   : > { %v5077_v63 = vpop.permute.xlu1 %1209  ;;  %v1327_v29 = vmul.f32 %v5129_v14, %v5065_v57  ;;  %v1114_v57 = vmul.f32 %v5123_v36, %v5075_v62 }
 0x14d   : > { %v5079_v0 = vpop.permute.xlu0 %994  ;;  %v5177_v50 = vsub.s32 %v1387_v30, %v4865_v7  ;;  %v5195_v22 = vadd.f32 %v1324_v42, %v1109_v43  ;;  %v1330_v58 = vmul.f32 %v5129_v14, %v5077_v63 }
 0x14e   : > { %2073 = vbcast.lane.b32.xlu1 %v2067_v3, 264  ;;  %v1115_v59 = vmul.f32 %v5123_v36, %v5079_v0 }
 0x14f   : > { %2069 = vbcast.lane.b32.xlu0 %v2067_v3, 256  ;;  %v1106_v3 = vmul.f32 %v5123_v36, %v5043_v45  ;;  %v1325_v45 = vmul.f32 %v5129_v14, %v5057_v53 }
 0x150   : > { %v5081_v1 = vpop.permute.xlu1 %1213 }
 0x151   : > { %v5083_v2 = vpop.permute.xlu0 %998  ;;  %v5197_v26 = vadd.f32 %v1325_v45, %v1110_v46 }
 0x152   : > { %2084 = vbcast.lane.b32.xlu1 %v2078_v31, 264  ;;  %v1116_v62 = vmul.f32 %v5123_v36, %v5083_v2 }
 0x153   : > { %2080 = vbcast.lane.b32.xlu0 %v2078_v31, 256  ;;  %v5188_v31 = vadd.f32 %v1321_v11, %v1106_v3 }
 0x154   : > { %v5086_v6 = vpop.permute.xlu1 %1220 }
 0x155   : > { %v5088_v8 = vpop.permute.xlu0 %1005  ;;  %v1332_v63 = vmul.f32 %v5129_v14, %v5086_v6 }
 0x156   : > { %2095 = vbcast.lane.b32.xlu1 %v2089_v48, 264  ;;  %v1117_v0 = vmul.f32 %v5123_v36, %v5088_v8 }
 0x157   : > { %2091 = vbcast.lane.b32.xlu0 %v2089_v48, 256 }
 0x158   : > { %v5092_v12 = vpop.permute.xlu1 %1224 }
 0x159   : > { %v5094_v13 = vpop.permute.xlu0 %1009 }
 0x15a   : > { %2106 = vbcast.lane.b32.xlu1 %v2100_v5, 264  ;;  %v1118_v41 = vmul.f32 %v5123_v36, %v5094_v13  ;;  %v2122_v13 = vrot.slane %v5113_v27, %v4958_v44 }
 0x15b   : > { %2102 = vbcast.lane.b32.xlu0 %v2100_v5, 256  ;;  %v5250_v5 = vadd.f32 %v1328_v40, %v1113_v38  ;;  %v5269_v40 = vadd.f32 %v1332_v63, %v1117_v0 }
 0x15c   : > { %v5097_v15 = vpop.permute.xlu1 %1231 }
 0x15d   : > { %v5099_v16 = vpop.permute.xlu0 %1016  ;;  %v1334_v38 = vmul.f32 %v5129_v14, %v5097_v15 }
 0x15e   : > { %2117 = vbcast.lane.b32.xlu1 %v2111_v60, 264  ;;  %v1119_v44 = vmul.f32 %v5123_v36, %v5099_v16  ;;  %v2133_v16 = vrot.slane %v5113_v27, %v4965_v47 }
 0x15f   : > { %2113 = vbcast.lane.b32.xlu0 %v2111_v60, 256 }
 0x160   : > { %v5103_v20 = vpop.permute.xlu1 %1235  ;;  %v5315_v0 = vadd.f32 %v1334_v38, %v1119_v44 }
 0x161   : > { %v5105_v21 = vpop.permute.xlu0 %1020 }
 0x162   : > { %2128 = vbcast.lane.b32.xlu1 %v2122_v13, 264 }
 0x163   : > { %2124 = vbcast.lane.b32.xlu0 %v2122_v13, 256 }
 0x164   : > { %v5108_v23 = vpop.permute.xlu1 %1242 }
 0x165   : > { %v5110_v24 = vpop.permute.xlu0 %1027 }
 0x166   : > { %2139 = vbcast.lane.b32.xlu1 %v2133_v16, 264 }
 0x167   : > { %2135 = vbcast.lane.b32.xlu0 %v2133_v16, 256 }
 0x168   : > { %v5118_v32 = vpop.permute.xlu1 %1246 }
 0x169   : > { %v5120_v33 = vpop.permute.xlu0 %1031 }
 0x16a   : > { %v1122_v60 = vmul.f32 %v5123_v36, %v5120_v33 }
 0x16c   : > { %v5131_v17 = vpop.permute.xlu1 %1253 }
 0x16d   : > { %6222 = vst [vmem:[#allocation21_spill] sm:$0xff] %v5131_v17  ;;  %v5140_v9 = vpop.permute.xlu0 %1038  ;;  %v5190_v17 = vadd.f32 %v1322_v25, %v1107_v37  ;;  %v1326_v25 = vmul.f32 %v5129_v14, %v5061_v55  ;;  %v1329_v55 = vmul.f32 %v5129_v14, %v5073_v61  ;;  %v1331_v61 = vmul.f32 %v5129_v14, %v5081_v1 }
 0x16e   : > { %6223 = vst [vmem:[#allocation22_spill] sm:$0xff] %v5140_v9 }
 0x170   : > { %v5174_v49 = vpop.permute.xlu1 %1257 }
 0x171   : > { %v5185_v53 = vpop.permute.xlu0 %1042 }
 0x174   : > { %v5242_v1 = vpop.permute.xlu1 %1264 }
 0x195   : > { %v804_v9 = vpop.f32.mrb[0].mxu1 }
 0x196   : > { %v805_v7 = vadd.f32 %v804_v9, %v5134_v19  ;;  %v3903_v30 = vpop.f32.mrb[1].mxu1  ;;  %v695_v4 = vpop.f32.mrb[0].mxu0  ;;  %v1111_v9 = vmul.f32 %v5123_v36, %v5063_v56 }
 0x197   : > { %v5199_v18 = vpop.f32.mrb[2].mxu1  ;;  %v3883_v28 = vpop.f32.mrb[1].mxu0 }
 0x198   : > { %v1391_v11 = vrot.slane %v805_v7, %v5177_v50  ;;  %v3904_v3 = vpop.f32.mrb[3].mxu1  ;;  %v698_v37 = vpop.f32.mrb[2].mxu0  ;;  %v1384_v42 = vcombine.high %v805_v7, %v805_v7  ;;  %v1333_v7 = vmul.f32 %v5129_v14, %v5092_v12  ;;  %v5246_v2 = vadd.f32 %v1326_v25, %v1111_v9 }
 0x199   : > { %v3884_v56 = vpop.f32.mrb[3].mxu0  ;;  %v5244_v30 = vpop.permute.xlu0 %1049  ;;  %v5248_v28 = vadd.f32 %v1327_v29, %v1112_v39  ;;  %v5256_v12 = vadd.f32 %v695_v4, %v612_v54  ;;  %v5260_v3 = vadd.f32 %v1330_v58, %v1115_v59  ;;  %v5265_v29 = vadd.f32 %v698_v37, %v612_v54 }
 0x19a   : > { %v1399_v43 = vcombine.high %v1391_v11, %v1391_v11  ;;  %v1407_v45 = vrot.slane %v1391_v11, %v5177_v50  ;;  %v1398_v6 = vrot.slane %v1384_v42, %v5177_v50  ;;  %v5253_v11 = vadd.f32 %v1329_v55, %v1114_v57  ;;  %v5283_v57 = vpop.permute.xlu1 %1268 }
 0x19b   : > { %6224 = vst [vmem:[#allocation23_spill] sm:$0xff] %v5256_v12  ;;  %6225 = vst [vmem:[#allocation24_spill] sm:$0xff] %v5265_v29  ;;  %v5267_v39 = vadd.f32 %v1331_v61, %v1116_v62  ;;  %v5271_v4 = vadd.f32 %v1333_v7, %v1118_v41  ;;  %v1335_v55 = vmul.f32 %v5129_v14, %v5103_v20 }
 0x19c   : > { %v5232_v46 = vrot.slane %v1399_v43, %v5177_v50  ;;  %v1429_v48 = vcombine.high %v1407_v45, %v1407_v45  ;;  %v1485_v8 = vrot.slane %v1407_v45, %v4876_v10  ;;  %v1120_v54 = vmul.f32 %v5123_v36, %v5105_v21 }
 0x19d   : > { %v1400_v37 = vcombine.high %v1398_v6, %v1398_v6  ;;  %v1336_v56 = vmul.f32 %v5129_v14, %v5108_v23  ;;  %v5285_v42 = vpop.permute.xlu0 %1053  ;;  %v5288_v43 = vrot.slane %v1398_v6, %v5177_v50  ;;  %v1121_v58 = vmul.f32 %v5123_v36, %v5110_v24 }
 0x19e   : > { %v1489_v25 = vrot.slane %v5232_v46, %v4876_v10  ;;  %v1493_v9 = vrot.slane %v1429_v48, %v4876_v10  ;;  %v1562_v15 = vadd.f32 %v1485_v8, %v5256_v12  ;;  %v1563_v20 = vadd.f32 %v1485_v8, %v5265_v29 }
 0x19f   : > { %v1337_v59 = vmul.f32 %v5129_v14, %v5118_v32  ;;  %v5305_v27 = vrot.slane %v1400_v37, %v5177_v50  ;;  %v1431_v24 = vcombine.high %v5232_v46, %v5232_v46  ;;  %v1501_v32 = vrot.slane %v5288_v43, %v4876_v10 }
 0x1a0   : > { %v1564_v21 = vadd.f32 %v1489_v25, %v5256_v12  ;;  %v1565_v45 = vadd.f32 %v1489_v25, %v5265_v29  ;;  %v1566_v23 = vadd.f32 %v1493_v9, %v5256_v12  ;;  %v1594_v47 = vadd.f32 %v1562_v15, %v5181_v35 }
 0x1a1   : > { %v1595_v61 = vadd.f32 %v1563_v20, %v5179_v51  ;;  %v5317_v51 = vadd.f32 %v1335_v55, %v1120_v54  ;;  %v5323_v46 = vpop.permute.xlu0 %1060  ;;  %v1567_v25 = vadd.f32 %v1493_v9, %v5265_v29  ;;  %v1497_v38 = vrot.slane %v1431_v24, %v4876_v10 }
 0x1a2   : > { %v1596_v62 = vadd.f32 %v1564_v21, %v5183_v52  ;;  %v1597_v48 = vadd.f32 %v1565_v45, %v5188_v31  ;;  %vm1626_vm1 = vcmp.gt.f32.partialorder %v1594_v47, 0.0  ;;  %v1598_v33 = vadd.f32 %v1566_v23, %v5190_v17  ;;  %v5321_v31 = vpop.permute.xlu1 %1275 }
 0x1a3   : > { %v1658_v35 = vmul.f32 0.2, %v1594_v47  ;;  %vm1627_vm2 = vcmp.gt.f32.partialorder %v1595_v61, 0.0  ;;  %v1659_v63 = vmul.f32 0.2, %v1595_v61  ;;  %v5319_v52 = vadd.f32 %v1336_v56, %v1121_v58 }
 0x1a4   : > { %vm1628_vm3 = vcmp.gt.f32.partialorder %v1596_v62, 0.0  ;;  %v1660_v7 = vmul.f32 0.2, %v1596_v62  ;;  %v5327_v17 = vadd.f32 %v5199_v18, %v5134_v19  ;;  %v1661_v8 = vmul.f32 0.2, %v1597_v48 }
 0x1a5   : > { %v1690_v41 = vsel %vm1626_vm1, %v1594_v47, %v1658_v35  ;;  %v1691_v6 = vsel %vm1627_vm2, %v1595_v61, %v1659_v63  ;;  %vm1629_vm4 = vcmp.gt.f32.partialorder %v1597_v48, 0.0  ;;  %v5331_v44 = vadd.f32 %v1337_v59, %v1122_v60  ;;  %v5346_v45 = vpop.permute.xlu0 %1064  ;;  %v6226_v61 = vld [vmem:[#allocation21_spill] sm:$0xff] }
 0x1a6   : > { %3957 = vmatprep.mubr.f32.mxu1 %v1690_v41  ;;  %v1692_v13 = vsel %vm1628_vm3, %v1596_v62, %v1660_v7  ;;  %v1662_v55 = vmul.f32 0.2, %v1598_v33  ;;  %v1570_v54 = vadd.f32 %v1501_v32, %v5256_v12  ;;  %v1505_v19 = vrot.slane %v5305_v27, %v4876_v10  ;;  %v5344_v21 = vpop.permute.xlu1 %1279 }
 0x1a7   : > { %3958 = vmatmul.mubr.f32.vlgmr.msra.gmra.mrb[4].mxu1 %v1691_v6  ;;  %vm1630_vm5 = vcmp.gt.f32.partialorder %v1598_v33, 0.0  ;;  %v1599_v18 = vadd.f32 %v1567_v25, %v5192_v34  ;;  %v1568_v37 = vadd.f32 %v1497_v38, %v5256_v12  ;;  %v1569_v56 = vadd.f32 %v1497_v38, %v5265_v29 }
 0x1a8   : > { %3960 = vmatprep.mubr.f32.mxu1 %v1692_v13  ;;  %v1430_v9 = vcombine.high %v5288_v43, %v5288_v43  ;;  %v1440_v15 = vrot.slane %v5327_v17, %v5177_v50  ;;  %v1693_v16 = vsel %vm1629_vm4, %v1597_v48, %v1661_v8  ;;  %v1571_v20 = vadd.f32 %v1501_v32, %v5265_v29  ;;  %v6227_v48 = vld [vmem:[#allocation22_spill] sm:$0xff] }
 0x1a9   : > { %v1663_v23 = vmul.f32 0.2, %v1599_v18  ;;  %v1600_v34 = vadd.f32 %v1568_v37, %v5195_v22  ;;  %v1601_v58 = vadd.f32 %v1569_v56, %v5197_v26  ;;  %v1602_v59 = vadd.f32 %v1570_v54, %v5246_v2  ;;  %v5373_v38 = vpop.permute.xlu0 %1071 }
 0x1aa   : > { %v1432_v43 = vcombine.high %v5305_v27, %v5305_v27  ;;  %v1694_v60 = vsel %vm1630_vm5, %v1598_v33, %v1662_v55  ;;  %vm1631_vm6 = vcmp.gt.f32.partialorder %v1599_v18, 0.0  ;;  %v1572_v47 = vadd.f32 %v1505_v19, %v5256_v12 }
 0x1ab   : > { %3961 = vmatmul.mubr.f32.gmra.mrb[6].mxu1 %v1693_v16  ;;  %v1338_v62 = vmul.f32 %v5129_v14, %v6226_v61  ;;  %v1123_v24 = vmul.f32 %v5123_v36, %v6227_v48  ;;  %vm1632_vm7 = vcmp.gt.f32.partialorder %v1600_v34, 0.0  ;;  %v1664_v22 = vmul.f32 0.2, %v1600_v34 }
 0x1ac   : > { %3963 = vmatprep.mubr.f32.mxu1 %v1694_v60  ;;  %v1448_v26 = vcombine.high %v1440_v15, %v1440_v15  ;;  %v1456_v2 = vrot.slane %v1440_v15, %v5177_v50  ;;  %v1603_v27 = vadd.f32 %v1571_v20, %v5248_v28  ;;  %v1573_v32 = vadd.f32 %v1505_v19, %v5265_v29  ;;  %v5371_v28 = vpop.permute.xlu1 %1286 }
 0x1ad   : > { %v1695_v33 = vsel %vm1631_vm6, %v1599_v18, %v1663_v23  ;;  %v1665_v35 = vmul.f32 0.2, %v1601_v58  ;;  %v1666_v63 = vmul.f32 0.2, %v1602_v59  ;;  %v1509_v7 = vrot.slane %v1430_v9, %v4876_v10  ;;  %v5400_v60 = vpop.permute.xlu0 %1075 }
 0x1ae   : > { %v1696_v41 = vsel %vm1632_vm7, %v1600_v34, %v1664_v22  ;;  %vm1633_vm8 = vcmp.gt.f32.partialorder %v1601_v58, 0.0  ;;  %v1604_v6 = vadd.f32 %v1572_v47, %v5250_v5  ;;  %v1513_v8 = vrot.slane %v1432_v43, %v4876_v10 }
 0x1af   : > { %3964 = vmatmul.mubr.f32.gmra.mrb[8].mxu1 %v1695_v33  ;;  %v5365_v13 = vadd.f32 %v1338_v62, %v1123_v24  ;;  %v5369_v25 = vmul.f32 %v5129_v14, %v5174_v49  ;;  %vm1634_vm9 = vcmp.gt.f32.partialorder %v1602_v59, 0.0  ;;  %v1574_v55 = vadd.f32 %v1509_v7, %v5256_v12 }
 0x1b0   : > { %3966 = vmatprep.mubr.f32.mxu1 %v1696_v41  ;;  %v5378_v54 = vmul.f32 %v5123_v36, %v5185_v53  ;;  %v5381_v5 = vrot.slane %v1448_v26, %v5177_v50  ;;  %v1517_v19 = vrot.slane %v1456_v2, %v4876_v10  ;;  %vm1635_vm10 = vcmp.gt.f32.partialorder %v1603_v27, 0.0  ;;  %v5398_v43 = vpop.permute.xlu1 %1290 }
 0x1b1   : > { %v1697_v49 = vsel %vm1633_vm8, %v1601_v58, %v1665_v35  ;;  %v1667_v18 = vmul.f32 0.2, %v1603_v27  ;;  %v1605_v37 = vadd.f32 %v1573_v32, %v5253_v11  ;;  %v1575_v56 = vadd.f32 %v1509_v7, %v5265_v29 }
 0x1b2   : > { %v1698_v9 = vsel %vm1634_vm9, %v1602_v59, %v1666_v63  ;;  %v1668_v15 = vmul.f32 0.2, %v1604_v6  ;;  %v1606_v16 = vadd.f32 %v1574_v55, %v5260_v3  ;;  %v1576_v53 = vadd.f32 %v1513_v8, %v5256_v12 }
 0x1b3   : > { %3967 = vmatmul.mubr.f32.gmra.mrb[10].mxu1 %v1697_v49  ;;  %v1340_v20 = vmul.f32 %v5129_v14, %v5242_v1  ;;  %v1125_v23 = vmul.f32 %v5123_v36, %v5244_v30  ;;  %v1433_v34 = vcombine.high %v5327_v17, %v5327_v17  ;;  %vm1636_vm11 = vcmp.gt.f32.partialorder %v1604_v6, 0.0 }
 0x1b4   : > { %3969 = vmatprep.mubr.f32.mxu1 %v1698_v9  ;;  %v1341_v11 = vmul.f32 %v5129_v14, %v5283_v57  ;;  %v1478_v58 = vcombine.high %v1456_v2, %v1456_v2  ;;  %v1577_v59 = vadd.f32 %v1513_v8, %v5265_v29  ;;  %v1578_v3 = vadd.f32 %v1517_v19, %v5256_v12  ;;  %v1298_v7 = vpop.permute.xlu1 %1297 }
 0x1b5   : > { %v1521_v1 = vrot.slane %v5381_v5, %v4876_v10  ;;  %v1699_v30 = vsel %vm1635_vm10, %v1603_v27, %v1667_v18  ;;  %v1669_v17 = vmul.f32 0.2, %v1605_v37  ;;  %v1607_v47 = vadd.f32 %v1575_v56, %v5267_v39 }
 0x1b6   : > { %v1700_v61 = vsel %vm1636_vm11, %v1604_v6, %v1668_v15  ;;  %vm1637_vm12 = vcmp.gt.f32.partialorder %v1605_v37, 0.0  ;;  %v1670_v57 = vmul.f32 0.2, %v1606_v16  ;;  %v1608_v62 = vadd.f32 %v1576_v53, %v5269_v40 }
 0x1b7   : > { %3970 = vmatmul.mubr.f32.gmra.mrb[12].mxu1 %v1699_v30  ;;  %v1126_v48 = vmul.f32 %v5123_v36, %v5285_v42  ;;  %v1342_v24 = vmul.f32 %v5129_v14, %v5321_v31  ;;  %v1447_v22 = vrot.slane %v1433_v34, %v5177_v50  ;;  %vm1638_vm13 = vcmp.gt.f32.partialorder %v1606_v16, 0.0 }
 0x1b8   : > { %3972 = vmatprep.mubr.f32.mxu1 %v1700_v61  ;;  %v1127_v26 = vmul.f32 %v5123_v36, %v5323_v46  ;;  %v1480_v39 = vcombine.high %v5381_v5, %v5381_v5  ;;  %v1609_v2 = vadd.f32 %v1577_v59, %v5271_v4  ;;  %v1610_v40 = vadd.f32 %v1578_v3, %v5315_v0  ;;  %v1083_v0 = vpop.permute.xlu0 %1082 }
 0x1b9   : > { %v1525_v27 = vrot.slane %v1478_v58, %v4876_v10  ;;  %v1701_v42 = vsel %vm1637_vm12, %v1605_v37, %v1669_v17  ;;  %v1671_v32 = vmul.f32 0.2, %v1607_v47  ;;  %v1579_v31 = vadd.f32 %v1517_v19, %v5265_v29 }
 0x1ba   : > { %v1702_v33 = vsel %vm1638_vm13, %v1606_v16, %v1670_v57  ;;  %vm1639_vm14 = vcmp.gt.f32.partialorder %v1607_v47, 0.0  ;;  %v1672_v35 = vmul.f32 0.2, %v1608_v62  ;;  %v1580_v63 = vadd.f32 %v1521_v1, %v5256_v12 }
 0x1bb   : > { %3973 = vmatmul.mubr.f32.gmra.mrb[14].mxu1 %v1701_v42  ;;  %v1343_v46 = vmul.f32 %v5129_v14, %v5344_v21  ;;  %v1128_v4 = vmul.f32 %v5123_v36, %v5346_v45  ;;  %v1449_v41 = vcombine.high %v1447_v22, %v1447_v22  ;;  %vm1640_vm15 = vcmp.gt.f32.partialorder %v1608_v62, 0.0 }
 0x1bc   : > { %3975 = vmatprep.mubr.f32.mxu1 %v1702_v33  ;;  %v1463_v6 = vrot.slane %v1447_v22, %v5177_v50  ;;  %vm1641_vm0 = vcmp.gt.f32.partialorder %v1609_v2, 0.0  ;;  %vm1642_vm1 = vcmp.gt.f32.partialorder %v1610_v40, 0.0  ;;  %v1674_v8 = vmul.f32 0.2, %v1610_v40  ;;  %v1087_v59 = vpop.permute.xlu0 %1086 }
 0x1bd   : > { %v1703_v55 = vsel %vm1639_vm14, %v1607_v47, %v1671_v32  ;;  %v1673_v5 = vmul.f32 0.2, %v1609_v2  ;;  %v1611_v19 = vadd.f32 %v1579_v31, %v5317_v51  ;;  %v1581_v49 = vadd.f32 %v1521_v1, %v5265_v29 }
 0x1be   : > { %v1704_v21 = vsel %vm1640_vm15, %v1608_v62, %v1672_v35  ;;  %v1612_v45 = vadd.f32 %v1580_v63, %v5319_v52  ;;  %v1582_v18 = vadd.f32 %v1525_v27, %v5256_v12  ;;  %v1529_v37 = vrot.slane %v1480_v39, %v4876_v10  ;;  %v1302_v52 = vpop.permute.xlu1 %1301 }
 0x1bf   : > { %3976 = vmatmul.mubr.f32.gmra.mrb[16].mxu1 %v1703_v55  ;;  %v1371_v56 = vadd.f32 %v5369_v25, %v5378_v54  ;;  %v1372_v9 = vadd.f32 %v1340_v20, %v1125_v23  ;;  %v1373_v15 = vadd.f32 %v1341_v11, %v1126_v48  ;;  %v1374_v16 = vadd.f32 %v1342_v24, %v1127_v26 }
 0x1c0   : > { %3978 = vmatprep.mubr.f32.mxu1 %v1704_v21  ;;  %v5433_v53 = vadd.f32 %v1343_v46, %v1128_v4  ;;  %v1477_v51 = vrot.slane %v1449_v41, %v5177_v50  ;;  %v1533_v34 = vrot.slane %v1463_v6, %v4876_v10  ;;  %v1583_v58 = vadd.f32 %v1525_v27, %v5265_v29 }
 0x1c1   : > { %v1705_v3 = vsel %vm1641_vm0, %v1609_v2, %v1673_v5  ;;  %v1706_v1 = vsel %vm1642_vm1, %v1610_v40, %v1674_v8  ;;  %v1675_v30 = vmul.f32 0.2, %v1611_v19  ;;  %v1613_v25 = vadd.f32 %v1581_v49, %v5331_v44  ;;  %v1094_v2 = vpop.permute.xlu0 %1093 }
 0x1c2   : > { %vm1643_vm2 = vcmp.gt.f32.partialorder %v1611_v19, 0.0  ;;  %v1676_v54 = vmul.f32 0.2, %v1612_v45  ;;  %v1614_v20 = vadd.f32 %v1582_v18, %v5365_v13  ;;  %v1584_v50 = vadd.f32 %v1529_v37, %v5256_v12  ;;  %v1309_v39 = vpop.permute.xlu1 %1308 }
 0x1c3   : > { %3979 = vmatmul.mubr.f32.gmra.mrb[18].mxu1 %v1705_v3  ;;  %v1344_v23 = vmul.f32 %v5129_v14, %v5371_v28  ;;  %v1129_v11 = vmul.f32 %v5123_v36, %v5373_v38  ;;  %v1345_v17 = vmul.f32 %v5129_v14, %v5398_v43  ;;  %vm1644_vm3 = vcmp.gt.f32.partialorder %v1612_v45, 0.0 }
 0x1c4   : > { %3981 = vmatprep.mubr.f32.mxu1 %v1706_v1  ;;  %v1130_v44 = vmul.f32 %v5123_v36, %v5400_v60  ;;  %v1479_v47 = vcombine.high %v1463_v6, %v1463_v6  ;;  %v1615_v61 = vadd.f32 %v1583_v58, %v1371_v56  ;;  %v1586_v13 = vadd.f32 %v1533_v34, %v5256_v12 }
 0x1c5   : > { %v1707_v57 = vsel %vm1643_vm2, %v1611_v19, %v1675_v30  ;;  %vm1645_vm4 = vcmp.gt.f32.partialorder %v1613_v25, 0.0  ;;  %v1677_v62 = vmul.f32 0.2, %v1613_v25  ;;  %v1585_v28 = vadd.f32 %v1529_v37, %v5265_v29  ;;  %v1098_v21 = vpop.permute.xlu0 %1097 }
 0x1c6   : > { %v1708_v48 = vsel %vm1644_vm3, %v1612_v45, %v1676_v54  ;;  %v1678_v38 = vmul.f32 0.2, %v1614_v20  ;;  %v1616_v24 = vadd.f32 %v1584_v50, %v1372_v9  ;;  %v1537_v43 = vrot.slane %v1477_v51, %v4876_v10  ;;  %v1313_v49 = vpop.permute.xlu1 %1312 }
 0x1c7   : > { %3982 = vmatmul.mubr.f32.gmra.mrb[20].mxu1 %v1707_v57  ;;  %v1376_v22 = vadd.f32 %v1344_v23, %v1129_v11  ;;  %v1346_v26 = vmul.f32 %v5129_v14, %v1298_v7  ;;  %v1131_v60 = vmul.f32 %v5123_v36, %v1083_v0  ;;  %vm1646_vm5 = vcmp.gt.f32.partialorder %v1614_v20, 0.0 }
 0x1c8   : > { %3984 = vmatprep.mubr.f32.mxu1 %v1708_v48  ;;  %v1377_v40 = vadd.f32 %v1345_v17, %v1130_v44  ;;  %v1541_v27 = vrot.slane %v1479_v47, %v4876_v10  ;;  %v1481_v42 = vcombine.high %v1477_v51, %v1477_v51  ;;  %v1679_v32 = vmul.f32 0.2, %v1615_v61 }
 0x1c9   : > { %v1709_v31 = vsel %vm1645_vm4, %v1613_v25, %v1677_v62  ;;  %vm1647_vm6 = vcmp.gt.f32.partialorder %v1615_v61, 0.0  ;;  %v1617_v33 = vadd.f32 %v1585_v28, %v1373_v15  ;;  %v1587_v35 = vadd.f32 %v1533_v34, %v5265_v29 }
 0x1ca   : > { %v1710_v63 = vsel %vm1646_vm5, %v1614_v20, %v1678_v38  ;;  %v1680_v46 = vmul.f32 0.2, %v1616_v24  ;;  %v1618_v4 = vadd.f32 %v1586_v13, %v1374_v16  ;;  %v1588_v7 = vadd.f32 %v1537_v43, %v5256_v12 }
 0x1cb   : > { %3985 = vmatmul.mubr.f32.gmra.mrb[22].mxu1 %v1709_v31  ;;  %v1378_v0 = vadd.f32 %v1346_v26, %v1131_v60  ;;  %v1347_v41 = vmul.f32 %v5129_v14, %v1302_v52  ;;  %v1132_v6 = vmul.f32 %v5123_v36, %v1087_v59  ;;  %vm1648_vm7 = vcmp.gt.f32.partialorder %v1616_v24, 0.0  ;;  %v4223_v26 = vld [vmem:[%s4821_s8 + $0x8] sm:$0xff]   ;;  %v4224_v60 = vld [vmem:[%s4821_s8 + $0x10] sm:$0xff]   ;;  %v2606_v31 = vld [vmem:[#allocation9] sm:$0xff] }
 0x1cc   : > { %3987 = vmatprep.mubr.f32.mxu1 %v1710_v63  ;;  %v1348_v8 = vmul.f32 %v5129_v14, %v1309_v39  ;;  %v1133_v55 = vmul.f32 %v5123_v36, %v1094_v2  ;;  %v1545_v5 = vrot.slane %v1481_v42, %v4876_v10  ;;  %v1711_v19 = vsel %vm1647_vm6, %v1615_v61, %v1679_v32  ;;  %v4225_v39 = vld [vmem:[%s4821_s8 + $0x18] sm:$0xff]   ;;  %v4226_v2 = vld [vmem:[%s4821_s8 + $0x20] sm:$0xff]  }
 0x1cd   : > { %v1681_v45 = vmul.f32 0.2, %v1617_v33  ;;  %v1619_v18 = vadd.f32 %v1587_v35, %v5433_v53  ;;  %v1589_v37 = vadd.f32 %v1537_v43, %v5265_v29  ;;  %v1590_v56 = vadd.f32 %v1541_v27, %v5256_v12  ;;  %v4222_v43 = vld [vmem:[%s4821_s8] sm:$0xff]   ;;  %v4229_v42 = vld [vmem:[%s4821_s8 + $0x38] sm:$0xff]   ;;  %4117 = vmatprep.subr.mxu1 %v2606_v31  ;;  %v1971_v35 = vpop.permute.xlu0 %1970 }
 0x1ce   : > { %v1712_v9 = vsel %vm1648_vm7, %v1616_v24, %v1680_v46  ;;  %vm1649_vm8 = vcmp.gt.f32.partialorder %v1617_v33, 0.0  ;;  %v1682_v15 = vmul.f32 0.2, %v1618_v4  ;;  %v1620_v16 = vadd.f32 %v1588_v7, %v1376_v22  ;;  %3906 = vmatpush3.bf16.msra.mxu0 %v4222_v43  ;;  %v6229_v32 = vld [vmem:[#allocation20_spill] sm:$0xff]  ;;  %4118 = vmatpush3.msra.mxu1 %v2606_v31 }
 0x1cf   : > { %3988 = vmatmul.mubr.f32.gmra.mrb[24].mxu1 %v1711_v19  ;;  %v1379_v51 = vadd.f32 %v1347_v41, %v1132_v6  ;;  %vm1650_vm9 = vcmp.gt.f32.partialorder %v1618_v4, 0.0  ;;  %v1591_v10 = vadd.f32 %v1541_v27, %v5265_v29  ;;  %v1380_v34 = vadd.f32 %v1348_v8, %v1133_v55  ;;  %v4228_v27 = vld [vmem:[%s4821_s8 + $0x30] sm:$0xff]  }
 0x1d0   : > { %3990 = vmatprep.mubr.f32.mxu1 %v1712_v9  ;;  %v1349_v58 = vmul.f32 %v5129_v14, %v1313_v49  ;;  %v1134_v52 = vmul.f32 %v5123_v36, %v1098_v21  ;;  %v1592_v53 = vadd.f32 %v1545_v5, %v5256_v12  ;;  %v1713_v59 = vsel %vm1649_vm8, %v1617_v33, %v1681_v45  ;;  %v1975_v33 = vpop.permute.xlu1 %1974 }
 0x1d1   : > { %v1683_v3 = vmul.f32 0.2, %v1619_v18  ;;  %v1621_v1 = vadd.f32 %v1589_v37, %v1377_v40  ;;  %v1714_v30 = vsel %vm1650_vm9, %v1618_v4, %v1682_v15  ;;  %vm1651_vm10 = vcmp.gt.f32.partialorder %v1619_v18, 0.0  ;;  %v4227_v40 = vld [vmem:[%s4821_s8 + $0x28] sm:$0xff]   ;;  %v1982_v46 = vpop.permute.xlu0 %1981 }
 0x1d2   : > { %v1684_v25 = vmul.f32 0.2, %v1620_v16  ;;  %v1622_v54 = vadd.f32 %v1590_v56, %v1378_v0  ;;  %vm1652_vm11 = vcmp.gt.f32.partialorder %v1620_v16, 0.0  ;;  %v1381_v20 = vadd.f32 %v1349_v58, %v1134_v52 }
 0x1d3   : > { %3991 = vmatmul.mubr.f32.gmra.mrb[26].mxu1 %v1713_v59  ;;  %v1623_v50 = vadd.f32 %v1591_v10, %v1379_v51  ;;  %v1593_v23 = vadd.f32 %v1545_v5, %v5265_v29  ;;  %v1715_v11 = vsel %vm1651_vm10, %v1619_v18, %v1683_v3  ;;  %v1685_v14 = vmul.f32 0.2, %v1621_v1 }
 0x1d4   : > { %3993 = vmatprep.mubr.f32.mxu1 %v1714_v30  ;;  %v1624_v17 = vadd.f32 %v1592_v53, %v1380_v34  ;;  %v1716_v36 = vsel %vm1652_vm11, %v1620_v16, %v1684_v25  ;;  %vm1653_vm12 = vcmp.gt.f32.partialorder %v1621_v1, 0.0  ;;  %v1686_v44 = vmul.f32 0.2, %v1622_v54  ;;  %v1986_v63 = vpop.permute.xlu1 %1985 }
 0x1d5   : > { %vm1654_vm13 = vcmp.gt.f32.partialorder %v1622_v54, 0.0  ;;  %v1625_v47 = vadd.f32 %v1593_v23, %v1381_v20  ;;  %v1717_v61 = vsel %vm1653_vm12, %v1621_v1, %v1685_v14  ;;  %v1687_v13 = vmul.f32 0.2, %v1623_v50  ;;  %v1993_v7 = vpop.permute.xlu0 %1992 }
 0x1d6   : > { %v1718_v57 = vsel %vm1654_vm13, %v1622_v54, %v1686_v44  ;;  %vm1655_vm14 = vcmp.gt.f32.partialorder %v1623_v50, 0.0  ;;  %v1688_v62 = vmul.f32 0.2, %v1624_v17  ;;  %vm1656_vm15 = vcmp.gt.f32.partialorder %v1624_v17, 0.0 }
 0x1d7   : > { %3994 = vmatmul.mubr.f32.gmra.mrb[28].mxu1 %v1715_v11  ;;  %v1719_v28 = vsel %vm1655_vm14, %v1623_v50, %v1687_v13  ;;  %v1689_v48 = vmul.f32 0.2, %v1625_v47  ;;  %vm1657_vm0 = vcmp.gt.f32.partialorder %v1625_v47, 0.0  ;;  %v6228_v22 = vmov 0.0  }
 0x1d8   : > { %3996 = vmatprep.mubr.f32.mxu1 %v1716_v36  ;;  %v1720_v38 = vsel %vm1656_vm15, %v1624_v17, %v1688_v62  ;;  %3907 = vmatprep.subr.bf16.mxu0 %v6228_v22  ;;  %v1997_v4 = vpop.permute.xlu1 %1996  ;;  %vm2173_vm1 = vcmask 64512   ;;  %vm3253_vm2 = vcmask 1041409   ;;  %vm3256_vm6 = vcmask 1042434  }
 0x1d9   : > { %v1721_v24 = vsel %vm1657_vm0, %v1625_v47, %v1689_v48  ;;  %3908 = vmatpush3.bf16.msra.mxu0 %v4223_v26  ;;  %v2004_v21 = vpop.permute.xlu0 %2003  ;;  %vm3259_vm7 = vcmask 1043459   ;;  %vm3262_vm9 = vcmask 1044484   ;;  %vm3265_vm11 = vcmask 1045509  }
 0x1da   : > { %3909 = vmatprep.subr.bf16.mxu0 %v6228_v22  ;;  %vm3268_vm13 = vcmask 1046534   ;;  %vm3271_vm15 = vcmask 1047559  }
 0x1db   : > { %3997 = vmatmul.mubr.f32.gmra.mrb[30].mxu1 %v1717_v61 }
 0x1dc   : > { %3999 = vmatprep.mubr.f32.mxu1 %v1718_v57  ;;  %v2008_v55 = vpop.permute.xlu1 %2007 }
 0x1dd   : > { %3910 = vmatpush3.bf16.msra.mxu0 %v4224_v60  ;;  %v2015_v3 = vpop.permute.xlu0 %2014 }
 0x1de   : > { %3911 = vmatprep.subr.bf16.mxu0 %v6228_v22 }
 0x1df   : > { %4000 = vmatmul.mubr.f32.gmra.mrb[32].mxu1 %v1719_v28 }
 0x1e0   : > { %4002 = vmatprep.mubr.f32.mxu1 %v1720_v38  ;;  %v2019_v10 = vpop.permute.xlu1 %2018 }
 0x1e1   : > { %3912 = vmatpush3.bf16.msra.mxu0 %v4225_v39  ;;  %v2026_v48 = vpop.permute.xlu0 %2025 }
 0x1e2   : > { %3913 = vmatprep.subr.bf16.mxu0 %v6228_v22 }
 0x1e3   : > { %4003 = vmatmul.mubr.f32.gmra.mrb[34].mxu1 %v1721_v24 }
 0x1e4   : > { %v2030_v44 = vpop.permute.xlu1 %2029 }
 0x1e5   : > { %3914 = vmatpush3.bf16.msra.mxu0 %v4226_v2 }
 0x1e6   : > { %3915 = vmatprep.subr.bf16.mxu0 %v6228_v22 }
 0x1e9   : > { %3916 = vmatpush3.bf16.msra.mxu0 %v4227_v40 }
 0x1ea   : > { %3917 = vmatprep.subr.bf16.mxu0 %v6228_v22 }
 0x1ed   : > { %3918 = vmatpush3.bf16.msra.mxu0 %v4228_v27 }
 0x1ee   : > { %3919 = vmatprep.subr.bf16.mxu0 %v6228_v22 }
 0x1f1   : > { %3920 = vmatpush3.bf16.msra.mxu0 %v4229_v42 }
 0x1f2   : > { %4005 = vmatprep.subr.mxu0 %v2606_v31 }
 0x1f4   : > { %3922 = vmatmul.mubr.bf16.vlgmr.msra.gmra.mrb[4].mxu0 %v6229_v32 }
 0x1f5   : > { %4006 = vmatpush3.msra.mxu0 %v2606_v31 }
 0x27a   : > { %v3959_v0 = vpop.f32.mrb[4].mxu1 }
 0x27b   : > { %v2142_v41 = vadd.f32 %v3959_v0, %v1975_v33  ;;  %v1804_v6 = vpop.f32.mrb[5].mxu1 }
 0x27c   : > { %v2141_v8 = vadd.f32 %v1971_v35, %v1804_v6 }
 0x27d   : > { %v2175_v5 = vsel %vm2173_vm1, %v2142_v41, -inf }
 0x27e   : > { %v2174_v19 = vsel %vm2173_vm1, %v2141_v8, -inf  ;;  %v3962_v49 = vpop.f32.mrb[6].mxu1 }
 0x27f   : > { %v2176_v45 = vmax.f32 %v2174_v19, %v2175_v5  ;;  %v5492_v18 = vadd.f32 %v3962_v49, %v1986_v63  ;;  %v1814_v37 = vpop.f32.mrb[7].mxu1  ;;  %v2041_v63 = vpop.permute.xlu1 %2040 }
 0x280   : > { %v5494_v56 = vadd.f32 %v1982_v46, %v1814_v37  ;;  %v2037_v19 = vpop.permute.xlu0 %2036 }
 0x281   : > { %v2177_v9 = vrot.slane %v2176_v45, 4  ;;  %v2184_v15 = vsel %vm2173_vm1, %v5492_v18, -inf }
 0x282   : > { %v2183_v16 = vsel %vm2173_vm1, %v5494_v56, -inf  ;;  %v3965_v51 = vpop.f32.mrb[8].mxu1 }
 0x283   : > { %v2178_v34 = vmax.f32 %v2176_v45, %v2177_v9  ;;  %v2185_v58 = vmax.f32 %v2183_v16, %v2184_v15  ;;  %v5500_v52 = vadd.f32 %v3965_v51, %v1997_v4  ;;  %v1824_v53 = vpop.f32.mrb[9].mxu1 }
 0x284   : > { %v5502_v59 = vadd.f32 %v1993_v7, %v1824_v53 }
 0x285   : > { %v2179_v1 = vrot.slane %v2178_v34, 2  ;;  %v2186_v30 = vrot.slane %v2185_v58, 4  ;;  %v2193_v25 = vsel %vm2173_vm1, %v5500_v52, -inf }
 0x286   : > { %v2192_v54 = vsel %vm2173_vm1, %v5502_v59, -inf  ;;  %v3968_v20 = vpop.f32.mrb[10].mxu1 }
 0x287   : > { %v2180_v50 = vmax.f32 %v2178_v34, %v2179_v1  ;;  %v2187_v23 = vmax.f32 %v2185_v58, %v2186_v30  ;;  %v2194_v11 = vmax.f32 %v2192_v54, %v2193_v25  ;;  %v5508_v14 = vadd.f32 %v3968_v20, %v2008_v55  ;;  %v1834_v17 = vpop.f32.mrb[11].mxu1 }
 0x288   : > { %v5510_v36 = vadd.f32 %v2004_v21, %v1834_v17 }
 0x289   : > { %v2181_v47 = vrot.slane %v2180_v50, 1  ;;  %v2188_v61 = vrot.slane %v2187_v23, 2  ;;  %v2195_v13 = vrot.slane %v2194_v11, 4  ;;  %v2202_v57 = vsel %vm2173_vm1, %v5508_v14, -inf }
 0x28a   : > { %v2201_v62 = vsel %vm2173_vm1, %v5510_v36, -inf  ;;  %v3971_v28 = vpop.f32.mrb[12].mxu1 }
 0x28b   : > { %v2182_v38 = vmax.f32 %v2180_v50, %v2181_v47  ;;  %v2189_v24 = vmax.f32 %v2187_v23, %v2188_v61  ;;  %v2196_v43 = vmax.f32 %v2194_v11, %v2195_v13  ;;  %v2203_v22 = vmax.f32 %v2201_v62, %v2202_v57  ;;  %v1844_v26 = vpop.f32.mrb[13].mxu1 }
 0x28c   : > { %v5516_v60 = vadd.f32 %v3971_v28, %v2019_v10  ;;  %v5518_v39 = vadd.f32 %v2015_v3, %v1844_v26 }
 0x28d   : > { %v2318_v2 = vsub.f32 %v2141_v8, %v2182_v38  ;;  %v2319_v40 = vsub.f32 %v2142_v41, %v2182_v38  ;;  %v2190_v27 = vrot.slane %v2189_v24, 1  ;;  %v2197_v42 = vrot.slane %v2196_v43, 2 }
 0x28e   : > { %v2204_v32 = vrot.slane %v2203_v22, 4  ;;  %v2211_v31 = vsel %vm2173_vm1, %v5516_v60, -inf  ;;  %v2210_v33 = vsel %vm2173_vm1, %v5518_v39, -inf  ;;  %v3974_v35 = vpop.f32.mrb[14].mxu1 }
 0x28f   : > { %v2350_v46 = vmul.f32 1.442695, %v2318_v2  ;;  %v2352_v4 = vmul.f32 1.442695, %v2319_v40  ;;  %v2191_v7 = vmax.f32 %v2189_v24, %v2190_v27  ;;  %v2198_v0 = vmax.f32 %v2196_v43, %v2197_v42  ;;  %v1854_v6 = vpop.f32.mrb[15].mxu1 }
 0x290   : > { %v2205_v55 = vmax.f32 %v2203_v22, %v2204_v32  ;;  %v2212_v5 = vmax.f32 %v2210_v33, %v2211_v31  ;;  %v5524_v8 = vadd.f32 %v3974_v35, %v2030_v44  ;;  %v5526_v41 = vadd.f32 %v2026_v48, %v1854_v6  ;;  %v2048_v44 = vpop.permute.xlu0 %2047 }
 0x291   : > { %4230 = vpow2.f32 %v2350_v46  ;;  %v2320_v49 = vsub.f32 %v5494_v56, %v2191_v7  ;;  %v2321_v21 = vsub.f32 %v5492_v18, %v2191_v7  ;;  %v2199_v45 = vrot.slane %v2198_v0, 1  ;;  %v2052_v18 = vpop.permute.xlu1 %2051 }
 0x292   : > { %4232 = vpow2.f32 %v2352_v4  ;;  %v2206_v37 = vrot.slane %v2205_v55, 2  ;;  %v2213_v9 = vrot.slane %v2212_v5, 4  ;;  %v2220_v15 = vsel %vm2173_vm1, %v5524_v8, -inf  ;;  %v3977_v16 = vpop.f32.mrb[16].mxu1 }
 0x293   : > { %v2354_v51 = vmul.f32 1.442695, %v2320_v49  ;;  %v2356_v10 = vmul.f32 1.442695, %v2321_v21  ;;  %v2200_v34 = vmax.f32 %v2198_v0, %v2199_v45  ;;  %v2219_v58 = vsel %vm2173_vm1, %v5526_v41, -inf  ;;  %v1864_v53 = vpop.f32.mrb[17].mxu1 }
 0x294   : > { %v2207_v3 = vmax.f32 %v2205_v55, %v2206_v37  ;;  %v2214_v1 = vmax.f32 %v2212_v5, %v2213_v9  ;;  %v2221_v56 = vmax.f32 %v2219_v58, %v2220_v15  ;;  %v5534_v30 = vadd.f32 %v3977_v16, %v2041_v63  ;;  %v2059_v21 = vpop.permute.xlu0 %2058 }
 0x295   : > { %4234 = vpow2.f32 %v2354_v51  ;;  %v2322_v25 = vsub.f32 %v5502_v59, %v2200_v34  ;;  %v2323_v54 = vsub.f32 %v5500_v52, %v2200_v34  ;;  %v5538_v20 = vadd.f32 %v2037_v19, %v1864_v53  ;;  %v2063_v2 = vpop.permute.xlu1 %2062 }
 0x296   : > { %4236 = vpow2.f32 %v2356_v10  ;;  %v2208_v50 = vrot.slane %v2207_v3, 1  ;;  %v2215_v23 = vrot.slane %v2214_v1, 2  ;;  %v2222_v11 = vrot.slane %v2221_v56, 4  ;;  %v3980_v17 = vpop.f32.mrb[18].mxu1 }
 0x297   : > { %v2358_v47 = vmul.f32 1.442695, %v2322_v25  ;;  %v2360_v61 = vmul.f32 1.442695, %v2323_v54  ;;  %v2229_v13 = vsel %vm2173_vm1, %v5534_v30, -inf  ;;  %v2228_v57 = vsel %vm2173_vm1, %v5538_v20, -inf }
 0x298   : > { %v2209_v62 = vmax.f32 %v2207_v3, %v2208_v50  ;;  %v2216_v59 = vmax.f32 %v2214_v1, %v2215_v23  ;;  %v2223_v28 = vmax.f32 %v2221_v56, %v2222_v11  ;;  %v2230_v52 = vmax.f32 %v2228_v57, %v2229_v13  ;;  %v1874_v48 = vpop.f32.mrb[19].mxu1 }
 0x299   : > { %4238 = vpow2.f32 %v2358_v47  ;;  %v5544_v38 = vadd.f32 %v3980_v17, %v2052_v18  ;;  %v5546_v24 = vadd.f32 %v2048_v44, %v1874_v48 }
 0x29a   : > { %4240 = vpow2.f32 %v2360_v61  ;;  %v2324_v43 = vsub.f32 %v5510_v36, %v2209_v62  ;;  %v2325_v22 = vsub.f32 %v5508_v14, %v2209_v62  ;;  %v2217_v26 = vrot.slane %v2216_v59, 1  ;;  %v3983_v40 = vpop.f32.mrb[20].mxu1 }
 0x29b   : > { %v5550_v27 = vpop.eup %4230  ;;  %v2224_v42 = vrot.slane %v2223_v28, 2  ;;  %v2231_v32 = vrot.slane %v2230_v52, 4  ;;  %v2238_v31 = vsel %vm2173_vm1, %v5544_v38, -inf  ;;  %v2237_v33 = vsel %vm2173_vm1, %v5546_v24, -inf  ;;  %v5556_v35 = vpop.f32.mrb[21].mxu1 }
 0x29c   : > { %v5558_v63 = vpop.eup %4232  ;;  %v2414_v14 = vsel %vm2173_vm1, %v5550_v27, 0.0  ;;  %v2362_v36 = vmul.f32 1.442695, %v2324_v43  ;;  %v2364_v46 = vmul.f32 1.442695, %v2325_v22  ;;  %v2218_v4 = vmax.f32 %v2216_v59, %v2217_v26 }
 0x29d   : > { %v2415_v7 = vsel %vm2173_vm1, %v5558_v63, 0.0  ;;  %v2225_v0 = vmax.f32 %v2223_v28, %v2224_v42  ;;  %v2232_v6 = vmax.f32 %v2230_v52, %v2231_v32  ;;  %v2239_v55 = vmax.f32 %v2237_v33, %v2238_v31  ;;  %v2070_v52 = vpop.permute.xlu0 %2069 }
 0x29e   : > { %v2416_v5 = vadd.f32 %v2415_v7, %v2414_v14  ;;  %4242 = vpow2.f32 %v2362_v36  ;;  %v2326_v19 = vsub.f32 %v5518_v39, %v2218_v4  ;;  %v2327_v49 = vsub.f32 %v5516_v60, %v2218_v4  ;;  %v5566_v45 = vpop.f32.mrb[22].mxu1  ;;  %v2074_v60 = vpop.permute.xlu1 %2073 }
 0x29f   : > { %v5568_v37 = vpop.eup %4234  ;;  %4244 = vpow2.f32 %v2364_v46  ;;  %v2226_v9 = vrot.slane %v2225_v0, 1  ;;  %v2233_v15 = vrot.slane %v2232_v6, 2  ;;  %v2240_v16 = vrot.slane %v2239_v55, 4  ;;  %v5570_v51 = vpop.f32.mrb[23].mxu1 }
 0x2a0   : > { %v5572_v10 = vpop.eup %4236  ;;  %v2417_v34 = vrot.slane %v2416_v5, 4  ;;  %v2423_v58 = vsel %vm2173_vm1, %v5568_v37, 0.0  ;;  %v2366_v39 = vmul.f32 1.442695, %v2326_v19  ;;  %v2368_v53 = vmul.f32 1.442695, %v2327_v49 }
 0x2a1   : > { %v2424_v3 = vsel %vm2173_vm1, %v5572_v10, 0.0  ;;  %v2227_v1 = vmax.f32 %v2225_v0, %v2226_v9  ;;  %v2234_v56 = vmax.f32 %v2232_v6, %v2233_v15  ;;  %v2241_v18 = vmax.f32 %v2239_v55, %v2240_v16  ;;  %v2081_v16 = vpop.permute.xlu0 %2080 }
 0x2a2   : > { %v2418_v25 = vadd.f32 %v2417_v34, %v2416_v5  ;;  %v2425_v54 = vadd.f32 %v2424_v3, %v2423_v58  ;;  %4246 = vpow2.f32 %v2366_v39  ;;  %v5578_v50 = vadd.f32 %v3983_v40, %v2063_v2  ;;  %v5580_v23 = vpop.f32.mrb[24].mxu1  ;;  %v2085_v42 = vpop.permute.xlu1 %2084 }
 0x2a3   : > { %v5582_v11 = vpop.eup %4238  ;;  %4248 = vpow2.f32 %v2368_v53  ;;  %v2328_v17 = vsub.f32 %v5526_v41, %v2227_v1  ;;  %v2329_v44 = vsub.f32 %v5524_v8, %v2227_v1  ;;  %v2235_v47 = vrot.slane %v2234_v56, 1  ;;  %v5586_v61 = vpop.f32.mrb[25].mxu1 }
 0x2a4   : > { %v5588_v13 = vpop.eup %4240  ;;  %v2419_v57 = vrot.slane %v2418_v25, 2  ;;  %v2426_v62 = vrot.slane %v2425_v54, 4  ;;  %v2432_v59 = vsel %vm2173_vm1, %v5582_v11, 0.0  ;;  %v2242_v28 = vrot.slane %v2241_v18, 2 }
 0x2a5   : > { %v2433_v48 = vsel %vm2173_vm1, %v5588_v13, 0.0  ;;  %v2370_v43 = vmul.f32 1.442695, %v2328_v17  ;;  %v2372_v22 = vmul.f32 1.442695, %v2329_v44  ;;  %v2236_v41 = vmax.f32 %v2234_v56, %v2235_v47 }
 0x2a6   : > { %v5594_v26 = vadd.f32 %v2419_v57, %v2418_v25  ;;  %v2427_v8 = vadd.f32 %v2426_v62, %v2425_v54  ;;  %v2434_v2 = vadd.f32 %v2433_v48, %v2432_v59  ;;  %v2243_v40 = vmax.f32 %v2241_v18, %v2242_v28  ;;  %v3992_v32 = vpop.f32.mrb[26].mxu1  ;;  %v2096_v18 = vpop.permute.xlu1 %2095 }
 0x2a7   : > { %4250 = vpow2.f32 %v2370_v43  ;;  %v2330_v31 = vsub.f32 %v5538_v20, %v2236_v41  ;;  %v2331_v33 = vsub.f32 %v5534_v30, %v2236_v41  ;;  %v2247_v14 = vsel %vm2173_vm1, %v5578_v50, -inf  ;;  %v5600_v36 = vpop.f32.mrb[27].mxu1 }
 0x2a8   : > { %v5602_v46 = vpop.eup %4242  ;;  %v2428_v4 = vrot.slane %v2427_v8, 2  ;;  %v2435_v7 = vrot.slane %v2434_v2, 4  ;;  %4252 = vpow2.f32 %v2372_v22  ;;  %v2244_v0 = vrot.slane %v2243_v40, 1 }
 0x2a9   : > { %v5604_v6 = vpop.eup %4244  ;;  %v2441_v55 = vsel %vm2173_vm1, %v5602_v46, 0.0  ;;  %v2374_v5 = vmul.f32 1.442695, %v2330_v31  ;;  %v2376_v20 = vmul.f32 1.442695, %v2331_v33  ;;  %v5609_v30 = vadd.f32 %v2059_v21, %v5556_v35 }
 0x2aa   : > { %v5611_v19 = vadd.f32 %v2428_v4, %v2427_v8  ;;  %v2436_v49 = vadd.f32 %v2435_v7, %v2434_v2  ;;  %v2442_v9 = vsel %vm2173_vm1, %v5604_v6, 0.0  ;;  %v2245_v15 = vmax.f32 %v2243_v40, %v2244_v0  ;;  %v3995_v34 = vpop.f32.mrb[28].mxu1  ;;  %v2092_v2 = vpop.permute.xlu0 %2091 }
 0x2ab   : > { %v2443_v58 = vadd.f32 %v2442_v9, %v2441_v55  ;;  %4254 = vpow2.f32 %v2374_v5  ;;  %v2246_v39 = vsel %vm2173_vm1, %v5609_v30, -inf  ;;  %v5618_v53 = vadd.f32 %v5566_v45, %v2074_v60  ;;  %v5620_v3 = vpop.f32.mrb[29].mxu1 }
 0x2ac   : > { %v5622_v35 = vpop.eup %4246  ;;  %v2437_v21 = vrot.slane %v2436_v49, 2  ;;  %4256 = vpow2.f32 %v2376_v20  ;;  %v2332_v1 = vsub.f32 %v5546_v24, %v2245_v15  ;;  %v2333_v56 = vsub.f32 %v5544_v38, %v2245_v15 }
 0x2ad   : > { %v5626_v25 = vpop.eup %4248  ;;  %v2444_v54 = vrot.slane %v2443_v58, 4  ;;  %v2450_v17 = vsel %vm2173_vm1, %v5622_v35, 0.0  ;;  %v2248_v44 = vmax.f32 %v2246_v39, %v2247_v14  ;;  %v2256_v45 = vsel %vm2173_vm1, %v5618_v53, -inf }
 0x2ae   : > { %v5632_v60 = vadd.f32 %v2437_v21, %v2436_v49  ;;  %v2451_v47 = vsel %vm2173_vm1, %v5626_v25, 0.0  ;;  %v2378_v57 = vmul.f32 1.442695, %v2332_v1  ;;  %v2380_v24 = vmul.f32 1.442695, %v2333_v56  ;;  %v5636_v62 = vpop.f32.mrb[30].mxu1 }
 0x2af   : > { %v2445_v38 = vadd.f32 %v2444_v54, %v2443_v58  ;;  %v2452_v59 = vadd.f32 %v2451_v47, %v2450_v17  ;;  %v2249_v28 = vrot.slane %v2248_v44, 4  ;;  %v5639_v48 = vadd.f32 %v2070_v52, %v5570_v51  ;;  %v5641_v43 = vpop.f32.mrb[31].mxu1  ;;  %v2103_v47 = vpop.permute.xlu0 %2102 }
 0x2b0   : > { %4258 = vpow2.f32 %v2378_v57  ;;  %v5644_v22 = vadd.f32 %v5580_v23, %v2085_v42  ;;  %v5647_v41 = vadd.f32 %v2081_v16, %v5586_v61  ;;  %v5649_v8 = vadd.f32 %v3992_v32, %v2096_v18  ;;  %v2107_v32 = vpop.permute.xlu1 %2106 }
 0x2b1   : > { %v5651_v40 = vpop.eup %4250  ;;  %v2446_v31 = vrot.slane %v2445_v38, 2  ;;  %v2453_v33 = vrot.slane %v2452_v59, 4  ;;  %4260 = vpow2.f32 %v2380_v24  ;;  %v2250_v14 = vmax.f32 %v2248_v44, %v2249_v28 }
 0x2b2   : > { %v5653_v51 = vpop.eup %4252  ;;  %v2459_v52 = vsel %vm2173_vm1, %v5651_v40, 0.0  ;;  %v2255_v23 = vsel %vm2173_vm1, %v5639_v48, -inf  ;;  %v2265_v61 = vsel %vm2173_vm1, %v5644_v22, -inf  ;;  %v2264_v42 = vsel %vm2173_vm1, %v5647_v41, -inf  ;;  %v5663_v4 = vpop.f32.mrb[32].mxu1 }
 0x2b3   : > { %v5665_v7 = vadd.f32 %v2446_v31, %v2445_v38  ;;  %v2454_v0 = vadd.f32 %v2453_v33, %v2452_v59  ;;  %v2460_v55 = vsel %vm2173_vm1, %v5653_v51, 0.0  ;;  %v2251_v5 = vrot.slane %v2250_v14, 2  ;;  %v5669_v20 = vpop.f32.mrb[33].mxu1 }
 0x2b4   : > { %v2461_v49 = vadd.f32 %v2460_v55, %v2459_v52  ;;  %v2257_v9 = vmax.f32 %v2255_v23, %v2256_v45  ;;  %v2266_v15 = vmax.f32 %v2264_v42, %v2265_v61  ;;  %v2274_v16 = vsel %vm2173_vm1, %v5649_v8, -inf }
 0x2b5   : > { %v5673_v58 = vpop.eup %4254  ;;  %v2455_v39 = vrot.slane %v2454_v0, 2  ;;  %v2252_v21 = vmax.f32 %v2250_v14, %v2251_v5  ;;  %v5676_v1 = vadd.f32 %v2092_v2, %v5600_v36  ;;  %v5678_v56 = vadd.f32 %v3995_v34, %v2107_v32 }
 0x2b6   : > { %v5680_v18 = vpop.eup %4256  ;;  %v2462_v54 = vrot.slane %v2461_v49, 4  ;;  %v2468_v17 = vsel %vm2173_vm1, %v5673_v58, 0.0  ;;  %v2258_v44 = vrot.slane %v2257_v9, 4  ;;  %v2267_v45 = vrot.slane %v2266_v15, 4  ;;  %v5684_v57 = vpop.f32.mrb[34].mxu1 }
 0x2b7   : > { %v5686_v24 = vadd.f32 %v2455_v39, %v2454_v0  ;;  %v2469_v38 = vsel %vm2173_vm1, %v5680_v18, 0.0  ;;  %v2253_v36 = vrot.slane %v2252_v21, 1  ;;  %v2273_v34 = vsel %vm2173_vm1, %v5676_v1, -inf  ;;  %v5692_v59 = vpop.f32.mrb[35].mxu1 }
 0x2b8   : > { %v2463_v28 = vadd.f32 %v2462_v54, %v2461_v49  ;;  %v2470_v2 = vadd.f32 %v2469_v38, %v2468_v17  ;;  %v2259_v31 = vmax.f32 %v2257_v9, %v2258_v44  ;;  %v2268_v33 = vmax.f32 %v2266_v15, %v2267_v45  ;;  %v2118_v44 = vpop.permute.xlu1 %2117 }
 0x2b9   : > { %v2254_v14 = vmax.f32 %v2252_v21, %v2253_v36  ;;  %v2275_v52 = vmax.f32 %v2273_v34, %v2274_v16  ;;  %v2283_v23 = vsel %vm2173_vm1, %v5678_v56, -inf  ;;  %v5697_v61 = vadd.f32 %v2103_v47, %v5620_v3  ;;  %v2114_v34 = vpop.permute.xlu0 %2113 }
 0x2ba   : > { %v5699_v42 = vpop.eup %4258  ;;  %v2464_v32 = vrot.slane %v2463_v28, 2  ;;  %v2471_v0 = vrot.slane %v2470_v2, 4  ;;  %v2260_v55 = vrot.slane %v2259_v31, 2  ;;  %v2269_v5 = vrot.slane %v2268_v33, 2 }
 0x2bb   : > { %6230 = vst [vmem:[#allocation21_spill] sm:$0xff] %v5699_v42  ;;  %v5701_v39 = vpop.eup %4260  ;;  %v2477_v49 = vsel %vm2173_vm1, %v5699_v42, 0.0  ;;  %v2334_v9 = vsub.f32 %v5609_v30, %v2254_v14  ;;  %v2335_v15 = vsub.f32 %v5578_v50, %v2254_v14  ;;  %v2276_v16 = vrot.slane %v2275_v52, 4 }
 0x2bc   : > { %v5707_v21 = vadd.f32 %v2464_v32, %v2463_v28  ;;  %v2472_v3 = vadd.f32 %v2471_v0, %v2470_v2  ;;  %v2478_v54 = vsel %vm2173_vm1, %v5701_v39, 0.0  ;;  %v2261_v17 = vmax.f32 %v2259_v31, %v2260_v55 }
 0x2bd   : > { %v2479_v45 = vadd.f32 %v2478_v54, %v2477_v49  ;;  %v2382_v47 = vmul.f32 1.442695, %v2334_v9  ;;  %v2384_v38 = vmul.f32 1.442695, %v2335_v15  ;;  %v2270_v36 = vmax.f32 %v2268_v33, %v2269_v5  ;;  %v2125_v54 = vpop.permute.xlu0 %2124 }
 0x2be   : > { %v2473_v12 = vrot.slane %v2472_v3, 2  ;;  %v2262_v29 = vrot.slane %v2261_v17, 1  ;;  %v2277_v42 = vmax.f32 %v2275_v52, %v2276_v16  ;;  %v2282_v50 = vsel %vm2173_vm1, %v5697_v61, -inf }
 0x2bf   : > { %v2480_v30 = vrot.slane %v2479_v45, 4  ;;  %4262 = vpow2.f32 %v2382_v47  ;;  %v2271_v28 = vrot.slane %v2270_v36, 1  ;;  %v2284_v2 = vmax.f32 %v2282_v50, %v2283_v23  ;;  %v2129_v23 = vpop.permute.xlu1 %2128 }
 0x2c0   : > { %v5713_v14 = vadd.f32 %v2473_v12, %v2472_v3  ;;  %4264 = vpow2.f32 %v2384_v38  ;;  %v2263_v31 = vmax.f32 %v2261_v17, %v2262_v29  ;;  %v2278_v32 = vrot.slane %v2277_v42, 2 }
 0x2c1   : > { %v2481_v0 = vadd.f32 %v2480_v30, %v2479_v45  ;;  %v2272_v55 = vmax.f32 %v2270_v36, %v2271_v28  ;;  %v2285_v49 = vrot.slane %v2284_v2, 4  ;;  %v5716_v33 = vadd.f32 %v5636_v62, %v2118_v44 }
 0x2c2   : > { %v2336_v52 = vsub.f32 %v5639_v48, %v2263_v31  ;;  %v2337_v5 = vsub.f32 %v5618_v53, %v2263_v31  ;;  %v2279_v9 = vmax.f32 %v2277_v42, %v2278_v32  ;;  %v5721_v15 = vadd.f32 %v2114_v34, %v5641_v43 }
 0x2c3   : > { %v2482_v12 = vrot.slane %v2481_v0, 2  ;;  %v2338_v16 = vsub.f32 %v5647_v41, %v2272_v55  ;;  %v2339_v29 = vsub.f32 %v5644_v22, %v2272_v55  ;;  %v2286_v3 = vmax.f32 %v2284_v2, %v2285_v49  ;;  %v2140_v2 = vpop.permute.xlu1 %2139  ;;  %v2136_v55 = vpop.permute.xlu0 %2135 }
 0x2c4   : > { %v2386_v17 = vmul.f32 1.442695, %v2336_v52  ;;  %v2388_v45 = vmul.f32 1.442695, %v2337_v5  ;;  %v2280_v62 = vrot.slane %v2279_v9, 1  ;;  %v2292_v48 = vsel %vm2173_vm1, %v5716_v33, -inf }
 0x2c5   : > { %v5727_v44 = vadd.f32 %v2482_v12, %v2481_v0  ;;  %v2390_v53 = vmul.f32 1.442695, %v2338_v16  ;;  %v2392_v42 = vmul.f32 1.442695, %v2339_v29  ;;  %v2287_v43 = vrot.slane %v2286_v3, 2 }
 0x2c6   : > { %4266 = vpow2.f32 %v2386_v17  ;;  %v2281_v47 = vmax.f32 %v2279_v9, %v2280_v62  ;;  %v2291_v41 = vsel %vm2173_vm1, %v5721_v15, -inf  ;;  %v5732_v22 = vadd.f32 %v5663_v4, %v2129_v23 }
 0x2c7   : > { %4268 = vpow2.f32 %v2388_v45  ;;  %v2288_v38 = vmax.f32 %v2286_v3, %v2287_v43  ;;  %v2293_v36 = vmax.f32 %v2291_v41, %v2292_v48  ;;  %v5735_v34 = vadd.f32 %v2125_v54, %v5669_v20 }
 0x2c8   : > { %4270 = vpow2.f32 %v2390_v53  ;;  %v2340_v50 = vsub.f32 %v5676_v1, %v2281_v47  ;;  %v2341_v30 = vsub.f32 %v5649_v8, %v2281_v47  ;;  %v2301_v28 = vsel %vm2173_vm1, %v5732_v22, -inf }
 0x2c9   : > { %v5741_v31 = vpop.eup %4262  ;;  %4272 = vpow2.f32 %v2392_v42  ;;  %v2289_v4 = vrot.slane %v2288_v38, 1  ;;  %v2294_v32 = vrot.slane %v2293_v36, 4  ;;  %v2300_v0 = vsel %vm2173_vm1, %v5735_v34, -inf }
 0x2ca   : > { %v5745_v20 = vpop.eup %4264  ;;  %v2486_v1 = vsel %vm2173_vm1, %v5741_v31, 0.0  ;;  %v2394_v49 = vmul.f32 1.442695, %v2340_v50  ;;  %v2396_v8 = vmul.f32 1.442695, %v2341_v30  ;;  %v2302_v52 = vmax.f32 %v2300_v0, %v2301_v28 }
 0x2cb   : > { %v2487_v5 = vsel %vm2173_vm1, %v5745_v20, 0.0  ;;  %v2290_v9 = vmax.f32 %v2288_v38, %v2289_v4  ;;  %v2295_v23 = vmax.f32 %v2293_v36, %v2294_v32  ;;  %v5752_v12 = vadd.f32 %v5684_v57, %v2140_v2 }
 0x2cc   : > { %v2488_v16 = vadd.f32 %v2487_v5, %v2486_v1  ;;  %4274 = vpow2.f32 %v2394_v49  ;;  %v2303_v29 = vrot.slane %v2302_v52, 4  ;;  %v5755_v3 = vadd.f32 %v2136_v55, %v5692_v59 }
 0x2cd   : > { %4276 = vpow2.f32 %v2396_v8  ;;  %v2342_v54 = vsub.f32 %v5697_v61, %v2290_v9  ;;  %v2343_v17 = vsub.f32 %v5678_v56, %v2290_v9  ;;  %v2296_v45 = vrot.slane %v2295_v23, 2 }
 0x2ce   : > { %v2489_v62 = vrot.slane %v2488_v16, 4  ;;  %v2304_v48 = vmax.f32 %v2302_v52, %v2303_v29  ;;  %v2310_v53 = vsel %vm2173_vm1, %v5752_v12, -inf  ;;  %v2309_v57 = vsel %vm2173_vm1, %v5755_v3, -inf }
 0x2cf   : > { %v2398_v42 = vmul.f32 1.442695, %v2342_v54  ;;  %v2400_v43 = vmul.f32 1.442695, %v2343_v17  ;;  %v2297_v47 = vmax.f32 %v2295_v23, %v2296_v45  ;;  %v2311_v41 = vmax.f32 %v2309_v57, %v2310_v53 }
 0x2d0   : > { %v5763_v59 = vpop.eup %4266  ;;  %v2490_v38 = vadd.f32 %v2489_v62, %v2488_v16  ;;  %v2305_v36 = vrot.slane %v2304_v48, 2  ;;  %v2421_v61 = vrot.slane %v5594_v26, 1  ;;  %v2430_v56 = vrot.slane %v5611_v19, 1 }
 0x2d1   : > { %v5767_v50 = vpop.eup %4268  ;;  %v2495_v30 = vsel %vm2173_vm1, %v5763_v59, 0.0  ;;  %4278 = vpow2.f32 %v2398_v42  ;;  %v2298_v28 = vrot.slane %v2297_v47, 1  ;;  %v2312_v2 = vrot.slane %v2311_v41, 4 }
 0x2d2   : > { %v5771_v4 = vpop.eup %4270  ;;  %v2491_v32 = vrot.slane %v2490_v38, 2  ;;  %v2496_v0 = vsel %vm2173_vm1, %v5767_v50, 0.0  ;;  %4280 = vpow2.f32 %v2400_v43  ;;  %v2306_v55 = vmax.f32 %v2304_v48, %v2305_v36 }
 0x2d3   : > { %v5775_v1 = vpop.eup %4272  ;;  %v2497_v49 = vadd.f32 %v2496_v0, %v2495_v30  ;;  %v2504_v8 = vsel %vm2173_vm1, %v5771_v4, 0.0  ;;  %v2299_v52 = vmax.f32 %v2297_v47, %v2298_v28  ;;  %v2313_v5 = vmax.f32 %v2311_v41, %v2312_v2 }
 0x2d4   : > { %v5779_v9 = vadd.f32 %v2491_v32, %v2490_v38  ;;  %v2505_v23 = vsel %vm2173_vm1, %v5775_v1, 0.0  ;;  %v2307_v16 = vrot.slane %v2306_v55, 1  ;;  %v2422_v29 = vadd.f32 %v2421_v61, %v5594_v26 }
 0x2d5   : > { %v2498_v54 = vrot.slane %v2497_v49, 4  ;;  %v2506_v17 = vadd.f32 %v2505_v23, %v2504_v8  ;;  %v2344_v45 = vsub.f32 %v5721_v15, %v2299_v52  ;;  %v2345_v62 = vsub.f32 %v5716_v33, %v2299_v52 }
 0x2d6   : > { %v5786_v48 = vpop.eup %4274  ;;  %v2308_v53 = vmax.f32 %v2306_v55, %v2307_v16  ;;  %v2314_v57 = vrot.slane %v2313_v5, 2  ;;  %4282 = vrcp.f32 %v2422_v29  ;;  %v2431_v42 = vadd.f32 %v2430_v56, %v5611_v19 }
 0x2d7   : > { %v5789_v43 = vpop.eup %4276  ;;  %v2499_v47 = vadd.f32 %v2498_v54, %v2497_v49  ;;  %v2507_v41 = vrot.slane %v2506_v17, 4  ;;  %v2513_v26 = vsel %vm2173_vm1, %v5786_v48, 0.0  ;;  %v2402_v38 = vmul.f32 1.442695, %v2344_v45 }
 0x2d8   : > { %v2514_v15 = vsel %vm2173_vm1, %v5789_v43, 0.0  ;;  %v2404_v36 = vmul.f32 1.442695, %v2345_v62  ;;  %v2346_v33 = vsub.f32 %v5735_v34, %v2308_v53  ;;  %v2347_v61 = vsub.f32 %v5732_v22, %v2308_v53 }
 0x2d9   : > { %v2500_v30 = vrot.slane %v2499_v47, 2  ;;  %v2508_v28 = vadd.f32 %v2507_v41, %v2506_v17  ;;  %v2515_v2 = vadd.f32 %v2514_v15, %v2513_v26  ;;  %4284 = vpow2.f32 %v2402_v38 }
 0x2da   : > { %4286 = vpow2.f32 %v2404_v36  ;;  %v2406_v19 = vmul.f32 1.442695, %v2346_v33  ;;  %v2408_v56 = vmul.f32 1.442695, %v2347_v61  ;;  %v2315_v32 = vmax.f32 %v2313_v5, %v2314_v57 }
 0x2db   : > { %v5797_v0 = vpop.eup %4278  ;;  %v2501_v55 = vadd.f32 %v2500_v30, %v2499_v47  ;;  %v2509_v49 = vrot.slane %v2508_v28, 2  ;;  %v2516_v8 = vrot.slane %v2515_v2, 4  ;;  %4288 = vrcp.f32 %v2431_v42 }
 0x2dc   : > { %v5799_v52 = vpop.eup %4280  ;;  %v2522_v34 = vsel %vm2173_vm1, %v5797_v0, 0.0  ;;  %4290 = vpow2.f32 %v2406_v19  ;;  %v2316_v22 = vrot.slane %v2315_v32, 1  ;;  %v2439_v23 = vrot.slane %v5632_v60, 1 }
 0x2dd   : > { %v5804_v16 = vadd.f32 %v2509_v49, %v2508_v28  ;;  %v2517_v29 = vadd.f32 %v2516_v8, %v2515_v2  ;;  %v2523_v5 = vsel %vm2173_vm1, %v5799_v52, 0.0  ;;  %4292 = vpow2.f32 %v2408_v56 }
 0x2de   : > { %v2524_v54 = vadd.f32 %v2523_v5, %v2522_v34  ;;  %v2317_v17 = vmax.f32 %v2315_v32, %v2316_v22  ;;  %v2440_v45 = vadd.f32 %v2439_v23, %v5632_v60  ;;  %v2448_v62 = vrot.slane %v5665_v7, 1 }
 0x2df   : > { %v2518_v53 = vrot.slane %v2517_v29, 2  ;;  %v2457_v57 = vrot.slane %v5686_v24, 1  ;;  %v2466_v42 = vrot.slane %v5707_v21, 1  ;;  %v2475_v47 = vrot.slane %v5713_v14, 1 }
 0x2e0   : > { %v4283_v41 = vpop.eup %4282  ;;  %v2525_v26 = vrot.slane %v2524_v54, 4  ;;  %v2348_v38 = vsub.f32 %v5755_v3, %v2317_v17  ;;  %v2349_v15 = vsub.f32 %v5752_v12, %v2317_v17  ;;  %4294 = vrcp.f32 %v2440_v45 }
 0x2e1   : > { %v2519_v36 = vadd.f32 %v2518_v53, %v2517_v29  ;;  %v2574_v33 = vmul.f32 %v4283_v41, %v5550_v27  ;;  %v2575_v60 = vmul.f32 %v4283_v41, %v5558_v63  ;;  %v2449_v61 = vadd.f32 %v2448_v62, %v5665_v7 }
 0x2e2   : > { %v2526_v30 = vadd.f32 %v2525_v26, %v2524_v54  ;;  %v2410_v28 = vmul.f32 1.442695, %v2348_v38  ;;  %v2412_v2 = vmul.f32 1.442695, %v2349_v15  ;;  %v2458_v19 = vadd.f32 %v2457_v57, %v5686_v24 }
 0x2e3   : > { %v5819_v56 = vpop.eup %4284  ;;  %4007 = vmatprep.mubr.msk.f32.mxu0 %vm2173_vm1, %v2574_v33  ;;  %4296 = vrcp.f32 %v2449_v61  ;;  %v2467_v12 = vadd.f32 %v2466_v42, %v5707_v21  ;;  %v2476_v3 = vadd.f32 %v2475_v47, %v5713_v14  ;;  %v2484_v27 = vrot.slane %v5727_v44, 1 }
 0x2e4   : > { %v5825_v32 = vpop.eup %4286  ;;  %v2527_v63 = vrot.slane %v2526_v30, 2  ;;  %v2531_v7 = vsel %vm2173_vm1, %v5819_v56, 0.0  ;;  %4298 = vpow2.f32 %v2410_v28  ;;  %4008 = vmatmul.mubr.msk.f32.vlgmr.msra.gmra.mrb[8].mxu0 %vm2173_vm1, %v2575_v60  ;;  %v2493_v24 = vrot.slane %v5779_v9, 1 }
 0x2e5   : > { %v4289_v49 = vpop.eup %4288  ;;  %v2532_v8 = vsel %vm2173_vm1, %v5825_v32, 0.0  ;;  %4300 = vpow2.f32 %v2412_v2  ;;  %v2485_v21 = vadd.f32 %v2484_v27, %v5727_v44  ;;  %v2502_v14 = vrot.slane %v2501_v55, 1 }
 0x2e6   : > { %v5834_v34 = vpop.eup %4290  ;;  %v2528_v22 = vadd.f32 %v2527_v63, %v2526_v30  ;;  %v2533_v23 = vadd.f32 %v2532_v8, %v2531_v7  ;;  %v2576_v29 = vmul.f32 %v4289_v49, %v5568_v37  ;;  %v2577_v5 = vmul.f32 %v4289_v49, %v5572_v10 }
 0x2e7   : > { %v5838_v54 = vpop.eup %4292  ;;  %v2540_v17 = vsel %vm2173_vm1, %v5834_v34, 0.0  ;;  %4302 = vrcp.f32 %v2458_v19  ;;  %v2494_v45 = vadd.f32 %v2493_v24, %v5779_v9  ;;  %v2503_v62 = vadd.f32 %v2502_v14, %v2501_v55 }
 0x2e8   : > { %v2534_v53 = vrot.slane %v2533_v23, 4  ;;  %v2541_v44 = vsel %vm2173_vm1, %v5838_v54, 0.0  ;;  %4010 = vmatprep.mubr.msk.f32.mxu0 %vm2173_vm1, %v2576_v29  ;;  %4304 = vrcp.f32 %v2467_v12  ;;  %v2511_v37 = vrot.slane %v5804_v16, 1 }
 0x2e9   : > { %v2542_v57 = vadd.f32 %v2541_v44, %v2540_v17  ;;  %4011 = vmatmul.mubr.msk.f32.gmra.mrb[10].mxu0 %vm2173_vm1, %v2577_v5  ;;  %4306 = vrcp.f32 %v2476_v3  ;;  %v2520_v10 = vrot.slane %v2519_v36, 1  ;;  %v2529_v42 = vrot.slane %v2528_v22, 1 }
 0x2ea   : > { %v4295_v47 = vpop.eup %4294  ;;  %v2535_v41 = vadd.f32 %v2534_v53, %v2533_v23  ;;  %4308 = vrcp.f32 %v2485_v21  ;;  %v2512_v9 = vadd.f32 %v2511_v37, %v5804_v16 }
 0x2eb   : > { %v2543_v55 = vrot.slane %v2542_v57, 4  ;;  %v2578_v26 = vmul.f32 %v4295_v47, %v5582_v11  ;;  %v2579_v38 = vmul.f32 %v4295_v47, %v5588_v13  ;;  %4310 = vrcp.f32 %v2494_v45 }
 0x2ec   : > { %v2536_v15 = vrot.slane %v2535_v41, 2  ;;  %4312 = vrcp.f32 %v2503_v62  ;;  %v2521_v33 = vadd.f32 %v2520_v10, %v2519_v36  ;;  %v2530_v60 = vadd.f32 %v2529_v42, %v2528_v22  ;;  %v6231_v62 = vld [vmem:[#allocation21_spill] sm:$0xff] }
 0x2ed   : > { %v4297_v61 = vpop.eup %4296  ;;  %v2544_v30 = vadd.f32 %v2543_v55, %v2542_v57  ;;  %4013 = vmatprep.mubr.msk.f32.mxu0 %vm2173_vm1, %v2578_v26  ;;  %4314 = vrcp.f32 %v2512_v9 }
 0x2ee   : > { %v5852_v28 = vpop.eup %4298  ;;  %v2537_v2 = vadd.f32 %v2536_v15, %v2535_v41  ;;  %4014 = vmatmul.mubr.msk.f32.gmra.mrb[12].mxu0 %vm2173_vm1, %v2579_v38  ;;  %v2580_v16 = vmul.f32 %v4297_v61, %v5602_v46  ;;  %v2581_v11 = vmul.f32 %v4297_v61, %v5604_v6  ;;  %4316 = vrcp.f32 %v2521_v33  ;;  %v6232_v61 = vld [vmem:[#allocation24_spill] sm:$0xff] }
 0x2ef   : > { %v5857_v13 = vpop.eup %4300  ;;  %v2545_v19 = vrot.slane %v2544_v30, 2  ;;  %v2549_v36 = vsel %vm2173_vm1, %v5852_v28, 0.0  ;;  %4318 = vrcp.f32 %v2530_v60 }
 0x2f0   : > { %v2550_v12 = vsel %vm2173_vm1, %v5857_v13, 0.0  ;;  %4016 = vmatprep.mubr.msk.f32.mxu0 %vm2173_vm1, %v2580_v16  ;;  %v2538_v3 = vrot.slane %v2537_v2, 1 }
 0x2f1   : > { %v4303_v27 = vpop.eup %4302  ;;  %v2546_v63 = vadd.f32 %v2545_v19, %v2544_v30  ;;  %v2551_v7 = vadd.f32 %v2550_v12, %v2549_v36 }
 0x2f2   : > { %v4305_v46 = vpop.eup %4304  ;;  %4017 = vmatmul.mubr.msk.f32.gmra.mrb[14].mxu0 %vm2173_vm1, %v2581_v11  ;;  %v2582_v6 = vmul.f32 %v4303_v27, %v5622_v35  ;;  %v2583_v24 = vmul.f32 %v4303_v27, %v5626_v25  ;;  %v2539_v49 = vadd.f32 %v2538_v3, %v2537_v2  ;;  %v6233_v2 = vld [vmem:[#allocation23_spill] sm:$0xff] }
 0x2f3   : > { %v4307_v8 = vpop.eup %4306  ;;  %v2552_v21 = vrot.slane %v2551_v7, 4  ;;  %v2584_v14 = vmul.f32 %v4305_v46, %v5651_v40  ;;  %v2585_v22 = vmul.f32 %v4305_v46, %v5653_v51  ;;  %v2547_v23 = vrot.slane %v2546_v63, 1 }
 0x2f4   : > { %v4309_v29 = vpop.eup %4308  ;;  %4019 = vmatprep.mubr.msk.f32.mxu0 %vm2173_vm1, %v2582_v6  ;;  %v2586_v5 = vmul.f32 %v4307_v8, %v5673_v58  ;;  %v2587_v17 = vmul.f32 %v4307_v8, %v5680_v18  ;;  %4320 = vrcp.f32 %v2539_v49 }
 0x2f5   : > { %v4311_v45 = vpop.eup %4310  ;;  %v2553_v35 = vadd.f32 %v2552_v21, %v2551_v7  ;;  %v2588_v25 = vmul.f32 %v4309_v29, %v6231_v62  ;;  %v2589_v53 = vmul.f32 %v4309_v29, %v5701_v39  ;;  %v2548_v44 = vadd.f32 %v2547_v23, %v2546_v63  ;;  %v6234_v23 = vld [vmem:[#allocation19_spill] sm:$0xff] }
 0x2f6   : > { %v4313_v37 = vpop.eup %4312  ;;  %4020 = vmatmul.mubr.msk.f32.gmra.mrb[16].mxu0 %vm2173_vm1, %v2583_v24  ;;  %v2590_v40 = vmul.f32 %v4311_v45, %v5741_v31  ;;  %v2591_v51 = vmul.f32 %v4311_v45, %v5745_v20 }
 0x2f7   : > { %v4315_v57 = vpop.eup %4314  ;;  %v2554_v10 = vrot.slane %v2553_v35, 2  ;;  %4022 = vmatprep.mubr.msk.f32.mxu0 %vm2173_vm1, %v2584_v14  ;;  %v2592_v58 = vmul.f32 %v4313_v37, %v5763_v59  ;;  %v2593_v18 = vmul.f32 %v4313_v37, %v5767_v50  ;;  %4322 = vrcp.f32 %v2548_v44 }
 0x2f8   : > { %v4317_v42 = vpop.eup %4316  ;;  %v2594_v39 = vmul.f32 %v4315_v57, %v5771_v4  ;;  %v2595_v47 = vmul.f32 %v4315_v57, %v5775_v1 }
 0x2f9   : > { %v4319_v41 = vpop.eup %4318  ;;  %v2555_v9 = vadd.f32 %v2554_v10, %v2553_v35  ;;  %v2596_v31 = vmul.f32 %v4317_v42, %v5786_v48  ;;  %v2597_v20 = vmul.f32 %v4317_v42, %v5789_v43 }
 0x2fa   : > { %4023 = vmatmul.mubr.msk.f32.gmra.mrb[18].mxu0 %vm2173_vm1, %v2585_v22  ;;  %v2598_v55 = vmul.f32 %v4319_v41, %v5797_v0  ;;  %v2599_v59 = vmul.f32 %v4319_v41, %v5799_v52  ;;  %v4358_v22 = vld [vmem:[%s4846_s25] sm:$0xf]  ;;  %s6236_s25 = sld [smem:[#allocation29_spill]] (!%p3726_p12) }
 0x2fb   : > { %4025 = vmatprep.mubr.msk.f32.mxu0 %vm2173_vm1, %v2586_v5  ;;  %v2556_v50 = vrot.slane %v2555_v9, 1  ;;  %v5921_v29 = vrot.slane %v4358_v22, %v6234_v23  ;;  %v6235_v5 = vld [vmem:[#allocation18_spill] sm:$0xff] }
 0x2fd   : > { %v2557_v26 = vadd.f32 %v2556_v50, %v2555_v9 }
 0x2fe   : > { %v4321_v38 = vpop.eup %4320  ;;  %4026 = vmatmul.mubr.msk.f32.gmra.mrb[20].mxu0 %vm2173_vm1, %v2587_v17  ;;  %v830_v17 = vrot.slane %v4358_v22, %v6235_v5 }
 0x2ff   : > { %4028 = vmatprep.mubr.msk.f32.mxu0 %vm2173_vm1, %v2588_v25  ;;  %v2600_v4 = vmul.f32 %v4321_v38, %v5819_v56  ;;  %v2601_v1 = vmul.f32 %v4321_v38, %v5825_v32  ;;  %4324 = vrcp.f32 %v2557_v26 }
 0x301   : > { %v4323_v48 = vpop.eup %4322 }
 0x302   : > { %4029 = vmatmul.mubr.msk.f32.gmra.mrb[22].mxu0 %vm2173_vm1, %v2589_v53  ;;  %v2602_v43 = vmul.f32 %v4323_v48, %v5834_v34  ;;  %v2603_v0 = vmul.f32 %v4323_v48, %v5838_v54  ;;  %v913_v34 = vpop.f32.mrb[4].mxu0 }
 0x303   : > { %4031 = vmatprep.mubr.msk.f32.mxu0 %vm2173_vm1, %v2590_v40  ;;  %v3923_v54 = vpop.f32.mrb[5].mxu0  ;;  %v5926_v10 = vadd.f32 %v913_v34, %v830_v17 }
 0x304   : > { %v916_v15 = vpop.f32.mrb[6].mxu0 }
 0x305   : > { %v3924_v33 = vpop.f32.mrb[7].mxu0 }
 0x306   : > { %4032 = vmatmul.mubr.msk.f32.gmra.mrb[24].mxu0 %vm2173_vm1, %v2591_v51 }
 0x307   : > { %4034 = vmatprep.mubr.msk.f32.mxu0 %vm2173_vm1, %v2592_v58 }
 0x309   : > { %v4325_v52 = vpop.eup %4324 }
 0x30a   : > { %4035 = vmatmul.mubr.msk.f32.gmra.mrb[26].mxu0 %vm2173_vm1, %v2593_v18  ;;  %v2604_v56 = vmul.f32 %v4325_v52, %v5852_v28  ;;  %v2605_v32 = vmul.f32 %v4325_v52, %v5857_v13 }
 0x30b   : > { %4037 = vmatprep.mubr.msk.f32.mxu0 %vm2173_vm1, %v2594_v39 }
 0x30c   : > { %4052 = vmatprep.mubr.msk.f32.mxu1 %vm2173_vm1, %v2604_v56 }
 0x30d   : > { %4053 = vmatmul.mubr.msk.f32.vlgmr.msra.gmra.mrb[36].mxu1 %vm2173_vm1, %v2605_v32 }
 0x30e   : > { %4038 = vmatmul.mubr.msk.f32.gmra.mrb[28].mxu0 %vm2173_vm1, %v2595_v47 }
 0x30f   : > { %4040 = vmatprep.mubr.msk.f32.mxu0 %vm2173_vm1, %v2596_v31 }
 0x312   : > { %4041 = vmatmul.mubr.msk.f32.gmra.mrb[30].mxu0 %vm2173_vm1, %v2597_v20 }
 0x313   : > { %4043 = vmatprep.mubr.msk.f32.mxu0 %vm2173_vm1, %v2598_v55 }
 0x316   : > { %4044 = vmatmul.mubr.msk.f32.gmra.mrb[32].mxu0 %vm2173_vm1, %v2599_v59 }
 0x317   : > { %4046 = vmatprep.mubr.msk.f32.mxu0 %vm2173_vm1, %v2600_v4 }
 0x31a   : > { %4047 = vmatmul.mubr.msk.f32.gmra.mrb[34].mxu0 %vm2173_vm1, %v2601_v1 }
 0x31b   : > { %4049 = vmatprep.mubr.msk.f32.mxu0 %vm2173_vm1, %v2602_v43  ;;  %v3094_v43 = vrot.slane %v5926_v10, 1 }
 0x31e   : > { %4050 = vmatmul.mubr.msk.f32.gmra.mrb[36].mxu0 %vm2173_vm1, %v2603_v0 }
 0x3b7   : > { %v4009_v60 = vpop.f32.mrb[8].mxu0 }
 0x3b8   : > { %v2929_v30 = vmul.f32 %v4009_v60, %v6232_v61  ;;  %v2769_v28 = vpop.f32.mrb[9].mxu0  ;;  %v5939_v60 = vadd.f32 %v916_v15, %v830_v17 }
 0x3b9   : > { %v2928_v16 = vmul.f32 %v2769_v28, %v6233_v2  ;;  %v3095_v28 = vrot.slane %v5926_v10, 2 }
 0x3bb   : > { %v2960_v11 = vadd.f32 %v2929_v30, %v2928_v16 }
 0x3bc   : > { %v4012_v13 = vpop.f32.mrb[10].mxu0 }
 0x3bd   : > { %v2961_v19 = vrot.slane %v2960_v11, 4  ;;  %v2931_v36 = vmul.f32 %v4012_v13, %v6232_v61  ;;  %v2779_v12 = vpop.f32.mrb[11].mxu0 }
 0x3be   : > { %v2930_v3 = vmul.f32 %v2779_v12, %v6233_v2 }
 0x3bf   : > { %v2962_v27 = vadd.f32 %v2961_v19, %v2960_v11 }
 0x3c0   : > { %v2967_v63 = vadd.f32 %v2931_v36, %v2930_v3  ;;  %v3096_v3 = vrot.slane %v5926_v10, 3 }
 0x3c1   : > { %v2963_v7 = vrot.slane %v2962_v27, 2  ;;  %v4015_v46 = vpop.f32.mrb[12].mxu0 }
 0x3c2   : > { %v2968_v6 = vrot.slane %v2967_v63, 4  ;;  %v2933_v24 = vmul.f32 %v4015_v46, %v6232_v61  ;;  %v2789_v49 = vpop.f32.mrb[13].mxu0 }
 0x3c3   : > { %v2964_v8 = vadd.f32 %v2963_v7, %v2962_v27  ;;  %v2932_v21 = vmul.f32 %v2789_v49, %v6233_v2 }
 0x3c4   : > { %v2969_v14 = vadd.f32 %v2968_v6, %v2967_v63 }
 0x3c5   : > { %v2965_v45 = vrot.slane %v2964_v8, 1  ;;  %v2974_v35 = vadd.f32 %v2933_v24, %v2932_v21  ;;  %v4018_v62 = vpop.f32.mrb[14].mxu0  ;;  %v3097_v21 = vrot.slane %v5926_v10, 4 }
 0x3c6   : > { %v2970_v25 = vrot.slane %v2969_v14, 2  ;;  %v2935_v53 = vmul.f32 %v4018_v62, %v6232_v61  ;;  %v2799_v44 = vpop.f32.mrb[15].mxu0  ;;  %v3099_v62 = vrot.slane %v5926_v10, 6 }
 0x3c7   : > { %v2966_v37 = vadd.f32 %v2965_v45, %v2964_v8  ;;  %v2975_v40 = vrot.slane %v2974_v35, 4  ;;  %v2934_v51 = vmul.f32 %v2799_v44, %v6233_v2 }
 0x3c8   : > { %v2971_v57 = vadd.f32 %v2970_v25, %v2969_v14  ;;  %v3098_v14 = vrot.slane %v5926_v10, 5 }
 0x3c9   : > { %v3076_v58 = vadd.f32 %v5921_v29, %v2966_v37  ;;  %v2976_v18 = vadd.f32 %v2975_v40, %v2974_v35  ;;  %v2981_v42 = vadd.f32 %v2935_v53, %v2934_v51  ;;  %v4021_v39 = vpop.f32.mrb[16].mxu0  ;;  %v3100_v51 = vrot.slane %v5926_v10, 7 }
 0x3ca   : > { %v2972_v47 = vrot.slane %v2971_v57, 1  ;;  %v2937_v41 = vmul.f32 %v4021_v39, %v6232_v61  ;;  %v2809_v9 = vpop.f32.mrb[17].mxu0 }
 0x3cb   : > { %v5931_v31 = vadd.f32 %v3076_v58, %v5926_v10  ;;  %v2977_v20 = vrot.slane %v2976_v18, 2  ;;  %v2982_v55 = vrot.slane %v2981_v42, 4  ;;  %v2936_v59 = vmul.f32 %v2809_v9, %v6233_v2 }
 0x3cc   : > { %v2973_v50 = vadd.f32 %v2972_v47, %v2971_v57 }
 0x3cd   : > { %v3156_v26 = vmin.f32 %v5931_v31, 0.0  ;;  %v2978_v38 = vadd.f32 %v2977_v20, %v2976_v18  ;;  %v2983_v4 = vadd.f32 %v2982_v55, %v2981_v42  ;;  %v4024_v1 = vpop.f32.mrb[18].mxu0  ;;  %v2988_v0 = vadd.f32 %v2937_v41, %v2936_v59 }
 0x3ce   : > { %v3077_v48 = vadd.f32 %v5921_v29, %v2973_v50  ;;  %v2939_v52 = vmul.f32 %v4024_v1, %v6232_v61  ;;  %v2819_v56 = vpop.f32.mrb[19].mxu0  ;;  %v3101_v42 = vrot.slane %v5939_v60, 1  ;;  %v3102_v20 = vrot.slane %v5939_v60, 2 }
 0x3cf   : > { %v3172_v32 = vmul.f32 1.442695, %v3156_v26  ;;  %v2979_v34 = vrot.slane %v2978_v38, 1  ;;  %v2984_v54 = vrot.slane %v2983_v4, 2  ;;  %v2938_v33 = vmul.f32 %v2819_v56, %v6233_v2 }
 0x3d0   : > { %v5941_v30 = vadd.f32 %v3094_v43, %v3077_v48  ;;  %v2989_v16 = vrot.slane %v2988_v0, 4  ;;  %vm3140_vm3 = vcmp.gt.f32.partialorder %v5931_v31, 0.0 }
 0x3d1   : > { %4326 = vpow2.f32 %v3172_v32  ;;  %v2980_v11 = vadd.f32 %v2979_v34, %v2978_v38  ;;  %v2985_v13 = vadd.f32 %v2984_v54, %v2983_v4  ;;  %v2995_v19 = vadd.f32 %v2939_v52, %v2938_v33  ;;  %v4027_v36 = vpop.f32.mrb[20].mxu0 }
 0x3d2   : > { %v3157_v12 = vmin.f32 %v5941_v30, 0.0  ;;  %v2990_v27 = vadd.f32 %v2989_v16, %v2988_v0  ;;  %v2941_v63 = vmul.f32 %v4027_v36, %v6232_v61  ;;  %v2829_v7 = vpop.f32.mrb[21].mxu0  ;;  %v3103_v38 = vrot.slane %v5939_v60, 3 }
 0x3d3   : > { %v3078_v15 = vadd.f32 %v5921_v29, %v2980_v11  ;;  %v2986_v46 = vrot.slane %v2985_v13, 1  ;;  %v2996_v6 = vrot.slane %v2995_v19, 4  ;;  %v2940_v24 = vmul.f32 %v2829_v7, %v6233_v2 }
 0x3d4   : > { %v3174_v49 = vmul.f32 1.442695, %v3157_v12  ;;  %v2991_v8 = vrot.slane %v2990_v27, 2  ;;  %vm3141_vm4 = vcmp.gt.f32.partialorder %v5941_v30, 0.0 }
 0x3d5   : > { %v5951_v22 = vadd.f32 %v3095_v28, %v3078_v15  ;;  %v2987_v23 = vadd.f32 %v2986_v46, %v2985_v13  ;;  %v2997_v5 = vadd.f32 %v2996_v6, %v2995_v19  ;;  %v3002_v17 = vadd.f32 %v2941_v63, %v2940_v24  ;;  %v4030_v45 = vpop.f32.mrb[22].mxu0 }
 0x3d6   : > { %4328 = vpow2.f32 %v3174_v49  ;;  %v2992_v35 = vadd.f32 %v2991_v8, %v2990_v27  ;;  %v2943_v25 = vmul.f32 %v4030_v45, %v6232_v61  ;;  %v2839_v53 = vpop.f32.mrb[23].mxu0 }
 0x3d7   : > { %v3158_v44 = vmin.f32 %v5951_v22, 0.0  ;;  %v3079_v37 = vadd.f32 %v5921_v29, %v2987_v23  ;;  %v2998_v40 = vrot.slane %v2997_v5, 2  ;;  %v3003_v58 = vrot.slane %v3002_v17, 4 }
 0x3d8   : > { %v2993_v57 = vrot.slane %v2992_v35, 1  ;;  %v2942_v18 = vmul.f32 %v2839_v53, %v6233_v2  ;;  %vm3142_vm5 = vcmp.gt.f32.partialorder %v5951_v22, 0.0 }
 0x3d9   : > { %v3176_v39 = vmul.f32 1.442695, %v3158_v44  ;;  %v5960_v47 = vadd.f32 %v3096_v3, %v3079_v37  ;;  %v2999_v41 = vadd.f32 %v2998_v40, %v2997_v5  ;;  %v4033_v9 = vpop.f32.mrb[24].mxu0  ;;  %v3004_v59 = vadd.f32 %v3003_v58, %v3002_v17 }
 0x3da   : > { %v2994_v55 = vadd.f32 %v2993_v57, %v2992_v35  ;;  %v3009_v50 = vadd.f32 %v2943_v25, %v2942_v18  ;;  %v2849_v26 = vpop.f32.mrb[25].mxu0  ;;  %v2945_v43 = vmul.f32 %v4033_v9, %v6232_v61 }
 0x3db   : > { %v4327_v4 = vpop.eup %4326  ;;  %4330 = vpow2.f32 %v3176_v39  ;;  %v3159_v1 = vmin.f32 %v5960_v47, 0.0  ;;  %v3000_v48 = vrot.slane %v2999_v41, 1  ;;  %v3005_v52 = vrot.slane %v3004_v59, 2 }
 0x3dc   : > { %v3080_v0 = vadd.f32 %v5921_v29, %v2994_v55  ;;  %v3010_v56 = vrot.slane %v3009_v50, 4  ;;  %v2944_v54 = vmul.f32 %v2849_v26, %v6233_v2  ;;  %v3710_v28 = vadd.f32 -1.0, %v4327_v4 }
 0x3dd   : > { %v3178_v32 = vmul.f32 1.442695, %v3159_v1  ;;  %v3001_v34 = vadd.f32 %v3000_v48, %v2999_v41  ;;  %v4036_v33 = vpop.f32.mrb[26].mxu0  ;;  %v3006_v11 = vadd.f32 %v3005_v52, %v3004_v59  ;;  %vm3143_vm8 = vcmp.gt.f32.partialorder %v5960_v47, 0.0 }
 0x3de   : > { %v5970_v16 = vadd.f32 %v3097_v21, %v3080_v0  ;;  %v3011_v13 = vadd.f32 %v3010_v56, %v3009_v50  ;;  %v2859_v19 = vpop.f32.mrb[27].mxu0  ;;  %v3016_v12 = vadd.f32 %v2945_v43, %v2944_v54  ;;  %v2947_v15 = vmul.f32 %v4036_v33, %v6232_v61 }
 0x3df   : > { %4332 = vpow2.f32 %v3178_v32  ;;  %v3081_v36 = vadd.f32 %v5921_v29, %v3001_v34  ;;  %v3007_v63 = vrot.slane %v3006_v11, 1  ;;  %v2946_v8 = vmul.f32 %v2859_v19, %v6233_v2 }
 0x3e0   : > { %v4329_v3 = vpop.eup %4328  ;;  %v3160_v27 = vmin.f32 %v5970_v16, 0.0  ;;  %v3012_v7 = vrot.slane %v3011_v13, 2  ;;  %v5976_v46 = vpop.f32.mrb[36].mxu1  ;;  %v3017_v49 = vrot.slane %v3016_v12, 4  ;;  %v3220_v5 = vsel %vm3140_vm3, %v5931_v31, %v3710_v28 }
 0x3e1   : > { %v3711_v6 = vadd.f32 -1.0, %v4329_v3  ;;  %v5978_v24 = vadd.f32 %v3098_v14, %v3081_v36  ;;  %v4039_v21 = vpop.f32.mrb[28].mxu0  ;;  %v5981_v23 = vpop.f32.mrb[37].mxu1  ;;  %v3008_v45 = vadd.f32 %v3007_v63, %v3006_v11  ;;  %v3023_v41 = vadd.f32 %v2947_v15, %v2946_v8 }
 0x3e2   : > { %v3180_v17 = vmul.f32 1.442695, %v3160_v27  ;;  %v3013_v35 = vadd.f32 %v3012_v7, %v3011_v13  ;;  %v2869_v25 = vpop.f32.mrb[29].mxu0  ;;  %v3018_v44 = vadd.f32 %v3017_v49, %v3016_v12  ;;  %v2949_v37 = vmul.f32 %v4039_v21, %v6232_v61 }
 0x3e3   : > { %v3221_v53 = vsel %vm3141_vm4, %v5941_v30, %v3711_v6  ;;  %v3161_v14 = vmin.f32 %v5978_v24, 0.0  ;;  %v3082_v57 = vadd.f32 %v5921_v29, %v3008_v45  ;;  %v2948_v9 = vmul.f32 %v2869_v25, %v6233_v2 }
 0x3e4   : > { %v3252_v40 = vrot.slane %v3221_v53, 7  ;;  %4334 = vpow2.f32 %v3180_v17  ;;  %v3014_v58 = vrot.slane %v3013_v35, 1  ;;  %v3019_v39 = vrot.slane %v3018_v44, 2 }
 0x3e5   : > { %v4331_v31 = vpop.eup %4330  ;;  %v3182_v18 = vmul.f32 1.442695, %v3161_v14  ;;  %v4042_v55 = vpop.f32.mrb[30].mxu0  ;;  %v5996_v50 = vadd.f32 %v3099_v62, %v3082_v57  ;;  %v3024_v48 = vrot.slane %v3023_v41, 4  ;;  %v3030_v43 = vadd.f32 %v2949_v37, %v2948_v9 }
 0x3e6   : > { %v3254_v30 = vsel %vm3253_vm2, %v3252_v40, %v3220_v5  ;;  %v3712_v59 = vadd.f32 -1.0, %v4331_v31  ;;  %v3015_v26 = vadd.f32 %v3014_v58, %v3013_v35  ;;  %v2879_v4 = vpop.f32.mrb[31].mxu0  ;;  %v3020_v1 = vadd.f32 %v3019_v39, %v3018_v44 }
 0x3e7   : > { %4336 = vpow2.f32 %v3182_v18  ;;  %v3162_v52 = vmin.f32 %v5996_v50, 0.0  ;;  %v3025_v54 = vadd.f32 %v3024_v48, %v3023_v41  ;;  %v3031_v33 = vrot.slane %v3030_v43, 4 }
 0x3e8   : > { %v3222_v0 = vsel %vm3142_vm5, %v5951_v22, %v3712_v59  ;;  %v3083_v56 = vadd.f32 %v5921_v29, %v3015_v26  ;;  %v3021_v62 = vrot.slane %v3020_v1, 1  ;;  %vm3144_vm10 = vcmp.gt.f32.partialorder %v5970_v16, 0.0 }
 0x3e9   : > { %v4333_v32 = vpop.eup %4332  ;;  %v3255_v34 = vrot.slane %v3222_v0, 6  ;;  %v4045_v28 = vpop.f32.mrb[32].mxu0  ;;  %v3184_v13 = vmul.f32 1.442695, %v3162_v52  ;;  %v3026_v3 = vrot.slane %v3025_v54, 2  ;;  %v3032_v27 = vadd.f32 %v3031_v33, %v3030_v43 }
 0x3ea   : > { %v3713_v11 = vadd.f32 -1.0, %v4333_v32  ;;  %v6007_v22 = vadd.f32 %v3100_v51, %v3083_v56  ;;  %v2889_v19 = vpop.f32.mrb[33].mxu0  ;;  %v3022_v12 = vadd.f32 %v3021_v62, %v3020_v1  ;;  %v2951_v15 = vmul.f32 %v4042_v55, %v6232_v61 }
 0x3eb   : > { %v3257_v36 = vsel %vm3256_vm6, %v3255_v34, %v3254_v30  ;;  %4338 = vpow2.f32 %v3184_v13  ;;  %v3027_v51 = vadd.f32 %v3026_v3, %v3025_v54  ;;  %v3033_v49 = vrot.slane %v3032_v27, 2 }
 0x3ec   : > { %v3223_v63 = vsel %vm3143_vm8, %v5960_v47, %v3713_v11  ;;  %v3163_v7 = vmin.f32 %v6007_v22, 0.0  ;;  %v3084_v10 = vadd.f32 %v5921_v29, %v3022_v12  ;;  %v2950_v17 = vmul.f32 %v2879_v4, %v6233_v2 }
 0x3ed   : > { %v3258_v6 = vrot.slane %v3223_v63, 5  ;;  %v4048_v8 = vpop.f32.mrb[34].mxu0  ;;  %v2953_v45 = vmul.f32 %v4045_v28, %v6232_v61  ;;  %v2952_v47 = vmul.f32 %v2889_v19, %v6233_v2  ;;  %v3028_v44 = vrot.slane %v3027_v51, 1 }
 0x3ee   : > { %v4335_v21 = vpop.eup %4334  ;;  %v3186_v5 = vmul.f32 1.442695, %v3163_v7  ;;  %v2899_v35 = vpop.f32.mrb[35].mxu0  ;;  %v6021_v14 = vadd.f32 %v3084_v10, %v5939_v60  ;;  %v3034_v37 = vadd.f32 %v3033_v49, %v3032_v27  ;;  %v3037_v40 = vadd.f32 %v2951_v15, %v2950_v17 }
 0x3ef   : > { %v3260_v25 = vsel %vm3259_vm7, %v3258_v6, %v3257_v36  ;;  %v3714_v53 = vadd.f32 -1.0, %v4335_v21  ;;  %v3044_v57 = vadd.f32 %v2953_v45, %v2952_v47  ;;  %vm3145_vm12 = vcmp.gt.f32.partialorder %v5978_v24, 0.0 }
 0x3f0   : > { %4340 = vpow2.f32 %v3186_v5  ;;  %v3164_v18 = vmin.f32 %v6021_v14, 0.0  ;;  %v3029_v39 = vadd.f32 %v3028_v44, %v3027_v51  ;;  %v3035_v30 = vrot.slane %v3034_v37, 1 }
 0x3f1   : > { %v4337_v58 = vpop.eup %4336  ;;  %v3224_v31 = vsel %vm3144_vm10, %v5970_v16, %v3714_v53  ;;  %v4051_v41 = vpop.f32.mrb[36].mxu0  ;;  %v3038_v59 = vrot.slane %v3037_v40, 4  ;;  %vm3146_vm14 = vcmp.gt.f32.partialorder %v5996_v50, 0.0  ;;  %v3045_v1 = vrot.slane %v3044_v57, 4 }
 0x3f2   : > { %v3261_v9 = vrot.slane %v3224_v31, 4  ;;  %v3715_v55 = vadd.f32 -1.0, %v4337_v58  ;;  %v2909_v26 = vpop.f32.mrb[37].mxu0  ;;  %v3085_v4 = vadd.f32 %v5921_v29, %v3029_v39  ;;  %v2955_v48 = vmul.f32 %v4048_v8, %v6232_v61 }
 0x3f3   : > { %v3036_v0 = vadd.f32 %v3035_v30, %v3034_v37  ;;  %v3039_v52 = vadd.f32 %v3038_v59, %v3037_v40  ;;  %v3188_v32 = vmul.f32 1.442695, %v3164_v18  ;;  %v3046_v62 = vadd.f32 %v3045_v1, %v3044_v57 }
 0x3f4   : > { %v3263_v16 = vsel %vm3262_vm9, %v3261_v9, %v3260_v25  ;;  %v3225_v43 = vsel %vm3145_vm12, %v5978_v24, %v3715_v55  ;;  %v6035_v34 = vadd.f32 %v3101_v42, %v3085_v4  ;;  %vm3147_vm0 = vcmp.gt.f32.partialorder %v6007_v22, 0.0 }
 0x3f5   : > { %v3264_v56 = vrot.slane %v3225_v43, 3  ;;  %v4339_v54 = vpop.eup %4338  ;;  %v3086_v33 = vadd.f32 %v5921_v29, %v3036_v0  ;;  %v3040_v28 = vrot.slane %v3039_v52, 2  ;;  %v2954_v11 = vmul.f32 %v2899_v35, %v6233_v2 }
 0x3f6   : > { %v3716_v13 = vadd.f32 -1.0, %v4339_v54  ;;  %v3165_v19 = vmin.f32 %v6035_v34, 0.0  ;;  %v2957_v36 = vmul.f32 %v4051_v41, %v6232_v61  ;;  %v3047_v3 = vrot.slane %v3046_v62, 2 }
 0x3f7   : > { %v3266_v24 = vsel %vm3265_vm11, %v3264_v56, %v3263_v16  ;;  %v6045_v42 = vadd.f32 %v3102_v20, %v3086_v33  ;;  %v3041_v12 = vadd.f32 %v3040_v28, %v3039_v52  ;;  %v3051_v27 = vadd.f32 %v2955_v48, %v2954_v11 }
 0x3f8   : > { %v3226_v63 = vsel %vm3146_vm14, %v5996_v50, %v3716_v13  ;;  %4342 = vpow2.f32 %v3188_v32  ;;  %v3190_v7 = vmul.f32 1.442695, %v3165_v19  ;;  %v2956_v15 = vmul.f32 %v2909_v26, %v6233_v2 }
 0x3f9   : > { %v3267_v10 = vrot.slane %v3226_v63, 2  ;;  %v3166_v51 = vmin.f32 %v6045_v42, 0.0  ;;  %v3042_v49 = vrot.slane %v3041_v12, 1  ;;  %v2959_v20 = vmul.f32 %v5976_v46, %v6232_v61 }
 0x3fa   : > { %v4341_v6 = vpop.eup %4340  ;;  %4344 = vpow2.f32 %v3190_v7  ;;  %v3048_v21 = vadd.f32 %v3047_v3, %v3046_v62  ;;  %v3052_v5 = vrot.slane %v3051_v27, 4  ;;  %v3058_v47 = vadd.f32 %v2957_v36, %v2956_v15 }
 0x3fb   : > { %v3717_v8 = vadd.f32 -1.0, %v4341_v6  ;;  %v3269_v17 = vsel %vm3268_vm13, %v3267_v10, %v3266_v24  ;;  %v3192_v45 = vmul.f32 1.442695, %v3166_v51  ;;  %v3043_v50 = vadd.f32 %v3042_v49, %v3041_v12 }
 0x3fc   : > { %v3049_v25 = vrot.slane %v3048_v21, 1  ;;  %v3053_v53 = vadd.f32 %v3052_v5, %v3051_v27  ;;  %v2958_v44 = vmul.f32 %v5981_v23, %v6233_v2  ;;  %v3059_v46 = vrot.slane %v3058_v47, 4 }
 0x3fd   : > { %v3227_v35 = vsel %vm3147_vm0, %v6007_v22, %v3717_v8  ;;  %4346 = vpow2.f32 %v3192_v45  ;;  %v3087_v61 = vadd.f32 %v5921_v29, %v3043_v50  ;;  %v3104_v2 = vrot.slane %v5939_v60, 4 }
 0x3fe   : > { %v3270_v37 = vrot.slane %v3227_v35, 1  ;;  %v3050_v40 = vadd.f32 %v3049_v25, %v3048_v21  ;;  %v3054_v57 = vrot.slane %v3053_v53, 2  ;;  %v3065_v58 = vadd.f32 %v2959_v20, %v2958_v44 }
 0x3ff   : > { %v3135_v18 = vadd.f32 %v3103_v38, %v3087_v61  ;;  %v3060_v22 = vadd.f32 %v3059_v46, %v3058_v47  ;;  %v3105_v0 = vrot.slane %v5939_v60, 5  ;;  %vm3149_vm1 = vcmp.gt.f32.partialorder %v6035_v34, 0.0 }
 0x400   : > { %v6062_v31 = vsel %vm3271_vm15, %v3270_v37, %v3269_v17  ;;  %v3088_v39 = vadd.f32 %v5921_v29, %v3050_v40  ;;  %v3055_v23 = vadd.f32 %v3054_v57, %v3053_v53  ;;  %v3066_v41 = vrot.slane %v3065_v58, 4 }
 0x401   : > { %3289 = vst [vmem:[#allocation2] sm:$0xff] %v6062_v31  ;;  %v3167_v9 = vmin.f32 %v3135_v18, 0.0  ;;  %v3061_v55 = vrot.slane %v3060_v22, 2  ;;  %vm3148_vm3 = vcmp.gt.f32.partialorder %v6021_v14, 0.0  ;;  %v3106_v19 = vrot.slane %v5939_v60, 6 }
 0x402   : > { %v4343_v30 = vpop.eup %4342  ;;  %v3136_v59 = vadd.f32 %v3104_v2, %v3088_v39  ;;  %v3056_v26 = vrot.slane %v3055_v23, 1  ;;  %v3067_v4 = vadd.f32 %v3066_v41, %v3065_v58  ;;  %vm3150_vm4 = vcmp.gt.f32.partialorder %v6045_v42, 0.0 }
 0x403   : > { %v3194_v1 = vmul.f32 1.442695, %v3167_v9  ;;  %v3062_v48 = vadd.f32 %v3061_v55, %v3060_v22  ;;  %v3718_v56 = vadd.f32 -1.0, %v4343_v30  ;;  %vm3296_vm10 = vcmask (!%p3726_p12), 130048  }
 0x404   : > { %v4345_v16 = vpop.eup %4344  ;;  %v3168_v43 = vmin.f32 %v3136_v59, 0.0  ;;  %v3057_v38 = vadd.f32 %v3056_v26, %v3055_v23  ;;  %v3068_v52 = vrot.slane %v3067_v4, 2  ;;  %vm3152_vm5 = vcmp.gt.f32.partialorder %v3136_v59, 0.0 }
 0x405   : > { %v3719_v32 = vadd.f32 -1.0, %v4345_v16  ;;  %4348 = vpow2.f32 %v3194_v1  ;;  %v3063_v62 = vrot.slane %v3062_v48, 1  ;;  %v3228_v27 = vsel %vm3148_vm3, %v6021_v14, %v3718_v56  ;;  %v4359_v16 = vld [vmem:[%s6237_s24] sm:$0xff] (!%p3726_p12)  }
 0x406   : > { %v3196_v54 = vmul.f32 1.442695, %v3168_v43  ;;  %v3089_v33 = vadd.f32 %v5921_v29, %v3057_v38  ;;  %v3069_v28 = vadd.f32 %v3068_v52, %v3067_v4  ;;  %v3107_v14 = vrot.slane %v5939_v60, 7  ;;  %v4362_v52 = vld [vmem:[%s6237_s24 + $0x18] sm:$0xff] (!%p3726_p12)   ;;  %v4363_v56 = vld [vmem:[%s6237_s24 + $0x20] sm:$0xff] (!%p3726_p12)  }
 0x407   : > { %v4347_v11 = vpop.eup %4346  ;;  %v3229_v24 = vsel %vm3149_vm1, %v6035_v34, %v3719_v32  ;;  %v3064_v13 = vadd.f32 %v3063_v62, %v3062_v48  ;;  %v3295_v48 = vld [vmem:[%s6236_s25] sm:$0x3] (!%p3726_p12)  ;;  %v4570_v43 = vmov (!%p3726_p12), 0.0|0.0   ;;  %v4572_v38 = vmov (!%p3726_p12), 0.0   ;;  %v4364_v32 = vld [vmem:[%s6237_s24 + $0x28] sm:$0xff] (!%p3726_p12)   ;;  %v4365_v62 = vld [vmem:[%s6237_s24 + $0x30] sm:$0xff] (!%p3726_p12)  }
 0x408   : > { %v3273_v36 = vrot.slane %v3229_v24, 7  ;;  %v3720_v12 = vadd.f32 -1.0, %v4347_v11  ;;  %4350 = vpow2.f32 %v3196_v54  ;;  %v3137_v3 = vadd.f32 %v3105_v0, %v3089_v33  ;;  %4114 = vmatprep.subr.bf16.mxu0 (!%p3726_p12), %v4570_v43  ;;  %4062 = vmatprep.subr.bf16.mxu1 (!%p3726_p12), %v4572_v38  ;;  %v4361_v0 = vld [vmem:[%s6237_s24 + $0x10] sm:$0xff] (!%p3726_p12)   ;;  %v4366_v54 = vld [vmem:[%s6237_s24 + $0x38] sm:$0xff] (!%p3726_p12)   ;;  %v3728_v24 = vld [vmem:[%s6238_s6] ss:$0 sm:$0xff] (!%p3726_p12) }
 0x409   : > { %v3090_v63 = vadd.f32 %v5921_v29, %v3064_v13  ;;  %v3070_v7 = vrot.slane %v3069_v28, 1  ;;  %4063 = vmatpush3.bf16.msra.mxu1 (!%p3726_p12), %v4359_v16 }
 0x40a   : > { %v3274_v15 = vsel %vm3253_vm2, %v3273_v36, %v3228_v27  ;;  %v3230_v6 = vsel %vm3150_vm4, %v6045_v42, %v3720_v12  ;;  %v3169_v10 = vmin.f32 %v3137_v3, 0.0  ;;  %vm3151_vm2 = vcmp.gt.f32.partialorder %v3135_v18, 0.0  ;;  %4064 = vmatprep.subr.bf16.mxu1 (!%p3726_p12), %v4572_v38 }
 0x40b   : > { %v3275_v34 = vrot.slane %v3230_v6, 6  ;;  %v3138_v51 = vadd.f32 %v3106_v19, %v3090_v63  ;;  %v3071_v49 = vadd.f32 %v3070_v7, %v3069_v28 }
 0x40c   : > { %v3198_v20 = vmul.f32 1.442695, %v3169_v10 }
 0x40d   : > { %v3276_v8 = vsel %vm3256_vm6, %v3275_v34, %v3274_v15  ;;  %v3170_v21 = vmin.f32 %v3138_v51, 0.0  ;;  %v3091_v5 = vadd.f32 %v5921_v29, %v3071_v49  ;;  %vm3153_vm6 = vcmp.gt.f32.partialorder %v3137_v3, 0.0 }
 0x40e   : > { %4352 = vpow2.f32 %v3198_v20  ;;  %vm3154_vm8 = vcmp.gt.f32.partialorder %v3138_v51, 0.0 }
 0x40f   : > { %v4349_v17 = vpop.eup %4348  ;;  %v3200_v45 = vmul.f32 1.442695, %v3170_v21  ;;  %v3139_v50 = vadd.f32 %v3107_v14, %v3091_v5 }
 0x410   : > { %v3721_v47 = vadd.f32 -1.0, %v4349_v17 }
 0x411   : > { %4354 = vpow2.f32 %v3200_v45  ;;  %v3171_v42 = vmin.f32 %v3139_v50, 0.0 }
 0x412   : > { %v4351_v35 = vpop.eup %4350  ;;  %v3231_v25 = vsel %vm3151_vm2, %v3135_v18, %v3721_v47 }
 0x413   : > { %v3277_v53 = vrot.slane %v3231_v25, 5  ;;  %v3722_v44 = vadd.f32 -1.0, %v4351_v35  ;;  %v3202_v37 = vmul.f32 1.442695, %v3171_v42 }
 0x415   : > { %v3278_v61 = vsel %vm3259_vm7, %v3277_v53, %v3276_v8  ;;  %v3232_v46 = vsel %vm3152_vm5, %v3136_v59, %v3722_v44  ;;  %4356 = vpow2.f32 %v3202_v37  ;;  %vm3155_vm7 = vcmp.gt.f32.partialorder %v3139_v50, 0.0 }
 0x416   : > { %v3279_v29 = vrot.slane %v3232_v46, 4 }
 0x418   : > { %v4353_v60 = vpop.eup %4352  ;;  %v3280_v40 = vsel %vm3262_vm9, %v3279_v29, %v3278_v61  ;;  %vm4571_vm9 = vmmov (!%p3726_p12), 0  }
 0x419   : > { %v3723_v57 = vadd.f32 -1.0, %v4353_v60  ;;  %4059 = vmatprep.mubr.msk.f32.mxu0 (!%p3726_p12), %vm4571_vm9, %v4572_v38  ;;  %4078 = vmatprep.mubr.msk.bf16.mxu1 (!%p3726_p12), %vm4571_vm9, %v4572_v38 }
 0x41b   : > { %v4355_v58 = vpop.eup %4354  ;;  %v3233_v22 = vsel %vm3153_vm6, %v3137_v3, %v3723_v57 }
 0x41c   : > { %v3281_v39 = vrot.slane %v3233_v22, 3  ;;  %v3724_v2 = vadd.f32 -1.0, %v4355_v58 }
 0x41e   : > { %v3282_v18 = vsel %vm3265_vm11, %v3281_v39, %v3280_v40  ;;  %v3234_v23 = vsel %vm3154_vm8, %v3138_v51, %v3724_v2  ;;  %vm3482_vm11 = vcmask (!%p3726_p12), 254976  }
 0x41f   : > { %v4357_v41 = vpop.eup %4356  ;;  %v3283_v9 = vrot.slane %v3234_v23, 2 }
 0x420   : > { %v3725_v55 = vadd.f32 -1.0, %v4357_v41  ;;  %3294 = sbr.rel (%p3726_p12) target bundleno = 1496 (0x5d8), region = 96 }
 0x421   : > { %v3284_v30 = vsel %vm3268_vm13, %v3283_v9, %v3282_v18 }
 0x422   : > { %v3235_v59 = vsel %vm3155_vm7, %v3139_v50, %v3725_v55 }
 0x423   : > { %v3285_v26 = vrot.slane %v3235_v59, 1 }
 0x425   : > { %v3286_v4 = vsel %vm3271_vm15, %v3285_v26, %v3284_v30 }
 0x426   : > { %3290 = vst [vmem:[#allocation2 + $0x8] sm:$0xff] %v3286_v4  ;;  %v4115_v1 = vpack.c.bf16 (!%p3726_p12), %v3286_v4, %v6062_v31  ;;  %v4360_v31 = vld [vmem:[%s6237_s24 + $0x8] sm:$0xff] (!%p3726_p12)  }
 0x427   : > { %4065 = vmatpush3.bf16.msra.mxu1 %v4360_v31 }
 0x428   : > { %4116 = vmatpush3.bf16.msra.mxu0 %v4115_v1  ;;  %4066 = vmatprep.subr.bf16.mxu1 %v4572_v38 }
 0x42b   : > { %4060 = vmatmul.mubr.msk.f32.vlgmr.msra.gmra.mrb[0].mxu0 %vm3296_vm10, %v3295_v48  ;;  %4067 = vmatpush3.bf16.msra.mxu1 %v4361_v0 }
 0x42c   : > { %4068 = vmatprep.subr.bf16.mxu1 %v4572_v38 }
 0x42f   : > { %4069 = vmatpush3.bf16.msra.mxu1 %v4362_v52 }
 0x430   : > { %4070 = vmatprep.subr.bf16.mxu1 %v4572_v38 }
 0x433   : > { %4071 = vmatpush3.bf16.msra.mxu1 %v4363_v56 }
 0x434   : > { %4072 = vmatprep.subr.bf16.mxu1 %v4572_v38 }
 0x437   : > { %4073 = vmatpush3.bf16.msra.mxu1 %v4364_v32 }
 0x438   : > { %4074 = vmatprep.subr.bf16.mxu1 %v4572_v38 }
 0x43b   : > { %4075 = vmatpush3.bf16.msra.mxu1 %v4365_v62 }
 0x43c   : > { %4076 = vmatprep.subr.bf16.mxu1 %v4572_v38 }
 0x43f   : > { %4077 = vmatpush3.bf16.msra.mxu1 %v4366_v54 }
 0x4fe   : > { %v3366_v33 = vpop.f32.mrb[0].mxu0 }
 0x4ff   : > { %v3370_v28 = vpack.c.bf16 %v3366_v33, %v3366_v33  ;;  %v4061_v11 = vpop.f32.mrb[1].mxu0 }
 0x501   : > { %4079 = vmatmul.mubr.bf16.vlgmr.msra.gmra.mrb[0].mxu1 %v3370_v28 }
 0x5d4   : > { %v3476_v13 = vpop.f32.mrb[0].mxu1 }
 0x5d5   : > { %v3477_v19 = vadd.f32 %v3728_v24, %v3476_v13  ;;  %v4080_v36 = vpop.f32.mrb[1].mxu1 }
 0x5d6   : > { %v3479_v12 = vpop.f32.mrb[2].mxu1 }
 0x5d7   : > { %3483 = vst.msk [vmem:[#allocation10] sm:$0x3] %vm3482_vm11, %v3477_v19  ;;  %v4081_v3 = vpop.f32.mrb[3].mxu1 }
 0x5d8 PF: > { %p4158_p8 = scmp.eq.s32.totalorder %s4663_s29, 9  ;;  %s4573_s25 = smov [#allocation10]  }
 0x5d9   : > { %s3491_s15 = sshll.u32 %s4573_s25, 4  ;;  %s3492_s15 = int_to_ptr.vmem [resolvable:$true] %s3491_s15 }
 0x5da   : > { %s4481_s17 = scalar_lea.vmem %s3492_s15, 32  ;;  %p4488_p9 = scmp.lt.s32.totalorder %s3492_s15, %s3492_s15 }
 0x5db   : > { %p4482_p10 = scmp.ne.s32.totalorder %s3492_s15, %s4481_s17  ;;  %p4489_p1 = scmp.lt.s32.totalorder %s4481_s17, %s4481_s17 }
 0x5dd   : > { %p4483_p0 = pnand %p4482_p10, %p4158_p8  ;;  %p4490_p3 = por %p4489_p1, %p4488_p9 }
 0x5df   : > { %p4484_p5 = pneg %p4483_p0 }
 0x5e1   : > { %p4491_p4 = pnand %p4490_p3, %p4484_p5 }
 0x5e3   : > { %4494 = shalt.err (!%p4491_p4)
}
 0x5e4   : > { %s6239_s16 = sld [smem:[#allocation32_spill]] }
 0x5ea   : > { %s4495_s1 = scalar_lea.hbm %s6239_s16, 32 }
 0x5eb   : > { %p4496_p2 = scmp.ne.s32.totalorder %s6239_s16, %s4495_s1  ;;  %p4501_p11 = scmp.lt.u32.totalorder %s4495_s1, %s6239_s16 }
 0x5ed   : > { %p4497_p6 = pnand %p4496_p2, %p4158_p8 }
 0x5ef   : > { %p4498_p7 = pneg %p4497_p6 }
 0x5f1   : > { %p4503_p13 = pnand %p4501_p11, %p4498_p7 }
 0x5f3   : > { %4506 = shalt.err (!%p4503_p13)
}
 0x5f4   : > { %4134 = dma.vmem_to_hbm [thread:$0]  (%p4158_p8), %s3492_s15, 32, %s6239_s16, [#allocation5]  }
 0x5f5   : > { %4540 = dma.done.wait (%p4158_p8), [#allocation5], 32  }
 0x5f6   : > { %4542 = vsyncadd (%p4158_p8), [#allocation5], 4294967264 }
 0x5f7 PF: > { %s6240_s28 = sld [smem:[#allocation16_spill]]  ;;  %s6241_s18 = sld [smem:[#allocation17_spill]] }
 0x5f8   : > { %s6242_s25 = smov %s4549_s26  ;;  %s6243_s26 = smov %s4553_s27 }
 0x5fd   : > { %p23_p12 = scmp.ge.s32.totalorder %s6240_s28, 12   ;;  %s6244_s27 = smov %s6241_s18 }
 0x5ff   :  { %25 = sbr.rel (!%p23_p12) target bundleno = 13 (0xd), region = 144 }
 0x606   :  { %3504 = vsyncpa [#allocation4], 1 }
 0x607   :  { %3506 = vsyncpa [#allocation4 + $0x1], 1 }
 0x608   :  { %3507 = vsyncpa [#allocation7], 1 }
 0x609   :  { %3508 = vsyncpa [#allocation5], 1 }
 0x60a   :  { %3510 = vsyncpa [#allocation5 + $0x1], 1 }

</bundles_post_ra>
